<compile_context>
chip_gen: v7x
topology: tpu7x:2x2x1
jax: 0.10.0
libtpu: 0.0.40
codegen_flags: <defaults>
</compile_context>

<pallas_src>
import jax
import jax.numpy as jnp
from jax.experimental import pallas as pl
from jax.experimental.pallas import tpu as pltpu


def _inverse_pixel_shuffle_kernel(x_ref, o_ref):
    """x_ref: (1, Ct, W) block;  o_ref: (1, Ct, s, w_out) block, W = s*w_out."""
    _, ct, w = x_ref.shape
    scale = o_ref.shape[2]
    w_out = w // scale

    x = x_ref[...]                               # (1, Ct, W)
    y = x.reshape(1, ct, w_out, scale)           # split W -> (w_out, s)
    y = jnp.transpose(y, (0, 1, 3, 2))           # (1, Ct, s, w_out): lane dim = w_out
    o_ref[...] = y                               # single full-block, lane-dense store


def _pick_channel_tile(c: int, w: int, itemsize: int,
                       target_block_bytes: int = 1 << 20) -> int:
    """Largest channel tile whose input block stays under ~1 MiB.

    Prefers a multiple of 8 (f32 sublane alignment) that divides C exactly so
    every grid step sees a full, aligned block; falls back to the whole C.
    """
    per_channel = w * itemsize
    max_ct = max(1, int(target_block_bytes // per_channel))
    if c <= max_ct:
        return c
    ct = (max_ct // 8) * 8
    while ct >= 8:
        if c % ct == 0:
            return ct
        ct -= 8
    return c  # no suitable divisor; use one full-C block per batch


def inverse_pixel_shuffle(x: jax.Array, scale_factor: int) -> jax.Array:
    """Pallas implementation of InversePixelShuffle.forward.

    Args:
      x: (batch, in_channels, width) array.
      scale_factor: int, downsample factor along width.

    Returns:
      (batch, in_channels * scale_factor, width // scale_factor) array.
    """
    b, c, w = x.shape
    s = int(scale_factor)
    if s <= 0:
        raise ValueError(f"scale_factor must be positive, got {scale_factor}")
    if w % s != 0:
        raise ValueError(
            f"width ({w}) must be divisible by scale_factor ({s})")
    w_out = w // s

    itemsize = x.dtype.itemsize
    ct = _pick_channel_tile(c, w, itemsize)
    grid = (b, c // ct)

    out4 = pl.pallas_call(
        _inverse_pixel_shuffle_kernel,
        out_shape=jax.ShapeDtypeStruct((b, c, s, w_out), x.dtype),
        grid_spec=pltpu.PrefetchScalarGridSpec(
            num_scalar_prefetch=0,
            grid=grid,
            in_specs=[
                pl.BlockSpec((1, ct, w), lambda bi, ci: (bi, ci, 0)),
            ],
            out_specs=pl.BlockSpec(
                (1, ct, s, w_out), lambda bi, ci: (bi, ci, 0, 0)),
        ),
        compiler_params=pltpu.CompilerParams(
            dimension_semantics=("parallel", "parallel"),
            vmem_limit_bytes=48 * 1024 * 1024,
        ),
        cost_estimate=pl.CostEstimate(
            flops=0,
            transcendentals=0,
            bytes_accessed=2 * x.size * itemsize,  # pure read + write
        ),
    )(x)

    # Free, contiguous view: (B, C, s, w_out) -> (B, C*s, w_out).
    return out4.reshape(b, c * s, w_out)


def _reference(x: jax.Array, scale_factor: int) -> jax.Array:
    """Pure-JAX mirror of the PyTorch forward (view/permute/view)."""
    b, c, w = x.shape
    s = scale_factor
    w_out = w // s
    y = x.reshape(b, c, w_out, s)
    y = jnp.transpose(y, (0, 1, 3, 2))
    return y.reshape(b, c * s, w_out)


if __name__ == "__main__":
    key = jax.random.PRNGKey(0)
    configs = [
        # (batch, in_channels, width, scale_factor)
        (2, 8, 512, 2),   # lane-dense main config: w_out = 256 (multiple of 128)
        (2, 4, 16, 2),    # tiny toy config matching the original module test
        (2, 8, 256, 4),   # larger scale factor
    ]
    for i, (bsz, ch, width, s) in enumerate(configs):
        k = jax.random.fold_in(key, i)
        x = jax.random.normal(k, (bsz, ch, width), dtype=jnp.float32)

        out = jax.block_until_ready(inverse_pixel_shuffle(x, s))
        ref = _reference(x, s)

        assert out.shape == (bsz, ch * s, width // s), (out.shape,)
        assert out.dtype == x.dtype
        assert jnp.array_equal(out, ref), (
            f"Pallas output mismatch vs reference for config {(bsz, ch, width, s)}")

    print("KERNEL_OK")
</pallas_src>

<mosaic_0001>
module attributes {stable_mosaic.version = 11 : i64} {
  func.func @_inverse_pixel_shuffle_kernel(%arg0: i32, %arg1: i32, %arg2: memref<1x8x512xf32, #tpu.memory_space<vmem>>, %arg3: memref<1x8x2x256xf32, #tpu.memory_space<vmem>>) attributes {dimension_semantics = [#tpu.dimension_semantics<parallel>, #tpu.dimension_semantics<parallel>], iteration_bounds = array<i64: 2, 1>, scalar_prefetch = 0 : i64, scratch_operands = 0 : i64, tpu.core_type = #tpu.core_type<tc>, window_params = [{transform_indices = @transform_0, window_bounds = array<i64: 1, 8, 512>}, {transform_indices = @transform_1, window_bounds = array<i64: 1, 8, 2, 256>}]} {
    %c0 = arith.constant 0 : index
    %c0_0 = arith.constant 0 : index
    %c0_1 = arith.constant 0 : index
    %0 = vector.load %arg2[%c0, %c0_0, %c0_1] : memref<1x8x512xf32, #tpu.memory_space<vmem>>, vector<1x8x512xf32>
    %1 = vector.shape_cast %0 : vector<1x8x512xf32> to vector<1x8x256x2xf32>
    %2 = tpu.transpose %1, [0, 1, 3, 2] : vector<1x8x256x2xf32> -> vector<1x8x2x256xf32>
    %c0_2 = arith.constant 0 : index
    %c0_3 = arith.constant 0 : index
    %c0_4 = arith.constant 0 : index
    %c0_5 = arith.constant 0 : index
    %3 = vector.load %arg3[%c0_2, %c0_3, %c0_4, %c0_5] : memref<1x8x2x256xf32, #tpu.memory_space<vmem>>, vector<1x8x2x256xf32>
    tpu.vector_store %arg3[%c0_2, %c0_3, %c0_4, %c0_5], %2 {strides = array<i32>} : memref<1x8x2x256xf32, #tpu.memory_space<vmem>>, vector<1x8x2x256xf32>,
    return
  }
  func.func @transform_0(%arg0: i32, %arg1: i32) -> (i32, i32, i32) {
    %c0_i32 = arith.constant 0 : i32
    %c0_i32_0 = arith.constant 0 : i32
    return %arg0, %arg1, %c0_i32 : i32, i32, i32
  }
  func.func @transform_1(%arg0: i32, %arg1: i32) -> (i32, i32, i32, i32) {
    %c0_i32 = arith.constant 0 : i32
    %c0_i32_0 = arith.constant 0 : i32
    %c0_i32_1 = arith.constant 0 : i32
    return %arg0, %arg1, %c0_i32, %c0_i32_0 : i32, i32, i32, i32
  }
}

</mosaic_0001>

<bundles_post_ra>
// kernel: tpu_custom_call.1
= control target key start
LH: loop header
LB: loop body
LE: loop exit
PB: predicated region body
PF: predicated region fallthrough
CT: control target
= control target key end

     0   :  { %s9186_s0 = inlined_call_operand.hbm [shape: f32[2,8,512], index: 0, kind: input, shape index: {}]   ;;  %s9187_s1 = inlined_call_operand.hbm [shape: f32[2,8,2,256], index: 1, kind: output, shape index: {}]  }
   0x1   :  { %9750 = sst [smem:[#allocation225_spill]] %s9186_s0 }
   0x2   :  { %9751 = sst [smem:[#allocation226_spill]] %s9187_s1 }
   0x3   :  { %6 = vsyncpa [#allocation3], 0 }
   0x4   :  { %8 = vsyncpa [#allocation3 + $0x1], 0 }
   0x5   :  { %9 = vsyncpa [#allocation4], 0 }
   0x6   :  { %11 = vsyncpa [#allocation4 + $0x1], 0  ;;  %s6323_s6 = smov 0   ;;  %s6325_s7 = smov 0  }
   0x7   :  { %s6327_s8 = smov 0   ;;  %s6329_s9 = smov 0  }
   0x8   :  { %s6331_s10 = smov 0   ;;  %s6333_s11 = smov 0  }
   0x9 LB: > { %9752 = sst [smem:[#allocation8_spill]] %s6224_s6  ;;  %s5980_s12 = sadd.s32 4294967295, %s6244_s11   ;;  %s6244_s11 = sphi %s6333_s11, %s17_s11   ;;  %s6240_s10 = sphi %s6331_s10, %s10546_s10   ;;  %s6236_s9 = sphi %s6329_s9, %s10545_s9   ;;  %s6232_s8 = sphi %s6327_s8, %s10544_s8   ;;  %s6228_s7 = sphi %s6325_s7, %s10543_s7   ;;  %s6224_s6 = sphi %s6323_s6, %s10542_s6  }
   0xa   : > { %9753 = sst [smem:[#allocation9_spill]] %s6228_s7  ;;  %s5981_s13 = sadd.s32 4294967294, %s6244_s11  }
   0xb   : > { %9754 = sst [smem:[#allocation10_spill]] %s6232_s8  ;;  %s29_s14 = sadd.s32 1, %s6240_s10 }
   0xc   : > { %9755 = sst [smem:[#allocation11_spill]] %s6236_s9  ;;  %s38_s15 = sadd.s32 1, %s6232_s8 }
   0xd   : > { %9756 = sst [smem:[#allocation12_spill]] %s6240_s10  ;;  %p31_p0 = scmp.ge.s32.totalorder %s29_s14, 2 }
   0xe   : > { %9757 = sst [smem:[#allocation13_spill]] %s6244_s11  ;;  %p45_p1 = scmp.ne.s32.totalorder %s6232_s8, %s6228_s7 }
   0xf   : > { %p46_p2 = scmp.eq.s32.totalorder %s6244_s11, 0  ;;  %p51_p3 = scmp.ne.s32.totalorder %s6228_s7, %s6224_s6 }
  0x10   : > { %s10548_s14 = smov (%p31_p0, %s29_s14), 0  ;;  %p52_p5 = scmp.eq.s32.totalorder %s5980_s12, 0 }
  0x11   : > { %9758 = sst [smem:[#allocation14_spill]] %s10548_s14  ;;  %p6364_p4 = por %p46_p2, %p45_p1 }
  0x12   : > { %s33_s17 = ssub.s32 %s6240_s10, %s10548_s14  ;;  %p77_p6 = scmp.eq.s32.totalorder %s5980_s12, 1 }
  0x13   : > { %p36_p7 = scmp.eq.s32.totalorder %s33_s17, 0  ;;  %p6370_p8 = por %p52_p5, %p51_p3 }
  0x14   : > { %p6374_p9 = por %p77_p6, %p45_p1  ;;  %p83_p10 = scmp.eq.s32.totalorder %s5981_s13, 1 }
  0x15   : > { %s6379_s20 = scalar_select %p36_p7, %s6232_s8, %s38_s15  }
  0x16   : > { %s9761_s19 = scalar_select %p6374_p9, 1, 0 }
  0x17   : > { %9763 = sst [smem:[#allocation16_spill]] %s6379_s20  ;;  %p6381_p11 = por %p83_p10, %p51_p3 }
  0x18   : > { %9762 = sst [smem:[#allocation15_spill]] %s9761_s19  ;;  %p6017_p13 = scmp.lt.s32.totalorder %s6244_s11, 2 }
  0x19   : > { %s9764_s21 = scalar_select %p6381_p11, 1, 0 }
  0x1a   : > { %s103_s22 = sand.u32 1, %s6232_s8   ;;  %s6003_s24 = sshll.u32 %s6240_s10, 9 }
  0x1b   : > { %9765 = sst [smem:[#allocation17_spill]] %s9764_s21  ;;  %s5984_s23 = sshll.u32 %s103_s22, 5 }
  0x1c   : > { %s9766_s0 = sld [smem:[#allocation225_spill]]  ;;  %s107_s28 = scalar_lea.vmem [#allocation2], %s5984_s23 }
  0x1d   : > { %s117_s29 = sshll.u32 %s107_s28, 4  ;;  %p6398_p0 = pnand %p6017_p13, %p6364_p4  ;;  %s6394_s29 = int_to_ptr.vmem [resolvable:$true] %s117_s29 }
  0x1e   : > { %s104_s2 = scalar_lea.sflag [#allocation3], %s103_s22 }
  0x1f   : > { %p6134_p5 = pneg %p6398_p0 }
  0x22   : > { %s6392_s27 = scalar_lea.hbm %s9766_s0, %s6003_s24  ;;  %s6137_s12 = scalar_lea.hbm %s9766_s0, 1024 }
  0x23   : > { %s6132_s3 = scalar_lea.hbm %s6392_s27, 512  ;;  %p6138_p4 = scmp.lt.u32.totalorder %s6392_s27, %s9766_s0 }
  0x24   : > { %p6133_p3 = scmp.ne.s32.totalorder %s6392_s27, %s6132_s3  ;;  %p6139_p10 = scmp.lt.u32.totalorder %s6137_s12, %s6132_s3 }
  0x25   : > { %p6141_p12 = scmp.lt.u32.totalorder %s6132_s3, %s6392_s27 }
  0x26   : > { %p6135_p6 = pnand %p6134_p5, %p6133_p3  ;;  %p6140_p13 = por %p6139_p10, %p6138_p4 }
  0x28   : > { %p6136_p7 = pneg %p6135_p6  ;;  %p6142_p1 = por %p6141_p12, %p6140_p13 }
  0x2a   : > { %p6143_p2 = pnand %p6142_p1, %p6136_p7 }
  0x2c   : > { %6146 = shalt.err (!%p6143_p2)
}
  0x2d   : > { %s6147_s16 = scalar_lea.vmem %s6394_s29, 512  ;;  %s6246_s17 = smov [#allocation2]  }
  0x2e   : > { %p6148_p3 = scmp.ne.s32.totalorder %s6394_s29, %s6147_s16  ;;  %s6152_s22 = sshll.u32 %s6246_s17, 4  ;;  %s6153_s22 = int_to_ptr.vmem [resolvable:$false] %s6152_s22 }
  0x2f   : > { %s6154_s23 = scalar_lea.vmem %s6153_s22, 1024  ;;  %p6155_p9 = scmp.lt.s32.totalorder %s6394_s29, %s6153_s22 }
  0x30   : > { %p6150_p6 = pnand %p6148_p3, %p6134_p5  ;;  %p6156_p4 = scmp.lt.s32.totalorder %s6154_s23, %s6147_s16 }
  0x32   : > { %p6151_p11 = pneg %p6150_p6  ;;  %p6157_p10 = por %p6156_p4, %p6155_p9 }
  0x34   : > { %p6158_p12 = pnand %p6157_p10, %p6151_p11 }
  0x36   : > { %6161 = shalt.err (!%p6158_p12)
}
  0x37   : > { %6012 = dma.hbm_to_vmem [thread:$0]  (!%p6398_p0), %s6392_s27, 512, %s6394_s29, %s104_s2  }
  0x38   : > { %p9768_p1 = scmp.lt.s32.totalorder %s6244_s11, 3  ;;  %p9769_p2 = scmp.ge.s32.totalorder %s6244_s11, 1 }
  0x3a   : > { %p123_p5 = pnand %p9769_p2, %p9768_p1 }
  0x3c   : > { %126 = sbr.rel (%p123_p5) target bundleno = 1232 (0x4d0), region = 24 }
  0x43   : > { %s6434_s24 = sand.u32 1, %s6228_s7  }
  0x44   : > { %9770 = sst [smem:[#allocation18_spill]] %s6434_s24  ;;  %s9189_s25 = sshll.u32 %s6434_s24, 5 }
  0x45   : > { %s129_s26 = scalar_lea.sflag [#allocation3], %s6434_s24  ;;  %s6440_s28 = scalar_lea.vmem [#allocation2], %s9189_s25 }
  0x46   : > { %9771 = sst [smem:[#allocation19_spill]] %s6440_s28 }
  0x47   : > { %6215 = dma.done.wait (%p6370_p8), %s129_s26, 512  }
  0x48   : > { %6217 = vsyncadd (%p6370_p8), %s129_s26, 4294966784  ;;  %v6447_v0 = vld [vmem:[%s6440_s28] sm:$0xff]  ;;  %s9296_s27 = smov 122   ;;  %s9300_s29 = smov 126   ;;  %v6303_v1 = vmov 1983009808   ;;  %v921_v3 = vlaneseq }
  0x49   : > { %163 = vrot.lane.b32.xlu1 %v6447_v0, %s9296_s27  ;;  %157 = vrot.lane.b32.xlu0 %v6447_v0, %s9300_s29  ;;  %s9298_s30 = smov 120   ;;  %s9302_s2 = smov 124   ;;  %v919_v2 = vunpack.c.l.s4 %v6303_v1  ;;  %v6310_v15 = vmov 1934713408   ;;  %v6578_v17 = vld [vmem:[%s6440_s28 + $0x8] sm:$0xff] }
  0x4a   : > { %s9294_s18 = smov 116   ;;  %s9292_s3 = smov 118   ;;  %v922_v5 = vshrl.u32 %v921_v3, 7  ;;  %v983_v16 = vunpack.c.l.s4 %v6310_v15 }
  0x4b   : > { %s9290_s4 = smov 112   ;;  %s9288_s5 = smov 114   ;;  %v920_v4 = vunpack.c.0.s8 %v919_v2 }
  0x4c   : > { %s9286_s12 = smov 108   ;;  %s9284_s13 = smov 110   ;;  %v984_v26 = vunpack.c.0.s8 %v983_v16 }
  0x4d   : > { %166 = vrot.lane.b32.xlu1 %v6447_v0, %s9298_s30  ;;  %160 = vrot.lane.b32.xlu0 %v6447_v0, %s9302_s2  ;;  %s9190_s15 = smov 104   ;;  %s9282_s16 = smov 106   ;;  %v6569_v8 = vsub.s32 %v920_v4, %v922_v5 }
  0x4e   : > { %s9192_s17 = smov 100   ;;  %s9194_s22 = smov 102   ;;  %v6592_v34 = vsub.s32 %v984_v26, %v922_v5 }
  0x4f   : > { %s9196_s23 = smov 96   ;;  %s9198_s26 = smov 98  }
  0x50   : > { %s9200_s25 = smov 92   ;;  %s9807_s0 = smov 72  }
  0x51   : > { %172 = vrot.lane.b32.xlu1 %v6447_v0, %s9294_s18  ;;  %169 = vrot.lane.b32.xlu0 %v6447_v0, %s9292_s3  ;;  %s9814_s14 = smov 66   ;;  %s9815_s10 = smov 68  }
  0x52   : > { %s9816_s20 = smov 62   ;;  %s9817_s8 = smov 64  }
  0x53   : > { %s9818_s7 = smov 58   ;;  %s9819_s11 = smov 60  }
  0x54   : > { %s9820_s21 = smov 54   ;;  %s9821_s6 = smov 56  }
  0x55   : > { %178 = vrot.lane.b32.xlu1 %v6447_v0, %s9290_s4  ;;  %175 = vrot.lane.b32.xlu0 %v6447_v0, %s9288_s5  ;;  %s9828_s1 = smov 50   ;;  %s9829_s19 = smov 52  }
  0x56   : > { %s9830_s9 = smov 46   ;;  %s9831_s24 = smov 48  }
  0x59   : > { %184 = vrot.lane.b32.xlu1 %v6447_v0, %s9286_s12  ;;  %181 = vrot.lane.b32.xlu0 %v6447_v0, %s9284_s13 }
  0x5d   : > { %190 = vrot.lane.b32.xlu1 %v6447_v0, %s9190_s15  ;;  %187 = vrot.lane.b32.xlu0 %v6447_v0, %s9282_s16  ;;  %s9202_s15 = smov 94  }
  0x61   : > { %196 = vrot.lane.b32.xlu1 %v6447_v0, %s9192_s17  ;;  %193 = vrot.lane.b32.xlu0 %v6447_v0, %s9194_s22  ;;  %s9204_s17 = smov 88   ;;  %s9206_s22 = smov 90  }
  0x65   : > { %202 = vrot.lane.b32.xlu1 %v6447_v0, %s9196_s23  ;;  %199 = vrot.lane.b32.xlu0 %v6447_v0, %s9198_s26  ;;  %s9208_s23 = smov 84   ;;  %s9210_s26 = smov 86  }
  0x69   : > { %208 = vrot.lane.b32.xlu1 %v6447_v0, %s9200_s25  ;;  %205 = vrot.lane.b32.xlu0 %v6447_v0, %s9202_s15  ;;  %s9212_s25 = smov 80   ;;  %s9214_s15 = smov 82  }
  0x6d   : > { %214 = vrot.lane.b32.xlu1 %v6447_v0, %s9204_s17  ;;  %211 = vrot.lane.b32.xlu0 %v6447_v0, %s9206_s22  ;;  %s9216_s17 = smov 76   ;;  %s9218_s22 = smov 78  }
  0x71   : > { %220 = vrot.lane.b32.xlu1 %v6447_v0, %s9208_s23  ;;  %217 = vrot.lane.b32.xlu0 %v6447_v0, %s9210_s26  ;;  %s9220_s23 = smov 72   ;;  %s9222_s26 = smov 74  }
  0x75   : > { %226 = vrot.lane.b32.xlu1 %v6447_v0, %s9212_s25  ;;  %223 = vrot.lane.b32.xlu0 %v6447_v0, %s9214_s15  ;;  %s9224_s25 = smov 68   ;;  %s9226_s15 = smov 70  }
  0x79   : > { %232 = vrot.lane.b32.xlu1 %v6447_v0, %s9216_s17  ;;  %229 = vrot.lane.b32.xlu0 %v6447_v0, %s9218_s22  ;;  %s9228_s17 = smov 64   ;;  %s9230_s22 = smov 66  }
  0x7d   : > { %238 = vrot.lane.b32.xlu1 %v6447_v0, %s9220_s23  ;;  %235 = vrot.lane.b32.xlu0 %v6447_v0, %s9222_s26  ;;  %s9232_s23 = smov 60   ;;  %s9234_s26 = smov 62  }
  0x81   : > { %244 = vrot.lane.b32.xlu1 %v6447_v0, %s9224_s25  ;;  %241 = vrot.lane.b32.xlu0 %v6447_v0, %s9226_s15  ;;  %s9236_s25 = smov 56   ;;  %s9238_s15 = smov 58  }
  0x85   : > { %250 = vrot.lane.b32.xlu1 %v6447_v0, %s9228_s17  ;;  %247 = vrot.lane.b32.xlu0 %v6447_v0, %s9230_s22  ;;  %s9240_s17 = smov 52   ;;  %s9242_s22 = smov 54  }
  0x89   : > { %256 = vrot.lane.b32.xlu1 %v6447_v0, %s9232_s23  ;;  %253 = vrot.lane.b32.xlu0 %v6447_v0, %s9234_s26  ;;  %s9244_s23 = smov 48   ;;  %s9246_s26 = smov 50  }
  0x8d   : > { %262 = vrot.lane.b32.xlu1 %v6447_v0, %s9236_s25  ;;  %259 = vrot.lane.b32.xlu0 %v6447_v0, %s9238_s15  ;;  %s9248_s25 = smov 44   ;;  %s9250_s15 = smov 46  }
  0x91   : > { %268 = vrot.lane.b32.xlu1 %v6447_v0, %s9240_s17  ;;  %265 = vrot.lane.b32.xlu0 %v6447_v0, %s9242_s22  ;;  %s9252_s17 = smov 40   ;;  %s9254_s22 = smov 42  }
  0x95   : > { %274 = vrot.lane.b32.xlu1 %v6447_v0, %s9244_s23  ;;  %271 = vrot.lane.b32.xlu0 %v6447_v0, %s9246_s26  ;;  %s9256_s23 = smov 36   ;;  %s9258_s26 = smov 38  }
  0x99   : > { %280 = vrot.lane.b32.xlu1 %v6447_v0, %s9248_s25  ;;  %277 = vrot.lane.b32.xlu0 %v6447_v0, %s9250_s15  ;;  %s9260_s25 = smov 32   ;;  %s9262_s15 = smov 34  }
  0x9d   : > { %286 = vrot.lane.b32.xlu1 %v6447_v0, %s9252_s17  ;;  %283 = vrot.lane.b32.xlu0 %v6447_v0, %s9254_s22  ;;  %s9264_s17 = smov 28   ;;  %s9266_s22 = smov 30  }
  0xa1   : > { %292 = vrot.lane.b32.xlu1 %v6447_v0, %s9256_s23  ;;  %289 = vrot.lane.b32.xlu0 %v6447_v0, %s9258_s26  ;;  %s9268_s23 = smov 24   ;;  %s9314_s26 = smov 26  }
  0xa5   : > { %298 = vrot.lane.b32.xlu1 %v6447_v0, %s9260_s25  ;;  %295 = vrot.lane.b32.xlu0 %v6447_v0, %s9262_s15  ;;  %s9270_s25 = smov 20   ;;  %s9312_s15 = smov 22  }
  0xa9   : > { %304 = vrot.lane.b32.xlu1 %v6447_v0, %s9264_s17  ;;  %301 = vrot.lane.b32.xlu0 %v6447_v0, %s9266_s22  ;;  %s9272_s17 = smov 16   ;;  %s9274_s22 = smov 18  }
  0xad   : > { %310 = vrot.lane.b32.xlu1 %v6447_v0, %s9268_s23  ;;  %307 = vrot.lane.b32.xlu0 %v6447_v0, %s9314_s26  ;;  %s9276_s23 = smov 12   ;;  %s9806_s26 = smov 70  }
  0xb1   : > { %316 = vrot.lane.b32.xlu1 %v6447_v0, %s9270_s25  ;;  %313 = vrot.lane.b32.xlu0 %v6447_v0, %s9312_s15  ;;  %s9310_s25 = smov 14   ;;  %s9805_s15 = smov 76  }
  0xb5   : > { %322 = vrot.lane.b32.xlu1 %v6447_v0, %s9272_s17  ;;  %319 = vrot.lane.b32.xlu0 %v6447_v0, %s9274_s22  ;;  %s9278_s17 = smov 8   ;;  %s9308_s22 = smov 10  }
  0xb9   : > { %328 = vrot.lane.b32.xlu1 %v6447_v0, %s9276_s23  ;;  %325 = vrot.lane.b32.xlu0 %v6447_v0, %s9310_s25  ;;  %s9280_s23 = smov 4   ;;  %s9804_s25 = smov 74  }
  0xbb   : > { %v164_v6 = vpop.permute.xlu1 %163  ;;  %v158_v7 = vpop.permute.xlu0 %157 }
  0xbc   : > { %v932_v9 = vcombine.low %v158_v7, %v164_v6  ;;  %v933_v10 = vcombine.high %v158_v7, %v164_v6 }
  0xbd   : > { %334 = vrot.lane.b32.xlu1 %v6447_v0, %s9278_s17  ;;  %331 = vrot.lane.b32.xlu0 %v6447_v0, %s9308_s22  ;;  %s9306_s17 = smov 6   ;;  %s9803_s22 = smov 80  }
  0xbe   : > { %v940_v18 = vrot.slane %v932_v9, %v6569_v8  ;;  %v947_v19 = vrot.slane %v933_v10, %v6569_v8 }
  0xbf   : > { %v167_v11 = vpop.permute.xlu1 %166  ;;  %v161_v12 = vpop.permute.xlu0 %160 }
  0xc0   : > { %v916_v13 = vcombine.low %v6447_v0, %v161_v12  ;;  %v917_v14 = vcombine.high %v6447_v0, %v161_v12 }
  0xc1   : > { %340 = vrot.lane.b32.xlu1 %v6447_v0, %s9280_s23  ;;  %337 = vrot.lane.b32.xlu0 %v6447_v0, %s9306_s17  ;;  %s9304_s23 = smov 2   ;;  %s9802_s17 = smov 78  }
  0xc2   : > { %v924_v20 = vrot.slane %v916_v13, %v6569_v8  ;;  %v931_v21 = vrot.slane %v917_v14, %v6569_v8 }
  0xc3   : > { %v173_v22 = vpop.permute.xlu1 %172  ;;  %v170_v23 = vpop.permute.xlu0 %169 }
  0xc4   : > { %v981_v24 = vcombine.high %v924_v20, %v940_v18  ;;  %v997_v25 = vcombine.high %v931_v21, %v947_v19  ;;  %v948_v27 = vcombine.low %v167_v11, %v173_v22  ;;  %v949_v28 = vcombine.high %v167_v11, %v173_v22 }
  0xc5   : > { %347 = vrot.lane.b32.xlu1 %v6578_v17, %s9300_s29  ;;  %343 = vrot.lane.b32.xlu0 %v6447_v0, %s9304_s23  ;;  %v980_v33 = vcombine.low %v924_v20, %v940_v18  ;;  %v996_v39 = vcombine.low %v931_v21, %v947_v19  ;;  %s9793_s29 = smov 88   ;;  %s9801_s23 = smov 84  }
  0xc6   : > { %v956_v35 = vrot.slane %v948_v27, %v6569_v8  ;;  %v963_v36 = vrot.slane %v949_v28, %v6569_v8  ;;  %v6618_v55 = vrot.slane %v981_v24, %v6592_v34  ;;  %v6624_v57 = vrot.slane %v997_v25, %v6592_v34 }
  0xc7   : > { %v179_v29 = vpop.permute.xlu1 %178  ;;  %v176_v30 = vpop.permute.xlu0 %175  ;;  %v6603_v48 = vrot.slane %v980_v33, %v6592_v34  ;;  %v6621_v56 = vrot.slane %v996_v39, %v6592_v34 }
  0xc8   : > { %v964_v31 = vcombine.low %v170_v23, %v176_v30  ;;  %v965_v32 = vcombine.high %v170_v23, %v176_v30  ;;  %9775 = vst [vmem:[#allocation23_spill] sm:$0xff] %v6618_v55  ;;  %9777 = vst [vmem:[#allocation25_spill] sm:$0xff] %v6624_v57 }
  0xc9   : > { %353 = vrot.lane.b32.xlu1 %v6578_v17, %s9296_s27  ;;  %350 = vrot.lane.b32.xlu0 %v6578_v17, %s9302_s2  ;;  %9776 = vst [vmem:[#allocation24_spill] sm:$0xff] %v6621_v56  ;;  %s9791_s27 = smov 92   ;;  %s9800_s2 = smov 82  }
  0xca   : > { %v972_v37 = vrot.slane %v964_v31, %v6569_v8  ;;  %v979_v38 = vrot.slane %v965_v32, %v6569_v8 }
  0xcb   : > { %v185_v40 = vpop.permute.xlu1 %184  ;;  %v182_v41 = vpop.permute.xlu0 %181 }
  0xcc   : > { %v1012_v42 = vcombine.low %v956_v35, %v972_v37  ;;  %v1013_v43 = vcombine.high %v956_v35, %v972_v37  ;;  %v1028_v44 = vcombine.low %v963_v36, %v979_v38  ;;  %v1029_v45 = vcombine.high %v963_v36, %v979_v38 }
  0xcd   : > { %v1052_v46 = vcombine.low %v179_v29, %v185_v40  ;;  %v1053_v47 = vcombine.high %v179_v29, %v185_v40  ;;  %359 = vrot.lane.b32.xlu1 %v6578_v17, %s9292_s3  ;;  %356 = vrot.lane.b32.xlu0 %v6578_v17, %s9298_s30  ;;  %s9789_s3 = smov 96   ;;  %s9792_s30 = smov 86  }
  0xce   : > { %v6606_v49 = vrot.slane %v1012_v42, %v6592_v34  ;;  %v6609_v50 = vrot.slane %v1013_v43, %v6592_v34  ;;  %v6612_v51 = vrot.slane %v1028_v44, %v6592_v34  ;;  %v6615_v52 = vrot.slane %v1029_v45, %v6592_v34 }
  0xcf   : > { %v191_v53 = vpop.permute.xlu1 %190  ;;  %v188_v54 = vpop.permute.xlu0 %187  ;;  %v1060_v58 = vrot.slane %v1052_v46, %v6569_v8  ;;  %v1067_v62 = vrot.slane %v1053_v47, %v6569_v8 }
  0xd0   : > { %9772 = vst [vmem:[#allocation20_spill] sm:$0xff] %v6609_v50  ;;  %9773 = vst [vmem:[#allocation21_spill] sm:$0xff] %v6612_v51  ;;  %v1068_v59 = vcombine.low %v182_v41, %v188_v54  ;;  %v1069_v60 = vcombine.high %v182_v41, %v188_v54 }
  0xd1   : > { %9774 = vst [vmem:[#allocation22_spill] sm:$0xff] %v6615_v52  ;;  %365 = vrot.lane.b32.xlu1 %v6578_v17, %s9288_s5  ;;  %362 = vrot.lane.b32.xlu0 %v6578_v17, %s9294_s18  ;;  %s9787_s5 = smov 100   ;;  %s9790_s18 = smov 90  }
  0xd2   : > { %v1076_v1 = vrot.slane %v1068_v59, %v6569_v8  ;;  %v1083_v2 = vrot.slane %v1069_v60, %v6569_v8 }
  0xd3   : > { %v197_v5 = vpop.permute.xlu1 %196  ;;  %v194_v6 = vpop.permute.xlu0 %193 }
  0xd4   : > { %v1117_v9 = vcombine.high %v1060_v58, %v1076_v1  ;;  %v1133_v10 = vcombine.high %v1067_v62, %v1083_v2  ;;  %v1084_v11 = vcombine.low %v191_v53, %v197_v5  ;;  %v1085_v12 = vcombine.high %v191_v53, %v197_v5 }
  0xd5   : > { %371 = vrot.lane.b32.xlu1 %v6578_v17, %s9284_s13  ;;  %368 = vrot.lane.b32.xlu0 %v6578_v17, %s9290_s4  ;;  %v1116_v18 = vcombine.low %v1060_v58, %v1076_v1  ;;  %v1132_v23 = vcombine.low %v1067_v62, %v1083_v2  ;;  %s9779_s13 = smov 104   ;;  %s9788_s4 = smov 94  }
  0xd6   : > { %v1092_v19 = vrot.slane %v1084_v11, %v6569_v8  ;;  %v1099_v20 = vrot.slane %v1085_v12, %v6569_v8  ;;  %v6678_v40 = vrot.slane %v1117_v9, %v6592_v34  ;;  %v6684_v42 = vrot.slane %v1133_v10, %v6592_v34 }
  0xd7   : > { %v203_v13 = vpop.permute.xlu1 %202  ;;  %v200_v14 = vpop.permute.xlu0 %199  ;;  %v6663_v32 = vrot.slane %v1116_v18, %v6592_v34  ;;  %v6681_v41 = vrot.slane %v1132_v23, %v6592_v34 }
  0xd8   : > { %v1100_v15 = vcombine.low %v194_v6, %v200_v14  ;;  %v1101_v16 = vcombine.high %v194_v6, %v200_v14  ;;  %9783 = vst [vmem:[#allocation29_spill] sm:$0xff] %v6678_v40  ;;  %9785 = vst [vmem:[#allocation31_spill] sm:$0xff] %v6684_v42 }
  0xd9   : > { %377 = vrot.lane.b32.xlu1 %v6578_v17, %s9282_s16  ;;  %374 = vrot.lane.b32.xlu0 %v6578_v17, %s9286_s12  ;;  %s9778_s16 = smov 102   ;;  %9784 = vst [vmem:[#allocation30_spill] sm:$0xff] %v6681_v41  ;;  %s9786_s12 = smov 98  }
  0xda   : > { %v1108_v21 = vrot.slane %v1100_v15, %v6569_v8  ;;  %v1115_v22 = vrot.slane %v1101_v16, %v6569_v8 }
  0xdb   : > { %v209_v24 = vpop.permute.xlu1 %208  ;;  %v206_v25 = vpop.permute.xlu0 %205 }
  0xdc   : > { %v1148_v26 = vcombine.low %v1092_v19, %v1108_v21  ;;  %v1149_v27 = vcombine.high %v1092_v19, %v1108_v21  ;;  %v1164_v28 = vcombine.low %v1099_v20, %v1115_v22  ;;  %v1165_v29 = vcombine.high %v1099_v20, %v1115_v22 }
  0xdd   : > { %v1188_v30 = vcombine.low %v203_v13, %v209_v24  ;;  %v1189_v31 = vcombine.high %v203_v13, %v209_v24  ;;  %383 = vrot.lane.b32.xlu1 %v6578_v17, %s9778_s16  ;;  %380 = vrot.lane.b32.xlu0 %v6578_v17, %s9779_s13 }
  0xde   : > { %v6666_v33 = vrot.slane %v1148_v26, %v6592_v34  ;;  %v6669_v35 = vrot.slane %v1149_v27, %v6592_v34  ;;  %v6672_v36 = vrot.slane %v1164_v28, %v6592_v34  ;;  %v6675_v37 = vrot.slane %v1165_v29, %v6592_v34 }
  0xdf   : > { %v215_v38 = vpop.permute.xlu1 %214  ;;  %v212_v39 = vpop.permute.xlu0 %211  ;;  %v1196_v43 = vrot.slane %v1188_v30, %v6569_v8  ;;  %v1203_v47 = vrot.slane %v1189_v31, %v6569_v8 }
  0xe0   : > { %9780 = vst [vmem:[#allocation26_spill] sm:$0xff] %v6669_v35  ;;  %9781 = vst [vmem:[#allocation27_spill] sm:$0xff] %v6672_v36  ;;  %v1204_v44 = vcombine.low %v206_v25, %v212_v39  ;;  %v1205_v45 = vcombine.high %v206_v25, %v212_v39 }
  0xe1   : > { %9782 = vst [vmem:[#allocation28_spill] sm:$0xff] %v6675_v37  ;;  %389 = vrot.lane.b32.xlu1 %v6578_v17, %s9786_s12  ;;  %386 = vrot.lane.b32.xlu0 %v6578_v17, %s9787_s5 }
  0xe2   : > { %v1212_v58 = vrot.slane %v1204_v44, %v6569_v8  ;;  %v1219_v59 = vrot.slane %v1205_v45, %v6569_v8 }
  0xe3   : > { %v221_v1 = vpop.permute.xlu1 %220  ;;  %v218_v2 = vpop.permute.xlu0 %217 }
  0xe4   : > { %v1253_v6 = vcombine.high %v1196_v43, %v1212_v58  ;;  %v1269_v9 = vcombine.high %v1203_v47, %v1219_v59  ;;  %v1220_v10 = vcombine.low %v215_v38, %v221_v1  ;;  %v1221_v11 = vcombine.high %v215_v38, %v221_v1 }
  0xe5   : > { %395 = vrot.lane.b32.xlu1 %v6578_v17, %s9788_s4  ;;  %392 = vrot.lane.b32.xlu0 %v6578_v17, %s9789_s3  ;;  %v1252_v16 = vcombine.low %v1196_v43, %v1212_v58  ;;  %v1268_v22 = vcombine.low %v1203_v47, %v1219_v59 }
  0xe6   : > { %v1228_v18 = vrot.slane %v1220_v10, %v6569_v8  ;;  %v1235_v19 = vrot.slane %v1221_v11, %v6569_v8  ;;  %v6738_v58 = vrot.slane %v1253_v6, %v6592_v34  ;;  %v6744_v1 = vrot.slane %v1269_v9, %v6592_v34 }
  0xe7   : > { %v227_v12 = vpop.permute.xlu1 %226  ;;  %v224_v13 = vpop.permute.xlu0 %223  ;;  %v6723_v31 = vrot.slane %v1252_v16, %v6592_v34  ;;  %v6741_v59 = vrot.slane %v1268_v22, %v6592_v34 }
  0xe8   : > { %v1236_v14 = vcombine.low %v218_v2, %v224_v13  ;;  %v1237_v15 = vcombine.high %v218_v2, %v224_v13  ;;  %9797 = vst [vmem:[#allocation35_spill] sm:$0xff] %v6738_v58  ;;  %9799 = vst [vmem:[#allocation37_spill] sm:$0xff] %v6744_v1 }
  0xe9   : > { %401 = vrot.lane.b32.xlu1 %v6578_v17, %s9790_s18  ;;  %398 = vrot.lane.b32.xlu0 %v6578_v17, %s9791_s27  ;;  %9798 = vst [vmem:[#allocation36_spill] sm:$0xff] %v6741_v59 }
  0xea   : > { %v1244_v20 = vrot.slane %v1236_v14, %v6569_v8  ;;  %v1251_v21 = vrot.slane %v1237_v15, %v6569_v8 }
  0xeb   : > { %v233_v23 = vpop.permute.xlu1 %232  ;;  %v230_v24 = vpop.permute.xlu0 %229 }
  0xec   : > { %v1284_v25 = vcombine.low %v1228_v18, %v1244_v20  ;;  %v1285_v26 = vcombine.high %v1228_v18, %v1244_v20  ;;  %v1300_v27 = vcombine.low %v1235_v19, %v1251_v21  ;;  %v1301_v28 = vcombine.high %v1235_v19, %v1251_v21 }
  0xed   : > { %v1324_v29 = vcombine.low %v227_v12, %v233_v23  ;;  %v1325_v30 = vcombine.high %v227_v12, %v233_v23  ;;  %407 = vrot.lane.b32.xlu1 %v6578_v17, %s9792_s30  ;;  %404 = vrot.lane.b32.xlu0 %v6578_v17, %s9793_s29 }
  0xee   : > { %v6726_v38 = vrot.slane %v1284_v25, %v6592_v34  ;;  %v6729_v39 = vrot.slane %v1285_v26, %v6592_v34  ;;  %v6732_v43 = vrot.slane %v1300_v27, %v6592_v34  ;;  %v6735_v44 = vrot.slane %v1301_v28, %v6592_v34 }
  0xef   : > { %v239_v45 = vpop.permute.xlu1 %238  ;;  %v236_v47 = vpop.permute.xlu0 %235  ;;  %v1332_v2 = vrot.slane %v1324_v29, %v6569_v8  ;;  %v1339_v13 = vrot.slane %v1325_v30, %v6569_v8 }
  0xf0   : > { %9794 = vst [vmem:[#allocation32_spill] sm:$0xff] %v6729_v39  ;;  %9795 = vst [vmem:[#allocation33_spill] sm:$0xff] %v6732_v43  ;;  %v1340_v10 = vcombine.low %v230_v24, %v236_v47  ;;  %v1341_v11 = vcombine.high %v230_v24, %v236_v47 }
  0xf1   : > { %9796 = vst [vmem:[#allocation34_spill] sm:$0xff] %v6735_v44  ;;  %413 = vrot.lane.b32.xlu1 %v6578_v17, %s9800_s2  ;;  %410 = vrot.lane.b32.xlu0 %v6578_v17, %s9801_s23 }
  0xf2   : > { %v1348_v14 = vrot.slane %v1340_v10, %v6569_v8  ;;  %v1355_v15 = vrot.slane %v1341_v11, %v6569_v8 }
  0xf3   : > { %v245_v19 = vpop.permute.xlu1 %244  ;;  %v242_v20 = vpop.permute.xlu0 %241 }
  0xf4   : > { %v1389_v22 = vcombine.high %v1332_v2, %v1348_v14  ;;  %v1405_v23 = vcombine.high %v1339_v13, %v1355_v15  ;;  %v1356_v24 = vcombine.low %v239_v45, %v245_v19  ;;  %v1357_v25 = vcombine.high %v239_v45, %v245_v19 }
  0xf5   : > { %419 = vrot.lane.b32.xlu1 %v6578_v17, %s9802_s17  ;;  %416 = vrot.lane.b32.xlu0 %v6578_v17, %s9803_s22  ;;  %v1388_v30 = vcombine.low %v1332_v2, %v1348_v14  ;;  %v1404_v45 = vcombine.low %v1339_v13, %v1355_v15 }
  0xf6   : > { %v1364_v47 = vrot.slane %v1356_v24, %v6569_v8  ;;  %v1371_v10 = vrot.slane %v1357_v25, %v6569_v8 }
  0xf7   : > { %v251_v26 = vpop.permute.xlu1 %250  ;;  %v248_v27 = vpop.permute.xlu0 %247  ;;  %v6783_v24 = vrot.slane %v1388_v30, %v6592_v34  ;;  %v6801_v30 = vrot.slane %v1404_v45, %v6592_v34 }
  0xf8   : > { %v1372_v28 = vcombine.low %v242_v20, %v248_v27  ;;  %v1373_v29 = vcombine.high %v242_v20, %v248_v27 }
  0xf9   : > { %425 = vrot.lane.b32.xlu1 %v6578_v17, %s9804_s25  ;;  %422 = vrot.lane.b32.xlu0 %v6578_v17, %s9805_s15  ;;  %9812 = vst [vmem:[#allocation42_spill] sm:$0xff] %v6801_v30 }
  0xfa   : > { %v1380_v11 = vrot.slane %v1372_v28, %v6569_v8  ;;  %v1387_v21 = vrot.slane %v1373_v29, %v6569_v8  ;;  %v6798_v29 = vrot.slane %v1389_v22, %v6592_v34 }
  0xfb   : > { %v257_v19 = vpop.permute.xlu1 %256  ;;  %v254_v5 = vpop.permute.xlu0 %253 }
  0xfc   : > { %v1420_v7 = vcombine.low %v1364_v47, %v1380_v11  ;;  %v1421_v20 = vcombine.high %v1364_v47, %v1380_v11  ;;  %v1436_v2 = vcombine.low %v1371_v10, %v1387_v21  ;;  %v1437_v14 = vcombine.high %v1371_v10, %v1387_v21  ;;  %9811 = vst [vmem:[#allocation41_spill] sm:$0xff] %v6798_v29 }
  0xfd   : > { %v1460_v27 = vcombine.low %v251_v26, %v257_v19  ;;  %v1461_v18 = vcombine.high %v251_v26, %v257_v19  ;;  %431 = vrot.lane.b32.xlu1 %v6578_v17, %s9806_s26  ;;  %428 = vrot.lane.b32.xlu0 %v6578_v17, %s9807_s0 }
  0xfe   : > { %v6786_v25 = vrot.slane %v1420_v7, %v6592_v34  ;;  %v6789_v13 = vrot.slane %v1421_v20, %v6592_v34  ;;  %v6792_v15 = vrot.slane %v1436_v2, %v6592_v34  ;;  %v6795_v21 = vrot.slane %v1437_v14, %v6592_v34 }
  0xff   : > { %v263_v26 = vpop.permute.xlu1 %262  ;;  %v260_v28 = vpop.permute.xlu0 %259  ;;  %v6804_v7 = vrot.slane %v1405_v23, %v6592_v34  ;;  %v1468_v47 = vrot.slane %v1460_v27, %v6569_v8  ;;  %v1475_v20 = vrot.slane %v1461_v18, %v6569_v8 }
 0x100   : > { %9808 = vst [vmem:[#allocation38_spill] sm:$0xff] %v6789_v13  ;;  %9809 = vst [vmem:[#allocation39_spill] sm:$0xff] %v6792_v15  ;;  %v1476_v10 = vcombine.low %v254_v5, %v260_v28  ;;  %v1477_v11 = vcombine.high %v254_v5, %v260_v28 }
 0x101   : > { %9810 = vst [vmem:[#allocation40_spill] sm:$0xff] %v6795_v21  ;;  %9813 = vst [vmem:[#allocation43_spill] sm:$0xff] %v6804_v7  ;;  %437 = vrot.lane.b32.xlu1 %v6578_v17, %s9814_s14  ;;  %434 = vrot.lane.b32.xlu0 %v6578_v17, %s9815_s10 }
 0x102   : > { %v1484_v45 = vrot.slane %v1476_v10, %v6569_v8  ;;  %v1491_v5 = vrot.slane %v1477_v11, %v6569_v8 }
 0x103   : > { %v269_v14 = vpop.permute.xlu1 %268  ;;  %v266_v27 = vpop.permute.xlu0 %265 }
 0x104   : > { %v1525_v62 = vcombine.high %v1468_v47, %v1484_v45  ;;  %v1541_v4 = vcombine.high %v1475_v20, %v1491_v5  ;;  %v1492_v10 = vcombine.low %v263_v26, %v269_v14  ;;  %v1493_v11 = vcombine.high %v263_v26, %v269_v14 }
 0x105   : > { %443 = vrot.lane.b32.xlu1 %v6578_v17, %s9816_s20  ;;  %440 = vrot.lane.b32.xlu0 %v6578_v17, %s9817_s8  ;;  %v1524_v18 = vcombine.low %v1468_v47, %v1484_v45  ;;  %v1540_v26 = vcombine.low %v1475_v20, %v1491_v5 }
 0x106   : > { %v1500_v28 = vrot.slane %v1492_v10, %v6569_v8  ;;  %v1507_v23 = vrot.slane %v1493_v11, %v6569_v8 }
 0x107   : > { %v275_v16 = vpop.permute.xlu1 %274  ;;  %v272_v2 = vpop.permute.xlu0 %271  ;;  %v6843_v10 = vrot.slane %v1524_v18, %v6592_v34  ;;  %v6861_v5 = vrot.slane %v1540_v26, %v6592_v34 }
 0x108   : > { %v1508_v60 = vcombine.low %v266_v27, %v272_v2  ;;  %v1509_v3 = vcombine.high %v266_v27, %v272_v2 }
 0x109   : > { %449 = vrot.lane.b32.xlu1 %v6578_v17, %s9818_s7  ;;  %446 = vrot.lane.b32.xlu0 %v6578_v17, %s9819_s11  ;;  %9826 = vst [vmem:[#allocation48_spill] sm:$0xff] %v6861_v5 }
 0x10a   : > { %v1516_v9 = vrot.slane %v1508_v60, %v6569_v8  ;;  %v1523_v54 = vrot.slane %v1509_v3, %v6569_v8 }
 0x10b   : > { %v281_v14 = vpop.permute.xlu1 %280  ;;  %v278_v0 = vpop.permute.xlu0 %277 }
 0x10c   : > { %v1556_v22 = vcombine.low %v1500_v28, %v1516_v9  ;;  %v1557_v2 = vcombine.high %v1500_v28, %v1516_v9  ;;  %v1572_v47 = vcombine.low %v1507_v23, %v1523_v54  ;;  %v1573_v45 = vcombine.high %v1507_v23, %v1523_v54 }
 0x10d   : > { %v1596_v27 = vcombine.low %v275_v16, %v281_v14  ;;  %v1597_v6 = vcombine.high %v275_v16, %v281_v14  ;;  %455 = vrot.lane.b32.xlu1 %v6578_v17, %s9820_s21  ;;  %452 = vrot.lane.b32.xlu0 %v6578_v17, %s9821_s6  ;;  %v6858_v23 = vrot.slane %v1525_v62, %v6592_v34  ;;  %s9833_s21 = smov 44  }
 0x10e   : > { %v6846_v3 = vrot.slane %v1556_v22, %v6592_v34  ;;  %v6849_v60 = vrot.slane %v1557_v2, %v6592_v34  ;;  %v6852_v9 = vrot.slane %v1572_v47, %v6592_v34  ;;  %v6855_v54 = vrot.slane %v1573_v45, %v6592_v34 }
 0x10f   : > { %v287_v16 = vpop.permute.xlu1 %286  ;;  %v284_v20 = vpop.permute.xlu0 %283  ;;  %9825 = vst [vmem:[#allocation47_spill] sm:$0xff] %v6858_v23  ;;  %v6864_v22 = vrot.slane %v1541_v4, %v6592_v34  ;;  %v1604_v18 = vrot.slane %v1596_v27, %v6569_v8  ;;  %v1611_v2 = vrot.slane %v1597_v6, %v6569_v8 }
 0x110   : > { %9822 = vst [vmem:[#allocation44_spill] sm:$0xff] %v6849_v60  ;;  %9823 = vst [vmem:[#allocation45_spill] sm:$0xff] %v6852_v9  ;;  %v1612_v28 = vcombine.low %v278_v0, %v284_v20  ;;  %v1613_v11 = vcombine.high %v278_v0, %v284_v20 }
 0x111   : > { %9824 = vst [vmem:[#allocation46_spill] sm:$0xff] %v6855_v54  ;;  %9827 = vst [vmem:[#allocation49_spill] sm:$0xff] %v6864_v22  ;;  %461 = vrot.lane.b32.xlu1 %v6578_v17, %s9828_s1  ;;  %458 = vrot.lane.b32.xlu0 %v6578_v17, %s9829_s19  ;;  %s9832_s1 = smov 42  }
 0x112   : > { %v1620_v26 = vrot.slane %v1612_v28, %v6569_v8  ;;  %v1627_v0 = vrot.slane %v1613_v11, %v6569_v8 }
 0x113   : > { %v293_v45 = vpop.permute.xlu1 %292  ;;  %v290_v27 = vpop.permute.xlu0 %289 }
 0x114   : > { %v1661_v53 = vcombine.high %v1604_v18, %v1620_v26  ;;  %v1677_v62 = vcombine.high %v1611_v2, %v1627_v0  ;;  %v1628_v28 = vcombine.low %v287_v16, %v293_v45  ;;  %v1629_v11 = vcombine.high %v287_v16, %v293_v45 }
 0x115   : > { %467 = vrot.lane.b32.xlu1 %v6578_v17, %s9830_s9  ;;  %464 = vrot.lane.b32.xlu0 %v6578_v17, %s9831_s24  ;;  %v1660_v6 = vcombine.low %v1604_v18, %v1620_v26  ;;  %v1676_v16 = vcombine.low %v1611_v2, %v1627_v0  ;;  %s9835_s9 = smov 40   ;;  %s9847_s24 = smov 28  }
 0x116   : > { %v1636_v20 = vrot.slane %v1628_v28, %v6569_v8  ;;  %v1643_v19 = vrot.slane %v1629_v11, %v6569_v8 }
 0x117   : > { %v299_v4 = vpop.permute.xlu1 %298  ;;  %v296_v47 = vpop.permute.xlu0 %295  ;;  %v6903_v28 = vrot.slane %v1660_v6, %v6592_v34  ;;  %v6921_v0 = vrot.slane %v1676_v16, %v6592_v34 }
 0x118   : > { %v1644_v63 = vcombine.low %v290_v27, %v296_v47  ;;  %v1645_v14 = vcombine.high %v290_v27, %v296_v47 }
 0x119   : > { %473 = vrot.lane.b32.xlu1 %v6578_v17, %s9832_s1  ;;  %470 = vrot.lane.b32.xlu0 %v6578_v17, %s9833_s21  ;;  %s9834_s1 = smov 38   ;;  %9840 = vst [vmem:[#allocation54_spill] sm:$0xff] %v6921_v0  ;;  %s9846_s21 = smov 26  }
 0x11a   : > { %v1652_v12 = vrot.slane %v1644_v63, %v6569_v8  ;;  %v1659_v46 = vrot.slane %v1645_v14, %v6569_v8 }
 0x11b   : > { %v305_v45 = vpop.permute.xlu1 %304  ;;  %v302_v61 = vpop.permute.xlu0 %301 }
 0x11c   : > { %v1692_v54 = vcombine.low %v1636_v20, %v1652_v12  ;;  %v1693_v47 = vcombine.high %v1636_v20, %v1652_v12  ;;  %v1708_v18 = vcombine.low %v1643_v19, %v1659_v46  ;;  %v1709_v26 = vcombine.high %v1643_v19, %v1659_v46 }
 0x11d   : > { %v1732_v27 = vcombine.low %v299_v4, %v305_v45  ;;  %v1733_v22 = vcombine.high %v299_v4, %v305_v45  ;;  %479 = vrot.lane.b32.xlu1 %v6578_v17, %s9834_s1  ;;  %476 = vrot.lane.b32.xlu0 %v6578_v17, %s9835_s9  ;;  %v6918_v4 = vrot.slane %v1661_v53, %v6592_v34  ;;  %s9842_s1 = smov 34   ;;  %s9843_s9 = smov 36  }
 0x11e   : > { %v6906_v63 = vrot.slane %v1692_v54, %v6592_v34  ;;  %v6909_v14 = vrot.slane %v1693_v47, %v6592_v34  ;;  %v6912_v12 = vrot.slane %v1708_v18, %v6592_v34  ;;  %v6915_v46 = vrot.slane %v1709_v26, %v6592_v34 }
 0x11f   : > { %v311_v19 = vpop.permute.xlu1 %310  ;;  %v308_v2 = vpop.permute.xlu0 %307  ;;  %9839 = vst [vmem:[#allocation53_spill] sm:$0xff] %v6918_v4  ;;  %v6924_v54 = vrot.slane %v1677_v62, %v6592_v34  ;;  %v1740_v6 = vrot.slane %v1732_v27, %v6569_v8  ;;  %v1747_v47 = vrot.slane %v1733_v22, %v6569_v8 }
 0x120   : > { %9836 = vst [vmem:[#allocation50_spill] sm:$0xff] %v6909_v14  ;;  %9837 = vst [vmem:[#allocation51_spill] sm:$0xff] %v6912_v12  ;;  %v1748_v20 = vcombine.low %v302_v61, %v308_v2  ;;  %v1749_v11 = vcombine.high %v302_v61, %v308_v2 }
 0x121   : > { %9838 = vst [vmem:[#allocation52_spill] sm:$0xff] %v6915_v46  ;;  %9841 = vst [vmem:[#allocation55_spill] sm:$0xff] %v6924_v54  ;;  %485 = vrot.lane.b32.xlu1 %v6578_v17, %s9842_s1  ;;  %482 = vrot.lane.b32.xlu0 %v6578_v17, %s9843_s9  ;;  %s9844_s1 = smov 30   ;;  %s9845_s9 = smov 32  }
 0x122   : > { %v1756_v16 = vrot.slane %v1748_v20, %v6569_v8  ;;  %v1763_v61 = vrot.slane %v1749_v11, %v6569_v8 }
 0x123   : > { %v317_v26 = vpop.permute.xlu1 %316  ;;  %v314_v27 = vpop.permute.xlu0 %313 }
 0x124   : > { %v1797_v45 = vcombine.high %v1740_v6, %v1756_v16  ;;  %v1813_v53 = vcombine.high %v1747_v47, %v1763_v61  ;;  %v1764_v20 = vcombine.low %v311_v19, %v317_v26  ;;  %v1765_v11 = vcombine.high %v311_v19, %v317_v26 }
 0x125   : > { %491 = vrot.lane.b32.xlu1 %v6578_v17, %s9844_s1  ;;  %488 = vrot.lane.b32.xlu0 %v6578_v17, %s9845_s9  ;;  %v1796_v22 = vcombine.low %v1740_v6, %v1756_v16  ;;  %v1812_v19 = vcombine.low %v1747_v47, %v1763_v61  ;;  %s9849_s1 = smov 24   ;;  %s9861_s9 = smov 12  }
 0x126   : > { %v1772_v2 = vrot.slane %v1764_v20, %v6569_v8  ;;  %v1779_v46 = vrot.slane %v1765_v11, %v6569_v8 }
 0x127   : > { %v323_v62 = vpop.permute.xlu1 %322  ;;  %v320_v18 = vpop.permute.xlu0 %319  ;;  %v6963_v20 = vrot.slane %v1796_v22, %v6592_v34  ;;  %v6981_v61 = vrot.slane %v1812_v19, %v6592_v34 }
 0x128   : > { %v1780_v21 = vcombine.low %v314_v27, %v320_v18  ;;  %v1781_v7 = vcombine.high %v314_v27, %v320_v18 }
 0x129   : > { %497 = vrot.lane.b32.xlu1 %v6578_v17, %s9846_s21  ;;  %494 = vrot.lane.b32.xlu0 %v6578_v17, %s9847_s24  ;;  %s9848_s21 = smov 22   ;;  %9854 = vst [vmem:[#allocation60_spill] sm:$0xff] %v6981_v61  ;;  %s9860_s24 = smov 10  }
 0x12a   : > { %v1788_v54 = vrot.slane %v1780_v21, %v6569_v8  ;;  %v1795_v44 = vrot.slane %v1781_v7, %v6569_v8 }
 0x12b   : > { %v329_v26 = vpop.permute.xlu1 %328  ;;  %v326_v1 = vpop.permute.xlu0 %325 }
 0x12c   : > { %v1828_v37 = vcombine.low %v1772_v2, %v1788_v54  ;;  %v1829_v18 = vcombine.high %v1772_v2, %v1788_v54  ;;  %v1844_v6 = vcombine.low %v1779_v46, %v1795_v44  ;;  %v1845_v16 = vcombine.high %v1779_v46, %v1795_v44 }
 0x12d   : > { %v1868_v27 = vcombine.low %v323_v62, %v329_v26  ;;  %v1869_v42 = vcombine.high %v323_v62, %v329_v26  ;;  %503 = vrot.lane.b32.xlu1 %v6578_v17, %s9848_s21  ;;  %500 = vrot.lane.b32.xlu0 %v6578_v17, %s9849_s1  ;;  %v6978_v62 = vrot.slane %v1797_v45, %v6592_v34  ;;  %s9856_s21 = smov 18   ;;  %s9857_s1 = smov 20  }
 0x12e   : > { %v6966_v21 = vrot.slane %v1828_v37, %v6592_v34  ;;  %v6969_v7 = vrot.slane %v1829_v18, %v6592_v34  ;;  %v6972_v54 = vrot.slane %v1844_v6, %v6592_v34  ;;  %v6975_v44 = vrot.slane %v1845_v16, %v6592_v34 }
 0x12f   : > { %v335_v46 = vpop.permute.xlu1 %334  ;;  %v332_v47 = vpop.permute.xlu0 %331  ;;  %9853 = vst [vmem:[#allocation59_spill] sm:$0xff] %v6978_v62  ;;  %v6984_v37 = vrot.slane %v1813_v53, %v6592_v34  ;;  %v1876_v22 = vrot.slane %v1868_v27, %v6569_v8  ;;  %v1883_v18 = vrot.slane %v1869_v42, %v6569_v8 }
 0x130   : > { %9850 = vst [vmem:[#allocation56_spill] sm:$0xff] %v6969_v7  ;;  %9851 = vst [vmem:[#allocation57_spill] sm:$0xff] %v6972_v54  ;;  %v1884_v2 = vcombine.low %v326_v1, %v332_v47  ;;  %v1885_v11 = vcombine.high %v326_v1, %v332_v47 }
 0x131   : > { %9852 = vst [vmem:[#allocation58_spill] sm:$0xff] %v6975_v44  ;;  %9855 = vst [vmem:[#allocation61_spill] sm:$0xff] %v6984_v37  ;;  %509 = vrot.lane.b32.xlu1 %v6578_v17, %s9856_s21  ;;  %506 = vrot.lane.b32.xlu0 %v6578_v17, %s9857_s1  ;;  %s9858_s21 = smov 14   ;;  %s9859_s1 = smov 16  }
 0x132   : > { %v1892_v19 = vrot.slane %v1884_v2, %v6569_v8  ;;  %v1899_v1 = vrot.slane %v1885_v11, %v6569_v8 }
 0x133   : > { %v341_v16 = vpop.permute.xlu1 %340  ;;  %v338_v27 = vpop.permute.xlu0 %337 }
 0x134   : > { %v1933_v26 = vcombine.high %v1876_v22, %v1892_v19  ;;  %v1949_v45 = vcombine.high %v1883_v18, %v1899_v1  ;;  %v1900_v2 = vcombine.low %v335_v46, %v341_v16  ;;  %v1901_v11 = vcombine.high %v335_v46, %v341_v16 }
 0x135   : > { %515 = vrot.lane.b32.xlu1 %v6578_v17, %s9858_s21  ;;  %512 = vrot.lane.b32.xlu0 %v6578_v17, %s9859_s1  ;;  %v1932_v53 = vcombine.low %v1876_v22, %v1892_v19  ;;  %v1948_v6 = vcombine.low %v1883_v18, %v1899_v1  ;;  %s9865_s21 = smov 8  }
 0x136   : > { %v1908_v47 = vrot.slane %v1900_v2, %v6569_v8  ;;  %v1915_v44 = vrot.slane %v1901_v11, %v6569_v8 }
 0x137   : > { %v348_v52 = vpop.permute.xlu1 %347  ;;  %v344_v57 = vpop.permute.xlu0 %343  ;;  %v7019_v19 = vrot.slane %v1932_v53, %v6592_v34  ;;  %v7025_v1 = vrot.slane %v1948_v6, %v6592_v34 }
 0x138   : > { %v1916_v42 = vcombine.low %v338_v27, %v344_v57  ;;  %v1917_v61 = vcombine.high %v338_v27, %v344_v57  ;;  %v7022_v57 = vrot.slane %v1933_v26, %v6592_v34 }
 0x139   : > { %521 = vrot.lane.b32.xlu1 %v6578_v17, %s9860_s24  ;;  %518 = vrot.lane.b32.xlu0 %v6578_v17, %s9861_s9  ;;  %9863 = vst [vmem:[#allocation63_spill] sm:$0xff] %v7025_v1  ;;  %s9864_s24 = smov 6  }
 0x13a   : > { %v1924_v37 = vrot.slane %v1916_v42, %v6569_v8  ;;  %v1931_v46 = vrot.slane %v1917_v61, %v6569_v8  ;;  %9862 = vst [vmem:[#allocation62_spill] sm:$0xff] %v7022_v57 }
 0x13b   : > { %v354_v22 = vpop.permute.xlu1 %353  ;;  %v351_v18 = vpop.permute.xlu0 %350 }
 0x13c   : > { %v1964_v16 = vcombine.low %v1908_v47, %v1924_v37  ;;  %v1965_v27 = vcombine.high %v1908_v47, %v1924_v37  ;;  %v1980_v2 = vcombine.low %v1915_v44, %v1931_v46  ;;  %v1981_v54 = vcombine.high %v1915_v44, %v1931_v46 }
 0x13d   : > { %v2020_v11 = vcombine.low %v348_v52, %v354_v22  ;;  %v2021_v0 = vcombine.high %v348_v52, %v354_v22  ;;  %v2004_v42 = vcombine.low %v6578_v17, %v351_v18  ;;  %v2005_v61 = vcombine.high %v6578_v17, %v351_v18  ;;  %527 = vrot.lane.b32.xlu1 %v6578_v17, %s9864_s24  ;;  %s9870_s24 = smov 2  }
 0x13e   : > { %524 = vrot.lane.b32.xlu0 %v6578_v17, %s9865_s21  ;;  %v7034_v26 = vrot.slane %v1964_v16, %v6592_v34  ;;  %v7037_v53 = vrot.slane %v1965_v27, %v6592_v34  ;;  %v7040_v44 = vrot.slane %v1980_v2, %v6592_v34  ;;  %v7043_v52 = vrot.slane %v1981_v54, %v6592_v34  ;;  %s9871_s21 = smov 4  }
 0x13f   : > { %v2028_v37 = vrot.slane %v2020_v11, %v6569_v8  ;;  %v2035_v6 = vrot.slane %v2021_v0, %v6569_v8  ;;  %v2012_v47 = vrot.slane %v2004_v42, %v6569_v8  ;;  %v2019_v46 = vrot.slane %v2005_v61, %v6569_v8  ;;  %v360_v22 = vpop.permute.xlu1 %359  ;;  %v357_v18 = vpop.permute.xlu0 %356  ;;  %v7061_v42 = vld [vmem:[%s6440_s28 + $0x10] sm:$0xff]  ;;  %s9874_s28 = smov 120  }
 0x140   : > { %9866 = vst [vmem:[#allocation64_spill] sm:$0xff] %v7037_v53  ;;  %9867 = vst [vmem:[#allocation65_spill] sm:$0xff] %v7040_v44  ;;  %v7056_v2 = vrot.slane %v1949_v45, %v6592_v34 }
 0x141   : > { %9868 = vst [vmem:[#allocation66_spill] sm:$0xff] %v7043_v52  ;;  %v2069_v11 = vcombine.high %v2012_v47, %v2028_v37  ;;  %v2085_v0 = vcombine.high %v2019_v46, %v2035_v6  ;;  %533 = vrot.lane.b32.xlu1 %v6578_v17, %s9870_s24  ;;  %v2068_v15 = vcombine.low %v2012_v47, %v2028_v37  ;;  %s9872_s24 = smov 124  }
 0x142   : > { %9869 = vst [vmem:[#allocation67_spill] sm:$0xff] %v7056_v2  ;;  %530 = vrot.lane.b32.xlu0 %v6578_v17, %s9871_s21  ;;  %s9873_s21 = smov 126   ;;  %v2084_v45 = vcombine.low %v2019_v46, %v2035_v6 }
 0x143   : > { %v366_v54 = vpop.permute.xlu1 %365  ;;  %v363_v16 = vpop.permute.xlu0 %362 }
 0x144   : > { %v2052_v12 = vcombine.low %v360_v22, %v366_v54  ;;  %v2053_v5 = vcombine.high %v360_v22, %v366_v54  ;;  %v2036_v9 = vcombine.low %v357_v18, %v363_v16  ;;  %v2037_v30 = vcombine.high %v357_v18, %v363_v16 }
 0x145   : > { %540 = vrot.lane.b32.xlu1 %v7061_v42, %s9872_s24  ;;  %s9875_s24 = smov 122   ;;  %v7096_v46 = vrot.slane %v2084_v45, %v6592_v34 }
 0x146   : > { %v2060_v17 = vrot.slane %v2052_v12, %v6569_v8  ;;  %v2067_v61 = vrot.slane %v2053_v5, %v6569_v8  ;;  %v2044_v1 = vrot.slane %v2036_v9, %v6569_v8  ;;  %v2051_v27 = vrot.slane %v2037_v30, %v6569_v8  ;;  %537 = vrot.lane.b32.xlu0 %v7061_v42, %s9873_s21  ;;  %s9885_s21 = smov 114  }
 0x147   : > { %v372_v52 = vpop.permute.xlu1 %371  ;;  %v369_v22 = vpop.permute.xlu0 %368  ;;  %v7084_v9 = vrot.slane %v2068_v15, %v6592_v34  ;;  %9878 = vst [vmem:[#allocation70_spill] sm:$0xff] %v7096_v46 }
 0x148   : > { %v2100_v54 = vcombine.low %v2044_v1, %v2060_v17  ;;  %v2101_v18 = vcombine.high %v2044_v1, %v2060_v17  ;;  %v2116_v37 = vcombine.low %v2051_v27, %v2067_v61  ;;  %v2117_v47 = vcombine.high %v2051_v27, %v2067_v61 }
 0x149   : > { %546 = vrot.lane.b32.xlu1 %v7061_v42, %s9874_s28  ;;  %v7093_v1 = vrot.slane %v2069_v11, %v6592_v34  ;;  %s9881_s28 = smov 116  }
 0x14a   : > { %543 = vrot.lane.b32.xlu0 %v7061_v42, %s9875_s24  ;;  %v7087_v30 = vrot.slane %v2100_v54, %v6592_v34  ;;  %v7090_v5 = vrot.slane %v2101_v18, %v6592_v34  ;;  %v7099_v16 = vrot.slane %v2116_v37, %v6592_v34  ;;  %v7102_v15 = vrot.slane %v2117_v47, %v6592_v34  ;;  %s9884_s24 = smov 112  }
 0x14b   : > { %v378_v12 = vpop.permute.xlu1 %377  ;;  %v375_v6 = vpop.permute.xlu0 %374  ;;  %9877 = vst [vmem:[#allocation69_spill] sm:$0xff] %v7093_v1  ;;  %v7113_v37 = vrot.slane %v2085_v0, %v6592_v34 }
 0x14c   : > { %9876 = vst [vmem:[#allocation68_spill] sm:$0xff] %v7090_v5  ;;  %9879 = vst [vmem:[#allocation71_spill] sm:$0xff] %v7099_v16  ;;  %v2156_v27 = vcombine.low %v372_v52, %v378_v12  ;;  %v2157_v61 = vcombine.high %v372_v52, %v378_v12  ;;  %v2140_v17 = vcombine.low %v369_v22, %v375_v6 }
 0x14d   : > { %9880 = vst [vmem:[#allocation72_spill] sm:$0xff] %v7102_v15  ;;  %v2141_v54 = vcombine.high %v369_v22, %v375_v6  ;;  %552 = vrot.lane.b32.xlu1 %v7061_v42, %s9881_s28  ;;  %9882 = vst [vmem:[#allocation73_spill] sm:$0xff] %v7113_v37  ;;  %s9883_s28 = smov 118  }
 0x14e   : > { %v2164_v47 = vrot.slane %v2156_v27, %v6569_v8  ;;  %v2171_v52 = vrot.slane %v2157_v61, %v6569_v8  ;;  %v2148_v22 = vrot.slane %v2140_v17, %v6569_v8  ;;  %549 = vrot.lane.b32.xlu0 %v7061_v42, %s9883_s28  ;;  %s9886_s28 = smov 108  }
 0x14f   : > { %v2155_v12 = vrot.slane %v2141_v54, %v6569_v8  ;;  %v384_v6 = vpop.permute.xlu1 %383  ;;  %v381_v11 = vpop.permute.xlu0 %380 }
 0x150   : > { %v2205_v18 = vcombine.high %v2148_v22, %v2164_v47  ;;  %v2204_v46 = vcombine.low %v2148_v22, %v2164_v47 }
 0x151   : > { %v2221_v61 = vcombine.high %v2155_v12, %v2171_v52  ;;  %558 = vrot.lane.b32.xlu1 %v7061_v42, %s9884_s24  ;;  %s9887_s24 = smov 110   ;;  %v2220_v16 = vcombine.low %v2155_v12, %v2171_v52 }
 0x152   : > { %555 = vrot.lane.b32.xlu0 %v7061_v42, %s9885_s21 }
 0x153   : > { %v390_v17 = vpop.permute.xlu1 %389  ;;  %v387_v54 = vpop.permute.xlu0 %386 }
 0x154   : > { %v2188_v2 = vcombine.low %v384_v6, %v390_v17  ;;  %v2189_v44 = vcombine.high %v384_v6, %v390_v17  ;;  %v2172_v59 = vcombine.low %v381_v11, %v387_v54  ;;  %v2173_v45 = vcombine.high %v381_v11, %v387_v54 }
 0x155   : > { %564 = vrot.lane.b32.xlu1 %v7061_v42, %s9886_s28  ;;  %s9888_s28 = smov 106  }
 0x156   : > { %v2196_v27 = vrot.slane %v2188_v2, %v6569_v8  ;;  %v2203_v0 = vrot.slane %v2189_v44, %v6569_v8  ;;  %v2180_v15 = vrot.slane %v2172_v59, %v6569_v8  ;;  %v2187_v37 = vrot.slane %v2173_v45, %v6569_v8  ;;  %561 = vrot.lane.b32.xlu0 %v7061_v42, %s9887_s24 }
 0x157   : > { %v396_v43 = vpop.permute.xlu1 %395  ;;  %v393_v6 = vpop.permute.xlu0 %392  ;;  %v7144_v59 = vrot.slane %v2204_v46, %v6592_v34 }
 0x158   : > { %v2236_v17 = vcombine.low %v2180_v15, %v2196_v27  ;;  %v2237_v11 = vcombine.high %v2180_v15, %v2196_v27  ;;  %v2252_v47 = vcombine.low %v2187_v37, %v2203_v0  ;;  %v2253_v22 = vcombine.high %v2187_v37, %v2203_v0 }
 0x159   : > { %570 = vrot.lane.b32.xlu1 %v7061_v42, %s9779_s13  ;;  %v7153_v15 = vrot.slane %v2205_v18, %v6592_v34  ;;  %v7156_v37 = vrot.slane %v2220_v16, %v6592_v34 }
 0x15a   : > { %567 = vrot.lane.b32.xlu0 %v7061_v42, %s9888_s28  ;;  %v7147_v44 = vrot.slane %v2236_v17, %v6592_v34  ;;  %v7150_v2 = vrot.slane %v2237_v11, %v6592_v34  ;;  %v7159_v12 = vrot.slane %v2252_v47, %v6592_v34  ;;  %v7162_v46 = vrot.slane %v2253_v22, %v6592_v34 }
 0x15b   : > { %v402_v45 = vpop.permute.xlu1 %401  ;;  %v399_v52 = vpop.permute.xlu0 %398  ;;  %9890 = vst [vmem:[#allocation75_spill] sm:$0xff] %v7153_v15  ;;  %9891 = vst [vmem:[#allocation76_spill] sm:$0xff] %v7156_v37  ;;  %v7173_v47 = vrot.slane %v2221_v61, %v6592_v34 }
 0x15c   : > { %9889 = vst [vmem:[#allocation74_spill] sm:$0xff] %v7150_v2  ;;  %9892 = vst [vmem:[#allocation77_spill] sm:$0xff] %v7159_v12  ;;  %v2292_v0 = vcombine.low %v396_v43, %v402_v45  ;;  %v2293_v27 = vcombine.high %v396_v43, %v402_v45  ;;  %v2276_v54 = vcombine.low %v393_v6, %v399_v52 }
 0x15d   : > { %9893 = vst [vmem:[#allocation78_spill] sm:$0xff] %v7162_v46  ;;  %v2277_v17 = vcombine.high %v393_v6, %v399_v52  ;;  %576 = vrot.lane.b32.xlu1 %v7061_v42, %s9787_s5  ;;  %9894 = vst [vmem:[#allocation79_spill] sm:$0xff] %v7173_v47 }
 0x15e   : > { %v2300_v22 = vrot.slane %v2292_v0, %v6569_v8  ;;  %v2307_v43 = vrot.slane %v2293_v27, %v6569_v8  ;;  %v2284_v6 = vrot.slane %v2276_v54, %v6569_v8  ;;  %573 = vrot.lane.b32.xlu0 %v7061_v42, %s9778_s16 }
 0x15f   : > { %v2291_v45 = vrot.slane %v2277_v17, %v6569_v8  ;;  %v408_v52 = vpop.permute.xlu1 %407  ;;  %v405_v18 = vpop.permute.xlu0 %404 }
 0x160   : > { %v2341_v11 = vcombine.high %v2284_v6, %v2300_v22  ;;  %v2340_v37 = vcombine.low %v2284_v6, %v2300_v22 }
 0x161   : > { %v2357_v27 = vcombine.high %v2291_v45, %v2307_v43  ;;  %582 = vrot.lane.b32.xlu1 %v7061_v42, %s9789_s3  ;;  %v2356_v12 = vcombine.low %v2291_v45, %v2307_v43 }
 0x162   : > { %579 = vrot.lane.b32.xlu0 %v7061_v42, %s9786_s12 }
 0x163   : > { %v414_v54 = vpop.permute.xlu1 %413  ;;  %v411_v17 = vpop.permute.xlu0 %410 }
 0x164   : > { %v2324_v41 = vcombine.low %v408_v52, %v414_v54  ;;  %v2325_v36 = vcombine.high %v408_v52, %v414_v54  ;;  %v2308_v56 = vcombine.low %v405_v18, %v411_v17  ;;  %v2309_v16 = vcombine.high %v405_v18, %v411_v17 }
 0x165   : > { %588 = vrot.lane.b32.xlu1 %v7061_v42, %s9791_s27 }
 0x166   : > { %v2332_v0 = vrot.slane %v2324_v41, %v6569_v8  ;;  %v2339_v61 = vrot.slane %v2325_v36, %v6569_v8  ;;  %v2316_v46 = vrot.slane %v2308_v56, %v6569_v8  ;;  %v2323_v47 = vrot.slane %v2309_v16, %v6569_v8  ;;  %585 = vrot.lane.b32.xlu0 %v7061_v42, %s9788_s4 }
 0x167   : > { %v420_v51 = vpop.permute.xlu1 %419  ;;  %v417_v52 = vpop.permute.xlu0 %416  ;;  %v7204_v56 = vrot.slane %v2340_v37, %v6592_v34 }
 0x168   : > { %v2372_v54 = vcombine.low %v2316_v46, %v2332_v0  ;;  %v2373_v18 = vcombine.high %v2316_v46, %v2332_v0  ;;  %v2388_v22 = vcombine.low %v2323_v47, %v2339_v61  ;;  %v2389_v6 = vcombine.high %v2323_v47, %v2339_v61 }
 0x169   : > { %594 = vrot.lane.b32.xlu1 %v7061_v42, %s9793_s29  ;;  %9895 = vst [vmem:[#allocation80_spill] sm:$0xff] %v7204_v56  ;;  %v7213_v46 = vrot.slane %v2341_v11, %v6592_v34  ;;  %v7216_v47 = vrot.slane %v2356_v12, %v6592_v34 }
 0x16a   : > { %591 = vrot.lane.b32.xlu0 %v7061_v42, %s9790_s18  ;;  %v7207_v36 = vrot.slane %v2372_v54, %v6592_v34  ;;  %v7210_v41 = vrot.slane %v2373_v18, %v6592_v34  ;;  %v7219_v45 = vrot.slane %v2388_v22, %v6592_v34  ;;  %v7222_v37 = vrot.slane %v2389_v6, %v6592_v34 }
 0x16b   : > { %v426_v16 = vpop.permute.xlu1 %425  ;;  %v423_v43 = vpop.permute.xlu0 %422  ;;  %9897 = vst [vmem:[#allocation82_spill] sm:$0xff] %v7213_v46  ;;  %9898 = vst [vmem:[#allocation83_spill] sm:$0xff] %v7216_v47  ;;  %v7233_v22 = vrot.slane %v2357_v27, %v6592_v34 }
 0x16c   : > { %9896 = vst [vmem:[#allocation81_spill] sm:$0xff] %v7210_v41  ;;  %9899 = vst [vmem:[#allocation84_spill] sm:$0xff] %v7219_v45  ;;  %v2428_v61 = vcombine.low %v420_v51, %v426_v16  ;;  %v2429_v0 = vcombine.high %v420_v51, %v426_v16  ;;  %v2412_v17 = vcombine.low %v417_v52, %v423_v43 }
 0x16d   : > { %9900 = vst [vmem:[#allocation85_spill] sm:$0xff] %v7222_v37  ;;  %v2413_v54 = vcombine.high %v417_v52, %v423_v43  ;;  %600 = vrot.lane.b32.xlu1 %v7061_v42, %s9801_s23  ;;  %9901 = vst [vmem:[#allocation86_spill] sm:$0xff] %v7233_v22 }
 0x16e   : > { %v2436_v6 = vrot.slane %v2428_v61, %v6569_v8  ;;  %v2443_v51 = vrot.slane %v2429_v0, %v6569_v8  ;;  %v2420_v52 = vrot.slane %v2412_v17, %v6569_v8  ;;  %597 = vrot.lane.b32.xlu0 %v7061_v42, %s9792_s30 }
 0x16f   : > { %v2427_v16 = vrot.slane %v2413_v54, %v6569_v8  ;;  %v432_v43 = vpop.permute.xlu1 %431  ;;  %v429_v11 = vpop.permute.xlu0 %428 }
 0x170   : > { %v2477_v18 = vcombine.high %v2420_v52, %v2436_v6  ;;  %v2476_v47 = vcombine.low %v2420_v52, %v2436_v6 }
 0x171   : > { %v2493_v0 = vcombine.high %v2427_v16, %v2443_v51  ;;  %606 = vrot.lane.b32.xlu1 %v7061_v42, %s9803_s22  ;;  %v2492_v45 = vcombine.low %v2427_v16, %v2443_v51 }
 0x172   : > { %603 = vrot.lane.b32.xlu0 %v7061_v42, %s9800_s2 }
 0x173   : > { %v438_v17 = vpop.permute.xlu1 %437  ;;  %v435_v54 = vpop.permute.xlu0 %434 }
 0x174   : > { %v2460_v41 = vcombine.low %v432_v43, %v438_v17  ;;  %v2461_v46 = vcombine.high %v432_v43, %v438_v17  ;;  %v2444_v2 = vcombine.low %v429_v11, %v435_v54  ;;  %v2445_v12 = vcombine.high %v429_v11, %v435_v54 }
 0x175   : > { %612 = vrot.lane.b32.xlu1 %v7061_v42, %s9805_s15 }
 0x176   : > { %v2468_v61 = vrot.slane %v2460_v41, %v6569_v8  ;;  %v2475_v27 = vrot.slane %v2461_v46, %v6569_v8  ;;  %v2452_v37 = vrot.slane %v2444_v2, %v6569_v8  ;;  %v2459_v22 = vrot.slane %v2445_v12, %v6569_v8  ;;  %609 = vrot.lane.b32.xlu0 %v7061_v42, %s9802_s17 }
 0x177   : > { %v444_v15 = vpop.permute.xlu1 %443  ;;  %v441_v43 = vpop.permute.xlu0 %440  ;;  %v7264_v2 = vrot.slane %v2476_v47, %v6592_v34 }
 0x178   : > { %v2508_v17 = vcombine.low %v2452_v37, %v2468_v61  ;;  %v2509_v11 = vcombine.high %v2452_v37, %v2468_v61  ;;  %v2524_v6 = vcombine.low %v2459_v22, %v2475_v27  ;;  %v2525_v52 = vcombine.high %v2459_v22, %v2475_v27 }
 0x179   : > { %618 = vrot.lane.b32.xlu1 %v7061_v42, %s9807_s0  ;;  %9902 = vst [vmem:[#allocation87_spill] sm:$0xff] %v7264_v2  ;;  %v7273_v37 = vrot.slane %v2477_v18, %v6592_v34  ;;  %v7276_v22 = vrot.slane %v2492_v45, %v6592_v34 }
 0x17a   : > { %615 = vrot.lane.b32.xlu0 %v7061_v42, %s9804_s25  ;;  %v7267_v41 = vrot.slane %v2508_v17, %v6592_v34  ;;  %v7270_v46 = vrot.slane %v2509_v11, %v6592_v34  ;;  %v7279_v16 = vrot.slane %v2524_v6, %v6592_v34  ;;  %v7282_v47 = vrot.slane %v2525_v52, %v6592_v34 }
 0x17b   : > { %v450_v12 = vpop.permute.xlu1 %449  ;;  %v447_v51 = vpop.permute.xlu0 %446  ;;  %9905 = vst [vmem:[#allocation90_spill] sm:$0xff] %v7273_v37  ;;  %9906 = vst [vmem:[#allocation91_spill] sm:$0xff] %v7276_v22  ;;  %v7293_v6 = vrot.slane %v2493_v0, %v6592_v34 }
 0x17c   : > { %9903 = vst [vmem:[#allocation88_spill] sm:$0xff] %v7267_v41  ;;  %9904 = vst [vmem:[#allocation89_spill] sm:$0xff] %v7270_v46  ;;  %v2564_v27 = vcombine.low %v444_v15, %v450_v12  ;;  %v2565_v61 = vcombine.high %v444_v15, %v450_v12  ;;  %v2548_v54 = vcombine.low %v441_v43, %v447_v51 }
 0x17d   : > { %9907 = vst [vmem:[#allocation92_spill] sm:$0xff] %v7279_v16  ;;  %9908 = vst [vmem:[#allocation93_spill] sm:$0xff] %v7282_v47  ;;  %v2549_v17 = vcombine.high %v441_v43, %v447_v51  ;;  %624 = vrot.lane.b32.xlu1 %v7061_v42, %s9815_s10 }
 0x17e   : > { %9909 = vst [vmem:[#allocation94_spill] sm:$0xff] %v7293_v6  ;;  %v2572_v52 = vrot.slane %v2564_v27, %v6569_v8  ;;  %v2579_v15 = vrot.slane %v2565_v61, %v6569_v8  ;;  %v2556_v43 = vrot.slane %v2548_v54, %v6569_v8  ;;  %621 = vrot.lane.b32.xlu0 %v7061_v42, %s9806_s26 }
 0x17f   : > { %v2563_v12 = vrot.slane %v2549_v17, %v6569_v8  ;;  %v456_v51 = vpop.permute.xlu1 %455  ;;  %v453_v18 = vpop.permute.xlu0 %452 }
 0x180   : > { %v2613_v11 = vcombine.high %v2556_v43, %v2572_v52  ;;  %v2612_v22 = vcombine.low %v2556_v43, %v2572_v52 }
 0x181   : > { %v2629_v61 = vcombine.high %v2563_v12, %v2579_v15  ;;  %630 = vrot.lane.b32.xlu1 %v7061_v42, %s9817_s8  ;;  %v2628_v16 = vcombine.low %v2563_v12, %v2579_v15 }
 0x182   : > { %627 = vrot.lane.b32.xlu0 %v7061_v42, %s9814_s14 }
 0x183   : > { %v462_v54 = vpop.permute.xlu1 %461  ;;  %v459_v17 = vpop.permute.xlu0 %458 }
 0x184   : > { %v2596_v46 = vcombine.low %v456_v51, %v462_v54  ;;  %v2597_v37 = vcombine.high %v456_v51, %v462_v54  ;;  %v2580_v5 = vcombine.low %v453_v18, %v459_v17  ;;  %v2581_v45 = vcombine.high %v453_v18, %v459_v17 }
 0x185   : > { %636 = vrot.lane.b32.xlu1 %v7061_v42, %s9819_s11  ;;  %s9920_s11 = smov 50  }
 0x186   : > { %v2604_v27 = vrot.slane %v2596_v46, %v6569_v8  ;;  %v2611_v0 = vrot.slane %v2597_v37, %v6569_v8  ;;  %v2588_v47 = vrot.slane %v2580_v5, %v6569_v8  ;;  %v2595_v6 = vrot.slane %v2581_v45, %v6569_v8  ;;  %633 = vrot.lane.b32.xlu0 %v7061_v42, %s9816_s20 }
 0x187   : > { %v468_v1 = vpop.permute.xlu1 %467  ;;  %v465_v51 = vpop.permute.xlu0 %464  ;;  %v7324_v5 = vrot.slane %v2612_v22, %v6592_v34 }
 0x188   : > { %v2644_v54 = vcombine.low %v2588_v47, %v2604_v27  ;;  %v2645_v18 = vcombine.high %v2588_v47, %v2604_v27  ;;  %v2660_v52 = vcombine.low %v2595_v6, %v2611_v0  ;;  %v2661_v43 = vcombine.high %v2595_v6, %v2611_v0 }
 0x189   : > { %642 = vrot.lane.b32.xlu1 %v7061_v42, %s9821_s6  ;;  %9910 = vst [vmem:[#allocation95_spill] sm:$0xff] %v7324_v5  ;;  %v7333_v47 = vrot.slane %v2613_v11, %v6592_v34  ;;  %v7336_v6 = vrot.slane %v2628_v16, %v6592_v34  ;;  %s9919_s6 = smov 48  }
 0x18a   : > { %639 = vrot.lane.b32.xlu0 %v7061_v42, %s9818_s7  ;;  %v7327_v46 = vrot.slane %v2644_v54, %v6592_v34  ;;  %v7330_v37 = vrot.slane %v2645_v18, %v6592_v34  ;;  %v7339_v12 = vrot.slane %v2660_v52, %v6592_v34  ;;  %v7342_v22 = vrot.slane %v2661_v43, %v6592_v34 }
 0x18b   : > { %v474_v45 = vpop.permute.xlu1 %473  ;;  %v471_v15 = vpop.permute.xlu0 %470  ;;  %9913 = vst [vmem:[#allocation98_spill] sm:$0xff] %v7333_v47  ;;  %9914 = vst [vmem:[#allocation99_spill] sm:$0xff] %v7336_v6  ;;  %v7353_v52 = vrot.slane %v2629_v61, %v6592_v34 }
 0x18c   : > { %9911 = vst [vmem:[#allocation96_spill] sm:$0xff] %v7327_v46  ;;  %9912 = vst [vmem:[#allocation97_spill] sm:$0xff] %v7330_v37  ;;  %v2700_v0 = vcombine.low %v468_v1, %v474_v45  ;;  %v2701_v27 = vcombine.high %v468_v1, %v474_v45  ;;  %v2684_v17 = vcombine.low %v465_v51, %v471_v15 }
 0x18d   : > { %9915 = vst [vmem:[#allocation100_spill] sm:$0xff] %v7339_v12  ;;  %9916 = vst [vmem:[#allocation101_spill] sm:$0xff] %v7342_v22  ;;  %v2685_v54 = vcombine.high %v465_v51, %v471_v15  ;;  %648 = vrot.lane.b32.xlu1 %v7061_v42, %s9829_s19  ;;  %s9918_s19 = smov 54  }
 0x18e   : > { %9917 = vst [vmem:[#allocation102_spill] sm:$0xff] %v7353_v52  ;;  %v2708_v43 = vrot.slane %v2700_v0, %v6569_v8  ;;  %v2715_v1 = vrot.slane %v2701_v27, %v6569_v8  ;;  %v2692_v51 = vrot.slane %v2684_v17, %v6569_v8  ;;  %645 = vrot.lane.b32.xlu0 %v7061_v42, %s9918_s19  ;;  %s9921_s19 = smov 44  }
 0x18f   : > { %v2699_v45 = vrot.slane %v2685_v54, %v6569_v8  ;;  %v480_v15 = vpop.permute.xlu1 %479  ;;  %v477_v11 = vpop.permute.xlu0 %476 }
 0x190   : > { %v2749_v18 = vcombine.high %v2692_v51, %v2708_v43  ;;  %v2748_v6 = vcombine.low %v2692_v51, %v2708_v43 }
 0x191   : > { %v2765_v27 = vcombine.high %v2699_v45, %v2715_v1  ;;  %654 = vrot.lane.b32.xlu1 %v7061_v42, %s9919_s6  ;;  %s9922_s6 = smov 46   ;;  %v2764_v12 = vcombine.low %v2699_v45, %v2715_v1 }
 0x192   : > { %651 = vrot.lane.b32.xlu0 %v7061_v42, %s9920_s11  ;;  %s9923_s11 = smov 40  }
 0x193   : > { %v486_v17 = vpop.permute.xlu1 %485  ;;  %v483_v54 = vpop.permute.xlu0 %482 }
 0x194   : > { %v2732_v37 = vcombine.low %v480_v15, %v486_v17  ;;  %v2733_v47 = vcombine.high %v480_v15, %v486_v17  ;;  %v2716_v53 = vcombine.low %v477_v11, %v483_v54  ;;  %v2717_v16 = vcombine.high %v477_v11, %v483_v54 }
 0x195   : > { %660 = vrot.lane.b32.xlu1 %v7061_v42, %s9921_s19  ;;  %s9924_s19 = smov 42  }
 0x196   : > { %v2740_v0 = vrot.slane %v2732_v37, %v6569_v8  ;;  %v2747_v61 = vrot.slane %v2733_v47, %v6569_v8  ;;  %v2724_v22 = vrot.slane %v2716_v53, %v6569_v8  ;;  %v2731_v52 = vrot.slane %v2717_v16, %v6569_v8  ;;  %657 = vrot.lane.b32.xlu0 %v7061_v42, %s9922_s6  ;;  %s9936_s6 = smov 34  }
 0x197   : > { %v492_v57 = vpop.permute.xlu1 %491  ;;  %v489_v15 = vpop.permute.xlu0 %488  ;;  %v7384_v53 = vrot.slane %v2748_v6, %v6592_v34 }
 0x198   : > { %v2780_v17 = vcombine.low %v2724_v22, %v2740_v0  ;;  %v2781_v11 = vcombine.high %v2724_v22, %v2740_v0  ;;  %v2796_v43 = vcombine.low %v2731_v52, %v2747_v61  ;;  %v2797_v51 = vcombine.high %v2731_v52, %v2747_v61 }
 0x199   : > { %666 = vrot.lane.b32.xlu1 %v7061_v42, %s9923_s11  ;;  %9925 = vst [vmem:[#allocation103_spill] sm:$0xff] %v7384_v53  ;;  %v7393_v22 = vrot.slane %v2749_v18, %v6592_v34  ;;  %v7396_v52 = vrot.slane %v2764_v12, %v6592_v34  ;;  %s9932_s11 = smov 36  }
 0x19a   : > { %663 = vrot.lane.b32.xlu0 %v7061_v42, %s9924_s19  ;;  %v7387_v37 = vrot.slane %v2780_v17, %v6592_v34  ;;  %v7390_v47 = vrot.slane %v2781_v11, %v6592_v34  ;;  %v7399_v45 = vrot.slane %v2796_v43, %v6592_v34  ;;  %v7402_v6 = vrot.slane %v2797_v51, %v6592_v34  ;;  %s9935_s19 = smov 32  }
 0x19b   : > { %v498_v16 = vpop.permute.xlu1 %497  ;;  %v495_v1 = vpop.permute.xlu0 %494  ;;  %9928 = vst [vmem:[#allocation106_spill] sm:$0xff] %v7393_v22  ;;  %9929 = vst [vmem:[#allocation107_spill] sm:$0xff] %v7396_v52  ;;  %v7413_v43 = vrot.slane %v2765_v27, %v6592_v34 }
 0x19c   : > { %9926 = vst [vmem:[#allocation104_spill] sm:$0xff] %v7387_v37  ;;  %9927 = vst [vmem:[#allocation105_spill] sm:$0xff] %v7390_v47  ;;  %v2836_v61 = vcombine.low %v492_v57, %v498_v16  ;;  %v2837_v0 = vcombine.high %v492_v57, %v498_v16  ;;  %v2820_v54 = vcombine.low %v489_v15, %v495_v1 }
 0x19d   : > { %9930 = vst [vmem:[#allocation108_spill] sm:$0xff] %v7399_v45  ;;  %9931 = vst [vmem:[#allocation109_spill] sm:$0xff] %v7402_v6  ;;  %v2821_v17 = vcombine.high %v489_v15, %v495_v1  ;;  %672 = vrot.lane.b32.xlu1 %v7061_v42, %s9932_s11  ;;  %s9934_s11 = smov 38  }
 0x19e   : > { %9933 = vst [vmem:[#allocation110_spill] sm:$0xff] %v7413_v43  ;;  %v2844_v51 = vrot.slane %v2836_v61, %v6569_v8  ;;  %v2851_v57 = vrot.slane %v2837_v0, %v6569_v8  ;;  %v2828_v15 = vrot.slane %v2820_v54, %v6569_v8  ;;  %669 = vrot.lane.b32.xlu0 %v7061_v42, %s9934_s11  ;;  %s9937_s11 = smov 28  }
 0x19f   : > { %v2835_v16 = vrot.slane %v2821_v17, %v6569_v8  ;;  %v504_v1 = vpop.permute.xlu1 %503  ;;  %v501_v18 = vpop.permute.xlu0 %500 }
 0x1a0   : > { %v2885_v11 = vcombine.high %v2828_v15, %v2844_v51  ;;  %v2884_v52 = vcombine.low %v2828_v15, %v2844_v51 }
 0x1a1   : > { %v2901_v0 = vcombine.high %v2835_v16, %v2851_v57  ;;  %678 = vrot.lane.b32.xlu1 %v7061_v42, %s9935_s19  ;;  %s9938_s19 = smov 30   ;;  %v2900_v45 = vcombine.low %v2835_v16, %v2851_v57 }
 0x1a2   : > { %675 = vrot.lane.b32.xlu0 %v7061_v42, %s9936_s6  ;;  %s9939_s6 = smov 24  }
 0x1a3   : > { %v510_v54 = vpop.permute.xlu1 %509  ;;  %v507_v17 = vpop.permute.xlu0 %506 }
 0x1a4   : > { %v2868_v47 = vcombine.low %v504_v1, %v510_v54  ;;  %v2869_v22 = vcombine.high %v504_v1, %v510_v54  ;;  %v2852_v7 = vcombine.low %v501_v18, %v507_v17  ;;  %v2853_v12 = vcombine.high %v501_v18, %v507_v17 }
 0x1a5   : > { %684 = vrot.lane.b32.xlu1 %v7061_v42, %s9937_s11  ;;  %s9940_s11 = smov 26  }
 0x1a6   : > { %v2876_v61 = vrot.slane %v2868_v47, %v6569_v8  ;;  %v2883_v27 = vrot.slane %v2869_v22, %v6569_v8  ;;  %v2860_v6 = vrot.slane %v2852_v7, %v6569_v8  ;;  %v2867_v43 = vrot.slane %v2853_v12, %v6569_v8  ;;  %681 = vrot.lane.b32.xlu0 %v7061_v42, %s9938_s19 }
 0x1a7   : > { %v516_v62 = vpop.permute.xlu1 %515  ;;  %v513_v1 = vpop.permute.xlu0 %512  ;;  %v7444_v7 = vrot.slane %v2884_v52, %v6592_v34 }
 0x1a8   : > { %v2916_v54 = vcombine.low %v2860_v6, %v2876_v61  ;;  %v2917_v18 = vcombine.high %v2860_v6, %v2876_v61  ;;  %v2932_v51 = vcombine.low %v2867_v43, %v2883_v27  ;;  %v2933_v15 = vcombine.high %v2867_v43, %v2883_v27 }
 0x1a9   : > { %690 = vrot.lane.b32.xlu1 %v7061_v42, %s9939_s6  ;;  %9941 = vst [vmem:[#allocation111_spill] sm:$0xff] %v7444_v7  ;;  %v7453_v6 = vrot.slane %v2885_v11, %v6592_v34  ;;  %v7456_v43 = vrot.slane %v2900_v45, %v6592_v34  ;;  %s9948_s6 = smov 20  }
 0x1aa   : > { %687 = vrot.lane.b32.xlu0 %v7061_v42, %s9940_s11  ;;  %v7447_v47 = vrot.slane %v2916_v54, %v6592_v34  ;;  %v7450_v22 = vrot.slane %v2917_v18, %v6592_v34  ;;  %v7459_v16 = vrot.slane %v2932_v51, %v6592_v34  ;;  %v7462_v52 = vrot.slane %v2933_v15, %v6592_v34  ;;  %s9951_s11 = smov 18  }
 0x1ab   : > { %v522_v12 = vpop.permute.xlu1 %521  ;;  %v519_v57 = vpop.permute.xlu0 %518  ;;  %9944 = vst [vmem:[#allocation114_spill] sm:$0xff] %v7453_v6  ;;  %9945 = vst [vmem:[#allocation115_spill] sm:$0xff] %v7456_v43  ;;  %v7473_v51 = vrot.slane %v2901_v0, %v6592_v34 }
 0x1ac   : > { %9942 = vst [vmem:[#allocation112_spill] sm:$0xff] %v7447_v47  ;;  %9943 = vst [vmem:[#allocation113_spill] sm:$0xff] %v7450_v22  ;;  %v2972_v27 = vcombine.low %v516_v62, %v522_v12  ;;  %v2973_v61 = vcombine.high %v516_v62, %v522_v12  ;;  %v2956_v17 = vcombine.low %v513_v1, %v519_v57 }
 0x1ad   : > { %9946 = vst [vmem:[#allocation116_spill] sm:$0xff] %v7459_v16  ;;  %9947 = vst [vmem:[#allocation117_spill] sm:$0xff] %v7462_v52  ;;  %v2957_v54 = vcombine.high %v513_v1, %v519_v57  ;;  %696 = vrot.lane.b32.xlu1 %v7061_v42, %s9948_s6  ;;  %s9950_s6 = smov 22  }
 0x1ae   : > { %9949 = vst [vmem:[#allocation118_spill] sm:$0xff] %v7473_v51  ;;  %v2980_v15 = vrot.slane %v2972_v27, %v6569_v8  ;;  %v2987_v62 = vrot.slane %v2973_v61, %v6569_v8  ;;  %v2964_v1 = vrot.slane %v2956_v17, %v6569_v8  ;;  %693 = vrot.lane.b32.xlu0 %v7061_v42, %s9950_s6  ;;  %s9952_s6 = smov 14  }
 0x1af   : > { %v2971_v12 = vrot.slane %v2957_v54, %v6569_v8  ;;  %v528_v57 = vpop.permute.xlu1 %527 }
 0x1b0   : > { %v3021_v27 = vcombine.high %v2964_v1, %v2980_v15  ;;  %v525_v61 = vpop.permute.xlu0 %524  ;;  %v3020_v18 = vcombine.low %v2964_v1, %v2980_v15 }
 0x1b1   : > { %v3037_v11 = vcombine.high %v2971_v12, %v2987_v62  ;;  %702 = vrot.lane.b32.xlu1 %v7061_v42, %s9859_s1  ;;  %s9954_s1 = smov 10  }
 0x1b2   : > { %699 = vrot.lane.b32.xlu0 %v7061_v42, %s9951_s11  ;;  %v7521_v1 = vrot.slane %v3021_v27, %v6592_v34  ;;  %s9969_s11 = smov 124  }
 0x1b3   : > { %v534_v17 = vpop.permute.xlu1 %533 }
 0x1b4   : > { %v3004_v54 = vcombine.low %v528_v57, %v534_v17  ;;  %v3005_v22 = vcombine.high %v528_v57, %v534_v17  ;;  %v531_v6 = vpop.permute.xlu0 %530  ;;  %v3036_v57 = vcombine.low %v2971_v12, %v2987_v62  ;;  %9961 = vst [vmem:[#allocation124_spill] sm:$0xff] %v7521_v1  ;;  %v7527_v12 = vrot.slane %v3037_v11, %v6592_v34 }
 0x1b5   : > { %v2988_v45 = vcombine.low %v525_v61, %v531_v6  ;;  %v2989_v43 = vcombine.high %v525_v61, %v531_v6  ;;  %708 = vrot.lane.b32.xlu1 %v7061_v42, %s9861_s9  ;;  %s9953_s9 = smov 8  }
 0x1b6   : > { %v3012_v0 = vrot.slane %v3004_v54, %v6569_v8  ;;  %v3019_v52 = vrot.slane %v3005_v22, %v6569_v8  ;;  %705 = vrot.lane.b32.xlu0 %v7061_v42, %s9952_s6  ;;  %s9955_s6 = sld [smem:[#allocation19_spill]]  ;;  %9963 = vst [vmem:[#allocation126_spill] sm:$0xff] %v7527_v12 }
 0x1b7   : > { %v2996_v51 = vrot.slane %v2988_v45, %v6569_v8  ;;  %v3003_v16 = vrot.slane %v2989_v43, %v6569_v8  ;;  %v541_v14 = vpop.permute.xlu1 %540  ;;  %v7506_v43 = vrot.slane %v3020_v18, %v6592_v34  ;;  %v7524_v18 = vrot.slane %v3036_v57, %v6592_v34 }
 0x1b8   : > { %v3092_v17 = vcombine.low %v7061_v42, %v541_v14  ;;  %v538_v6 = vpop.permute.xlu0 %537  ;;  %v3093_v22 = vcombine.high %v7061_v42, %v541_v14 }
 0x1b9   : > { %v3052_v61 = vcombine.low %v2996_v51, %v3012_v0  ;;  %v3053_v4 = vcombine.high %v2996_v51, %v3012_v0  ;;  %v3068_v60 = vcombine.low %v3003_v16, %v3019_v52  ;;  %v3069_v15 = vcombine.high %v3003_v16, %v3019_v52  ;;  %714 = vrot.lane.b32.xlu1 %v7061_v42, %s9953_s9  ;;  %s9964_s9 = smov 4  }
 0x1ba   : > { %711 = vrot.lane.b32.xlu0 %v7061_v42, %s9954_s1  ;;  %9956 = vst [vmem:[#allocation119_spill] sm:$0xff] %v7506_v43  ;;  %9962 = vst [vmem:[#allocation125_spill] sm:$0xff] %v7524_v18  ;;  %v3100_v0 = vrot.slane %v3092_v17, %v6569_v8  ;;  %v3107_v27 = vrot.slane %v3093_v22, %v6569_v8  ;;  %s9965_s1 = smov 6  }
 0x1bb   : > { %v547_v45 = vpop.permute.xlu1 %546  ;;  %v7509_v62 = vrot.slane %v3052_v61, %v6592_v34  ;;  %v7512_v51 = vrot.slane %v3053_v4, %v6592_v34  ;;  %v7515_v16 = vrot.slane %v3068_v60, %v6592_v34  ;;  %v7518_v52 = vrot.slane %v3069_v15, %v6592_v34 }
 0x1bc   : > { %v544_v14 = vpop.permute.xlu0 %543  ;;  %v7535_v61 = vld [vmem:[%s9955_s6 + $0x18] sm:$0xff]  ;;  %s9966_s6 = smov 126  }
 0x1bd   : > { %9957 = vst [vmem:[#allocation120_spill] sm:$0xff] %v7509_v62  ;;  %9958 = vst [vmem:[#allocation121_spill] sm:$0xff] %v7512_v51  ;;  %v3108_v4 = vcombine.low %v538_v6, %v544_v14  ;;  %v3109_v54 = vcombine.high %v538_v6, %v544_v14  ;;  %720 = vrot.lane.b32.xlu1 %v7061_v42, %s9964_s9  ;;  %s9967_s9 = smov 2  }
 0x1be   : > { %9959 = vst [vmem:[#allocation122_spill] sm:$0xff] %v7515_v16  ;;  %9960 = vst [vmem:[#allocation123_spill] sm:$0xff] %v7518_v52  ;;  %717 = vrot.lane.b32.xlu0 %v7061_v42, %s9965_s1  ;;  %s9968_s1 = smov 122  }
 0x1bf   : > { %v3116_v6 = vrot.slane %v3108_v4, %v6569_v8  ;;  %v3123_v15 = vrot.slane %v3109_v54, %v6569_v8  ;;  %v553_v14 = vpop.permute.xlu1 %552 }
 0x1c0   : > { %v550_v23 = vpop.permute.xlu0 %549  ;;  %v3124_v17 = vcombine.low %v547_v45, %v553_v14  ;;  %v3125_v4 = vcombine.high %v547_v45, %v553_v14 }
 0x1c1   : > { %v3157_v13 = vcombine.high %v3100_v0, %v3116_v6  ;;  %v3173_v11 = vcombine.high %v3107_v27, %v3123_v15  ;;  %727 = vrot.lane.b32.xlu1 %v7535_v61, %s9966_s6  ;;  %v3156_v22 = vcombine.low %v3100_v0, %v3116_v6  ;;  %v3172_v14 = vcombine.low %v3107_v27, %v3123_v15  ;;  %s9978_s6 = smov 116  }
 0x1c2   : > { %723 = vrot.lane.b32.xlu0 %v7061_v42, %s9967_s9  ;;  %v3132_v60 = vrot.slane %v3124_v17, %v6569_v8  ;;  %v3139_v52 = vrot.slane %v3125_v4, %v6569_v8 }
 0x1c3   : > { %v559_v57 = vpop.permute.xlu1 %558  ;;  %v7569_v17 = vrot.slane %v3156_v22, %v6592_v34  ;;  %v7587_v6 = vrot.slane %v3172_v14, %v6592_v34  ;;  %v7590_v15 = vrot.slane %v3173_v11, %v6592_v34 }
 0x1c4   : > { %v556_v54 = vpop.permute.xlu0 %555 }
 0x1c5   : > { %v3140_v18 = vcombine.low %v550_v23, %v556_v54  ;;  %v3141_v16 = vcombine.high %v550_v23, %v556_v54  ;;  %733 = vrot.lane.b32.xlu1 %v7535_v61, %s9968_s1  ;;  %s9970_s1 = smov 118   ;;  %9976 = vst [vmem:[#allocation131_spill] sm:$0xff] %v7587_v6  ;;  %9977 = vst [vmem:[#allocation132_spill] sm:$0xff] %v7590_v15 }
 0x1c6   : > { %730 = vrot.lane.b32.xlu0 %v7535_v61, %s9969_s11  ;;  %s9971_s11 = smov 120  }
 0x1c7   : > { %v3148_v12 = vrot.slane %v3140_v18, %v6569_v8  ;;  %v3155_v42 = vrot.slane %v3141_v16, %v6569_v8  ;;  %v565_v45 = vpop.permute.xlu1 %564 }
 0x1c8   : > { %v3228_v51 = vcombine.low %v559_v57, %v565_v45  ;;  %v562_v1 = vpop.permute.xlu0 %561  ;;  %v3229_v0 = vcombine.high %v559_v57, %v565_v45  ;;  %v7584_v57 = vrot.slane %v3157_v13, %v6592_v34 }
 0x1c9   : > { %v3188_v23 = vcombine.low %v3132_v60, %v3148_v12  ;;  %v3189_v54 = vcombine.high %v3132_v60, %v3148_v12  ;;  %v3204_v29 = vcombine.low %v3139_v52, %v3155_v42  ;;  %v3205_v39 = vcombine.high %v3139_v52, %v3155_v42  ;;  %739 = vrot.lane.b32.xlu1 %v7535_v61, %s9970_s1  ;;  %s9980_s1 = smov 108  }
 0x1ca   : > { %736 = vrot.lane.b32.xlu0 %v7535_v61, %s9971_s11  ;;  %9975 = vst [vmem:[#allocation130_spill] sm:$0xff] %v7584_v57  ;;  %v3236_v22 = vrot.slane %v3228_v51, %v6569_v8  ;;  %s10050_s11 = smov 8  }
 0x1cb   : > { %v571_v18 = vpop.permute.xlu1 %570  ;;  %v7572_v16 = vrot.slane %v3188_v23, %v6592_v34  ;;  %v7575_v27 = vrot.slane %v3189_v54, %v6592_v34  ;;  %v7578_v12 = vrot.slane %v3204_v29, %v6592_v34  ;;  %v7581_v52 = vrot.slane %v3205_v39, %v6592_v34 }
 0x1cc   : > { %v568_v60 = vpop.permute.xlu0 %567  ;;  %v3243_v29 = vrot.slane %v3229_v0, %v6569_v8 }
 0x1cd   : > { %9972 = vst [vmem:[#allocation127_spill] sm:$0xff] %v7575_v27  ;;  %9973 = vst [vmem:[#allocation128_spill] sm:$0xff] %v7578_v12  ;;  %v3244_v4 = vcombine.low %v562_v1, %v568_v60  ;;  %v3245_v42 = vcombine.high %v562_v1, %v568_v60  ;;  %745 = vrot.lane.b32.xlu1 %v7535_v61, %s9885_s21  ;;  %s9979_s21 = smov 112  }
 0x1ce   : > { %9974 = vst [vmem:[#allocation129_spill] sm:$0xff] %v7581_v52  ;;  %742 = vrot.lane.b32.xlu0 %v7535_v61, %s9978_s6  ;;  %s10057_s6 = smov 4  }
 0x1cf   : > { %v3252_v1 = vrot.slane %v3244_v4, %v6569_v8  ;;  %v3259_v45 = vrot.slane %v3245_v42, %v6569_v8  ;;  %v577_v14 = vpop.permute.xlu1 %576 }
 0x1d0   : > { %v574_v0 = vpop.permute.xlu0 %573  ;;  %v3260_v51 = vcombine.low %v571_v18, %v577_v14  ;;  %v3261_v4 = vcombine.high %v571_v18, %v577_v14 }
 0x1d1   : > { %v3293_v60 = vcombine.high %v3236_v22, %v3252_v1  ;;  %v3309_v13 = vcombine.high %v3243_v29, %v3259_v45  ;;  %751 = vrot.lane.b32.xlu1 %v7535_v61, %s9887_s24  ;;  %v3292_v23 = vcombine.low %v3236_v22, %v3252_v1  ;;  %v3308_v14 = vcombine.low %v3243_v29, %v3259_v45  ;;  %s10012_s24 = smov 46  }
 0x1d2   : > { %748 = vrot.lane.b32.xlu0 %v7535_v61, %s9979_s21  ;;  %v3268_v54 = vrot.slane %v3260_v51, %v6569_v8  ;;  %v3275_v52 = vrot.slane %v3261_v4, %v6569_v8 }
 0x1d3   : > { %v583_v11 = vpop.permute.xlu1 %582  ;;  %v7629_v51 = vrot.slane %v3292_v23, %v6592_v34  ;;  %v7647_v1 = vrot.slane %v3308_v14, %v6592_v34  ;;  %v7650_v45 = vrot.slane %v3309_v13, %v6592_v34 }
 0x1d4   : > { %v580_v42 = vpop.permute.xlu0 %579 }
 0x1d5   : > { %v3276_v39 = vcombine.low %v574_v0, %v580_v42  ;;  %v3277_v6 = vcombine.high %v574_v0, %v580_v42  ;;  %757 = vrot.lane.b32.xlu1 %v7535_v61, %s9888_s28  ;;  %9981 = vst [vmem:[#allocation133_spill] sm:$0xff] %v7629_v51  ;;  %9987 = vst [vmem:[#allocation139_spill] sm:$0xff] %v7647_v1  ;;  %s10014_s28 = smov 42  }
 0x1d6   : > { %754 = vrot.lane.b32.xlu0 %v7535_v61, %s9980_s1  ;;  %9988 = vst [vmem:[#allocation140_spill] sm:$0xff] %v7650_v45 }
 0x1d7   : > { %v3284_v15 = vrot.slane %v3276_v39, %v6569_v8  ;;  %v3291_v12 = vrot.slane %v3277_v6, %v6569_v8  ;;  %v589_v18 = vpop.permute.xlu1 %588 }
 0x1d8   : > { %v3364_v27 = vcombine.low %v583_v11, %v589_v18  ;;  %v586_v57 = vpop.permute.xlu0 %585  ;;  %v3365_v22 = vcombine.high %v583_v11, %v589_v18  ;;  %v7644_v11 = vrot.slane %v3293_v60, %v6592_v34 }
 0x1d9   : > { %v3324_v0 = vcombine.low %v3268_v54, %v3284_v15  ;;  %v3325_v42 = vcombine.high %v3268_v54, %v3284_v15  ;;  %v3340_v58 = vcombine.low %v3275_v52, %v3291_v12  ;;  %v3341_v35 = vcombine.high %v3275_v52, %v3291_v12  ;;  %763 = vrot.lane.b32.xlu1 %v7535_v61, %s9778_s16  ;;  %s10043_s16 = smov 14  }
 0x1da   : > { %760 = vrot.lane.b32.xlu0 %v7535_v61, %s9779_s13  ;;  %9986 = vst [vmem:[#allocation138_spill] sm:$0xff] %v7644_v11  ;;  %v3372_v23 = vrot.slane %v3364_v27, %v6569_v8  ;;  %s10041_s13 = smov 18  }
 0x1db   : > { %v595_v39 = vpop.permute.xlu1 %594  ;;  %v7632_v6 = vrot.slane %v3324_v0, %v6592_v34  ;;  %v7635_v29 = vrot.slane %v3325_v42, %v6592_v34  ;;  %v7638_v15 = vrot.slane %v3340_v58, %v6592_v34  ;;  %v7641_v12 = vrot.slane %v3341_v35, %v6592_v34 }
 0x1dc   : > { %v592_v52 = vpop.permute.xlu0 %591  ;;  %v3379_v58 = vrot.slane %v3365_v22, %v6569_v8 }
 0x1dd   : > { %9982 = vst [vmem:[#allocation134_spill] sm:$0xff] %v7632_v6  ;;  %9983 = vst [vmem:[#allocation135_spill] sm:$0xff] %v7635_v29  ;;  %v3380_v54 = vcombine.low %v586_v57, %v592_v52  ;;  %v3381_v4 = vcombine.high %v586_v57, %v592_v52  ;;  %769 = vrot.lane.b32.xlu1 %v7535_v61, %s9786_s12  ;;  %s10032_s12 = smov 24  }
 0x1de   : > { %9984 = vst [vmem:[#allocation136_spill] sm:$0xff] %v7638_v15  ;;  %9985 = vst [vmem:[#allocation137_spill] sm:$0xff] %v7641_v12  ;;  %766 = vrot.lane.b32.xlu0 %v7535_v61, %s9787_s5  ;;  %s10030_s5 = smov 28  }
 0x1df   : > { %v3388_v57 = vrot.slane %v3380_v54, %v6569_v8  ;;  %v3395_v18 = vrot.slane %v3381_v4, %v6569_v8  ;;  %v601_v14 = vpop.permute.xlu1 %600 }
 0x1e0   : > { %v598_v22 = vpop.permute.xlu0 %597  ;;  %v3396_v27 = vcombine.low %v595_v39, %v601_v14  ;;  %v3397_v54 = vcombine.high %v595_v39, %v601_v14 }
 0x1e1   : > { %v3429_v52 = vcombine.high %v3372_v23, %v3388_v57  ;;  %v3445_v60 = vcombine.high %v3379_v58, %v3395_v18  ;;  %775 = vrot.lane.b32.xlu1 %v7535_v61, %s9788_s4  ;;  %v3428_v0 = vcombine.low %v3372_v23, %v3388_v57  ;;  %v3444_v14 = vcombine.low %v3379_v58, %v3395_v18  ;;  %s10029_s4 = smov 26  }
 0x1e2   : > { %772 = vrot.lane.b32.xlu0 %v7535_v61, %s9789_s3  ;;  %v3404_v42 = vrot.slane %v3396_v27, %v6569_v8  ;;  %v3411_v12 = vrot.slane %v3397_v54, %v6569_v8  ;;  %s10028_s3 = smov 32  }
 0x1e3   : > { %v607_v13 = vpop.permute.xlu1 %606  ;;  %v7689_v27 = vrot.slane %v3428_v0, %v6592_v34  ;;  %v7707_v57 = vrot.slane %v3444_v14, %v6592_v34  ;;  %v7710_v18 = vrot.slane %v3445_v60, %v6592_v34 }
 0x1e4   : > { %v604_v4 = vpop.permute.xlu0 %603 }
 0x1e5   : > { %v3412_v35 = vcombine.low %v598_v22, %v604_v4  ;;  %v3413_v1 = vcombine.high %v598_v22, %v604_v4  ;;  %781 = vrot.lane.b32.xlu1 %v7535_v61, %s9790_s18  ;;  %9993 = vst [vmem:[#allocation145_spill] sm:$0xff] %v7707_v57  ;;  %9994 = vst [vmem:[#allocation146_spill] sm:$0xff] %v7710_v18  ;;  %s10027_s18 = smov 36  }
 0x1e6   : > { %778 = vrot.lane.b32.xlu0 %v7535_v61, %s9791_s27  ;;  %s10015_s27 = smov 44  }
 0x1e7   : > { %v3420_v45 = vrot.slane %v3412_v35, %v6569_v8  ;;  %v3427_v15 = vrot.slane %v3413_v1, %v6569_v8  ;;  %v613_v39 = vpop.permute.xlu1 %612 }
 0x1e8   : > { %v3500_v29 = vcombine.low %v607_v13, %v613_v39  ;;  %v610_v11 = vpop.permute.xlu0 %609  ;;  %v3501_v23 = vcombine.high %v607_v13, %v613_v39  ;;  %v7704_v13 = vrot.slane %v3429_v52, %v6592_v34 }
 0x1e9   : > { %v3460_v22 = vcombine.low %v3404_v42, %v3420_v45  ;;  %v3461_v4 = vcombine.high %v3404_v42, %v3420_v45  ;;  %v3476_v40 = vcombine.low %v3411_v12, %v3427_v15  ;;  %v3477_v50 = vcombine.high %v3411_v12, %v3427_v15  ;;  %787 = vrot.lane.b32.xlu1 %v7535_v61, %s9792_s30  ;;  %s10017_s30 = smov 40  }
 0x1ea   : > { %784 = vrot.lane.b32.xlu0 %v7535_v61, %s9793_s29  ;;  %9992 = vst [vmem:[#allocation144_spill] sm:$0xff] %v7704_v13  ;;  %v3508_v0 = vrot.slane %v3500_v29, %v6569_v8  ;;  %s10016_s29 = smov 38  }
 0x1eb   : > { %v619_v35 = vpop.permute.xlu1 %618  ;;  %v7692_v1 = vrot.slane %v3460_v22, %v6592_v34  ;;  %v7695_v58 = vrot.slane %v3461_v4, %v6592_v34  ;;  %v7698_v45 = vrot.slane %v3476_v40, %v6592_v34  ;;  %v7701_v15 = vrot.slane %v3477_v50, %v6592_v34 }
 0x1ec   : > { %v616_v12 = vpop.permute.xlu0 %615  ;;  %v3515_v40 = vrot.slane %v3501_v23, %v6569_v8 }
 0x1ed   : > { %9989 = vst [vmem:[#allocation141_spill] sm:$0xff] %v7695_v58  ;;  %9990 = vst [vmem:[#allocation142_spill] sm:$0xff] %v7698_v45  ;;  %v3516_v42 = vcombine.low %v610_v11, %v616_v12  ;;  %v3517_v54 = vcombine.high %v610_v11, %v616_v12  ;;  %793 = vrot.lane.b32.xlu1 %v7535_v61, %s9800_s2  ;;  %s10026_s2 = smov 34  }
 0x1ee   : > { %9991 = vst [vmem:[#allocation143_spill] sm:$0xff] %v7701_v15  ;;  %790 = vrot.lane.b32.xlu0 %v7535_v61, %s9801_s23  ;;  %s10046_s23 = smov 12  }
 0x1ef   : > { %v3524_v11 = vrot.slane %v3516_v42, %v6569_v8  ;;  %v3531_v39 = vrot.slane %v3517_v54, %v6569_v8  ;;  %v625_v14 = vpop.permute.xlu1 %624 }
 0x1f0   : > { %v622_v23 = vpop.permute.xlu0 %621  ;;  %v3532_v29 = vcombine.low %v619_v35, %v625_v14  ;;  %v3533_v42 = vcombine.high %v619_v35, %v625_v14 }
 0x1f1   : > { %v3565_v12 = vcombine.high %v3508_v0, %v3524_v11  ;;  %v3581_v52 = vcombine.high %v3515_v40, %v3531_v39  ;;  %799 = vrot.lane.b32.xlu1 %v7535_v61, %s9802_s17  ;;  %v3564_v22 = vcombine.low %v3508_v0, %v3524_v11  ;;  %v3580_v14 = vcombine.low %v3515_v40, %v3531_v39  ;;  %s10044_s17 = smov 16  }
 0x1f2   : > { %796 = vrot.lane.b32.xlu0 %v7535_v61, %s9803_s22  ;;  %v3540_v4 = vrot.slane %v3532_v29, %v6569_v8  ;;  %v3547_v15 = vrot.slane %v3533_v42, %v6569_v8  ;;  %s10045_s22 = smov 10  }
 0x1f3   : > { %v631_v60 = vpop.permute.xlu1 %630  ;;  %v7749_v29 = vrot.slane %v3564_v22, %v6592_v34  ;;  %v7767_v11 = vrot.slane %v3580_v14, %v6592_v34  ;;  %v7770_v39 = vrot.slane %v3581_v52, %v6592_v34 }
 0x1f4   : > { %v628_v54 = vpop.permute.xlu0 %627 }
 0x1f5   : > { %v3548_v50 = vcombine.low %v622_v23, %v628_v54  ;;  %v3549_v57 = vcombine.high %v622_v23, %v628_v54  ;;  %805 = vrot.lane.b32.xlu1 %v7535_v61, %s9804_s25  ;;  %9999 = vst [vmem:[#allocation151_spill] sm:$0xff] %v7767_v11  ;;  %10000 = vst [vmem:[#allocation152_spill] sm:$0xff] %v7770_v39  ;;  %s10013_s25 = smov 48  }
 0x1f6   : > { %802 = vrot.lane.b32.xlu0 %v7535_v61, %s9805_s15  ;;  %s10042_s15 = smov 20  }
 0x1f7   : > { %v3556_v18 = vrot.slane %v3548_v50, %v6569_v8  ;;  %v3563_v45 = vrot.slane %v3549_v57, %v6569_v8  ;;  %v637_v35 = vpop.permute.xlu1 %636 }
 0x1f8   : > { %v3636_v58 = vcombine.low %v631_v60, %v637_v35  ;;  %v634_v13 = vpop.permute.xlu0 %633  ;;  %v3637_v0 = vcombine.high %v631_v60, %v637_v35  ;;  %v7764_v60 = vrot.slane %v3565_v12, %v6592_v34 }
 0x1f9   : > { %v3596_v23 = vcombine.low %v3540_v4, %v3556_v18  ;;  %v3597_v54 = vcombine.high %v3540_v4, %v3556_v18  ;;  %v3612_v55 = vcombine.low %v3547_v15, %v3563_v45  ;;  %v3613_v43 = vcombine.high %v3547_v15, %v3563_v45  ;;  %811 = vrot.lane.b32.xlu1 %v7535_v61, %s9806_s26  ;;  %s10049_s26 = smov 6  }
 0x1fa   : > { %808 = vrot.lane.b32.xlu0 %v7535_v61, %s9807_s0  ;;  %9998 = vst [vmem:[#allocation150_spill] sm:$0xff] %v7764_v60  ;;  %v3644_v22 = vrot.slane %v3636_v58, %v6569_v8  ;;  %s10001_s0 = smov 60  }
 0x1fb   : > { %v643_v50 = vpop.permute.xlu1 %642  ;;  %v7752_v57 = vrot.slane %v3596_v23, %v6592_v34  ;;  %v7755_v40 = vrot.slane %v3597_v54, %v6592_v34  ;;  %v7758_v18 = vrot.slane %v3612_v55, %v6592_v34  ;;  %v7761_v45 = vrot.slane %v3613_v43, %v6592_v34 }
 0x1fc   : > { %v640_v15 = vpop.permute.xlu0 %639  ;;  %v3651_v43 = vrot.slane %v3637_v0, %v6569_v8 }
 0x1fd   : > { %9995 = vst [vmem:[#allocation147_spill] sm:$0xff] %v7755_v40  ;;  %9996 = vst [vmem:[#allocation148_spill] sm:$0xff] %v7758_v18  ;;  %v3652_v4 = vcombine.low %v634_v13, %v640_v15  ;;  %v3653_v42 = vcombine.high %v634_v13, %v640_v15  ;;  %817 = vrot.lane.b32.xlu1 %v7535_v61, %s9814_s14  ;;  %s10010_s14 = smov 50  }
 0x1fe   : > { %9997 = vst [vmem:[#allocation149_spill] sm:$0xff] %v7761_v45  ;;  %814 = vrot.lane.b32.xlu0 %v7535_v61, %s9815_s10  ;;  %s10003_s10 = smov 56  }
 0x1ff   : > { %v3660_v13 = vrot.slane %v3652_v4, %v6569_v8  ;;  %v3667_v35 = vrot.slane %v3653_v42, %v6569_v8  ;;  %v649_v14 = vpop.permute.xlu1 %648 }
 0x200   : > { %v646_v0 = vpop.permute.xlu0 %645  ;;  %v3668_v58 = vcombine.low %v643_v50, %v649_v14  ;;  %v3669_v4 = vcombine.high %v643_v50, %v649_v14 }
 0x201   : > { %v3701_v15 = vcombine.high %v3644_v22, %v3660_v13  ;;  %v3717_v12 = vcombine.high %v3651_v43, %v3667_v35  ;;  %823 = vrot.lane.b32.xlu1 %v7535_v61, %s9816_s20  ;;  %v3700_v23 = vcombine.low %v3644_v22, %v3660_v13  ;;  %v3716_v14 = vcombine.low %v3651_v43, %v3667_v35  ;;  %s10011_s20 = smov 52  }
 0x202   : > { %820 = vrot.lane.b32.xlu0 %v7535_v61, %s9817_s8  ;;  %v3676_v54 = vrot.slane %v3668_v58, %v6569_v8  ;;  %v3683_v45 = vrot.slane %v3669_v4, %v6569_v8 }
 0x203   : > { %v655_v52 = vpop.permute.xlu1 %654  ;;  %v7809_v58 = vrot.slane %v3700_v23, %v6592_v34  ;;  %v7827_v13 = vrot.slane %v3716_v14, %v6592_v34  ;;  %v7830_v35 = vrot.slane %v3717_v12, %v6592_v34 }
 0x204   : > { %v652_v42 = vpop.permute.xlu0 %651 }
 0x205   : > { %v3684_v55 = vcombine.low %v646_v0, %v652_v42  ;;  %v3685_v11 = vcombine.high %v646_v0, %v652_v42  ;;  %829 = vrot.lane.b32.xlu1 %v7535_v61, %s9818_s7  ;;  %s10002_s7 = smov 54   ;;  %10008 = vst [vmem:[#allocation157_spill] sm:$0xff] %v7827_v13  ;;  %10009 = vst [vmem:[#allocation158_spill] sm:$0xff] %v7830_v35 }
 0x206   : > { %826 = vrot.lane.b32.xlu0 %v7535_v61, %s10001_s0  ;;  %s10525_s0 = sld [smem:[#allocation11_spill]] }
 0x207   : > { %v3692_v39 = vrot.slane %v3684_v55, %v6569_v8  ;;  %v3699_v18 = vrot.slane %v3685_v11, %v6569_v8  ;;  %v661_v50 = vpop.permute.xlu1 %660 }
 0x208   : > { %v3772_v40 = vcombine.low %v655_v52, %v661_v50  ;;  %v658_v60 = vpop.permute.xlu0 %657  ;;  %v3773_v22 = vcombine.high %v655_v52, %v661_v50  ;;  %v7824_v52 = vrot.slane %v3701_v15, %v6592_v34 }
 0x209   : > { %v3732_v0 = vcombine.low %v3676_v54, %v3692_v39  ;;  %v3733_v42 = vcombine.high %v3676_v54, %v3692_v39  ;;  %v3748_v62 = vcombine.low %v3683_v45, %v3699_v18  ;;  %v3749_v7 = vcombine.high %v3683_v45, %v3699_v18  ;;  %835 = vrot.lane.b32.xlu1 %v7535_v61, %s10002_s7  ;;  %s10534_s7 = sld [smem:[#allocation15_spill]] }
 0x20a   : > { %832 = vrot.lane.b32.xlu0 %v7535_v61, %s10003_s10  ;;  %10007 = vst [vmem:[#allocation156_spill] sm:$0xff] %v7824_v52  ;;  %v3780_v23 = vrot.slane %v3772_v40, %v6569_v8 }
 0x20b   : > { %v667_v55 = vpop.permute.xlu1 %666  ;;  %v7812_v11 = vrot.slane %v3732_v0, %v6592_v34  ;;  %v7815_v43 = vrot.slane %v3733_v42, %v6592_v34  ;;  %v7818_v39 = vrot.slane %v3748_v62, %v6592_v34  ;;  %v7821_v18 = vrot.slane %v3749_v7, %v6592_v34 }
 0x20c   : > { %v664_v45 = vpop.permute.xlu0 %663  ;;  %v3787_v62 = vrot.slane %v3773_v22, %v6569_v8 }
 0x20d   : > { %10004 = vst [vmem:[#allocation153_spill] sm:$0xff] %v7815_v43  ;;  %10005 = vst [vmem:[#allocation154_spill] sm:$0xff] %v7818_v39  ;;  %v3788_v54 = vcombine.low %v658_v60, %v664_v45  ;;  %v3789_v4 = vcombine.high %v658_v60, %v664_v45  ;;  %841 = vrot.lane.b32.xlu1 %v7535_v61, %s10010_s14  ;;  %s6004_s14 = sshll.u32 %s10525_s0, 9 }
 0x20e   : > { %10006 = vst [vmem:[#allocation155_spill] sm:$0xff] %v7821_v18  ;;  %838 = vrot.lane.b32.xlu0 %v7535_v61, %s10011_s20 }
 0x20f   : > { %v3796_v60 = vrot.slane %v3788_v54, %v6569_v8  ;;  %v3803_v50 = vrot.slane %v3789_v4, %v6569_v8  ;;  %v673_v14 = vpop.permute.xlu1 %672  ;;  %p10536_p9 = scmp.ne.s32.totalorder %s10534_s7, 0 }
 0x210   : > { %v670_v22 = vpop.permute.xlu0 %669  ;;  %v3804_v40 = vcombine.low %v667_v55, %v673_v14  ;;  %v3805_v54 = vcombine.high %v667_v55, %v673_v14 }
 0x211   : > { %v3837_v45 = vcombine.high %v3780_v23, %v3796_v60  ;;  %v3853_v15 = vcombine.high %v3787_v62, %v3803_v50  ;;  %847 = vrot.lane.b32.xlu1 %v7535_v61, %s10012_s24  ;;  %v3836_v0 = vcombine.low %v3780_v23, %v3796_v60  ;;  %v3852_v14 = vcombine.low %v3787_v62, %v3803_v50 }
 0x212   : > { %844 = vrot.lane.b32.xlu0 %v7535_v61, %s10013_s25  ;;  %v3812_v42 = vrot.slane %v3804_v40, %v6569_v8  ;;  %v3819_v18 = vrot.slane %v3805_v54, %v6569_v8  ;;  %s10535_s25 = sld [smem:[#allocation226_spill]] }
 0x213   : > { %v679_v12 = vpop.permute.xlu1 %678  ;;  %v7869_v40 = vrot.slane %v3836_v0, %v6592_v34  ;;  %v7887_v60 = vrot.slane %v3852_v14, %v6592_v34  ;;  %v7890_v50 = vrot.slane %v3853_v15, %v6592_v34 }
 0x214   : > { %v676_v4 = vpop.permute.xlu0 %675 }
 0x215   : > { %v3820_v7 = vcombine.low %v670_v22, %v676_v4  ;;  %v3821_v13 = vcombine.high %v670_v22, %v676_v4  ;;  %853 = vrot.lane.b32.xlu1 %v7535_v61, %s10014_s28  ;;  %10018 = vst [vmem:[#allocation159_spill] sm:$0xff] %v7869_v40  ;;  %10024 = vst [vmem:[#allocation165_spill] sm:$0xff] %v7887_v60 }
 0x216   : > { %850 = vrot.lane.b32.xlu0 %v7535_v61, %s10015_s27  ;;  %10025 = vst [vmem:[#allocation166_spill] sm:$0xff] %v7890_v50 }
 0x217   : > { %v3828_v35 = vrot.slane %v3820_v7, %v6569_v8  ;;  %v3835_v39 = vrot.slane %v3821_v13, %v6569_v8  ;;  %v685_v55 = vpop.permute.xlu1 %684 }
 0x218   : > { %v3908_v43 = vcombine.low %v679_v12, %v685_v55  ;;  %v3909_v52 = vcombine.high %v679_v12, %v685_v55  ;;  %v682_v22 = vpop.permute.xlu0 %681  ;;  %v7884_v12 = vrot.slane %v3837_v45, %v6592_v34  ;;  %s9133_s28 = scalar_lea.hbm %s10535_s25, %s6004_s14 }
 0x219   : > { %v3868_v4 = vcombine.low %v3812_v42, %v3828_v35  ;;  %v3869_v47 = vcombine.high %v3812_v42, %v3828_v35  ;;  %v3884_v53 = vcombine.low %v3819_v18, %v3835_v39  ;;  %v3885_v23 = vcombine.high %v3819_v18, %v3835_v39  ;;  %859 = vrot.lane.b32.xlu1 %v7535_v61, %s10016_s29 }
 0x21a   : > { %856 = vrot.lane.b32.xlu0 %v7535_v61, %s10017_s30  ;;  %10023 = vst [vmem:[#allocation164_spill] sm:$0xff] %v7884_v12  ;;  %v3916_v0 = vrot.slane %v3908_v43, %v6569_v8  ;;  %v3923_v54 = vrot.slane %v3909_v52, %v6569_v8  ;;  %s6312_s30 = smov [#allocation5]  }
 0x21b   : > { %v691_v7 = vpop.permute.xlu1 %690  ;;  %v7872_v13 = vrot.slane %v3868_v4, %v6592_v34  ;;  %v7875_v62 = vrot.slane %v3869_v47, %v6592_v34  ;;  %v7878_v35 = vrot.slane %v3884_v53, %v6592_v34  ;;  %v7881_v39 = vrot.slane %v3885_v23, %v6592_v34 }
 0x21c   : > { %v688_v18 = vpop.permute.xlu0 %687 }
 0x21d   : > { %10019 = vst [vmem:[#allocation160_spill] sm:$0xff] %v7872_v13  ;;  %10020 = vst [vmem:[#allocation161_spill] sm:$0xff] %v7875_v62  ;;  %v3924_v47 = vcombine.low %v682_v22, %v688_v18  ;;  %v3925_v42 = vcombine.high %v682_v22, %v688_v18  ;;  %865 = vrot.lane.b32.xlu1 %v7535_v61, %s10026_s2  ;;  %s6166_s2 = sshll.u32 %s6312_s30, 4  ;;  %s6167_s2 = int_to_ptr.vmem [resolvable:$false] %s6166_s2 }
 0x21e   : > { %10021 = vst [vmem:[#allocation162_spill] sm:$0xff] %v7878_v35  ;;  %10022 = vst [vmem:[#allocation163_spill] sm:$0xff] %v7881_v39  ;;  %862 = vrot.lane.b32.xlu0 %v7535_v61, %s10027_s18  ;;  %s6168_s18 = scalar_lea.vmem %s6167_s2, 1024 }
 0x21f   : > { %v3932_v55 = vrot.slane %v3924_v47, %v6569_v8  ;;  %v3939_v14 = vrot.slane %v3925_v42, %v6569_v8  ;;  %v697_v22 = vpop.permute.xlu1 %696 }
 0x220   : > { %v3940_v23 = vcombine.low %v691_v7, %v697_v22  ;;  %v3941_v18 = vcombine.high %v691_v7, %v697_v22  ;;  %v694_v45 = vpop.permute.xlu0 %693 }
 0x221   : > { %v3972_v53 = vcombine.low %v3916_v0, %v3932_v55  ;;  %v3973_v37 = vcombine.high %v3916_v0, %v3932_v55  ;;  %v3988_v15 = vcombine.low %v3923_v54, %v3939_v14  ;;  %v3989_v62 = vcombine.high %v3923_v54, %v3939_v14  ;;  %871 = vrot.lane.b32.xlu1 %v7535_v61, %s9938_s19  ;;  %s10031_s19 = smov 22  }
 0x222   : > { %868 = vrot.lane.b32.xlu0 %v7535_v61, %s10028_s3  ;;  %v3948_v7 = vrot.slane %v3940_v23, %v6569_v8  ;;  %v3955_v0 = vrot.slane %v3941_v18, %v6569_v8 }
 0x223   : > { %v703_v47 = vpop.permute.xlu1 %702  ;;  %v7929_v23 = vrot.slane %v3972_v53, %v6592_v34 }
 0x224   : > { %v700_v42 = vpop.permute.xlu0 %699 }
 0x225   : > { %v3956_v43 = vcombine.low %v694_v45, %v700_v42  ;;  %v3957_v52 = vcombine.high %v694_v45, %v700_v42  ;;  %877 = vrot.lane.b32.xlu1 %v7535_v61, %s10029_s4  ;;  %10033 = vst [vmem:[#allocation167_spill] sm:$0xff] %v7929_v23 }
 0x226   : > { %874 = vrot.lane.b32.xlu0 %v7535_v61, %s10030_s5 }
 0x227   : > { %v3964_v54 = vrot.slane %v3956_v43, %v6569_v8  ;;  %v3971_v55 = vrot.slane %v3957_v52, %v6569_v8  ;;  %v709_v14 = vpop.permute.xlu1 %708  ;;  %v7932_v43 = vrot.slane %v3973_v37, %v6592_v34 }
 0x228   : > { %v4044_v22 = vcombine.low %v703_v47, %v709_v14  ;;  %v4045_v4 = vcombine.high %v703_v47, %v709_v14  ;;  %v706_v39 = vpop.permute.xlu0 %705 }
 0x229   : > { %v4004_v50 = vcombine.low %v3948_v7, %v3964_v54  ;;  %v4005_v45 = vcombine.high %v3948_v7, %v3964_v54  ;;  %v4020_v42 = vcombine.low %v3955_v0, %v3971_v55  ;;  %v4021_v60 = vcombine.high %v3955_v0, %v3971_v55  ;;  %883 = vrot.lane.b32.xlu1 %v7535_v61, %s10031_s19 }
 0x22a   : > { %880 = vrot.lane.b32.xlu0 %v7535_v61, %s10032_s12  ;;  %10034 = vst [vmem:[#allocation168_spill] sm:$0xff] %v7932_v43  ;;  %v4052_v54 = vrot.slane %v4044_v22, %v6569_v8  ;;  %v7948_v53 = vrot.slane %v4045_v4, %v6569_v8  ;;  %v7951_v55 = vrot.slane %v3988_v15, %v6592_v34 }
 0x22b   : > { %v715_v52 = vpop.permute.xlu1 %714  ;;  %v7935_v18 = vrot.slane %v4004_v50, %v6592_v34  ;;  %v7938_v47 = vrot.slane %v4005_v45, %v6592_v34  ;;  %v7941_v7 = vrot.slane %v4020_v42, %v6592_v34  ;;  %v7944_v0 = vrot.slane %v4021_v60, %v6592_v34 }
 0x22c   : > { %v712_v37 = vpop.permute.xlu0 %711  ;;  %10039 = vst [vmem:[#allocation173_spill] sm:$0xff] %v7951_v55  ;;  %v7954_v50 = vrot.slane %v3989_v62, %v6592_v34 }
 0x22d   : > { %10035 = vst [vmem:[#allocation169_spill] sm:$0xff] %v7935_v18  ;;  %10036 = vst [vmem:[#allocation170_spill] sm:$0xff] %v7938_v47  ;;  %v4060_v14 = vcombine.low %v706_v39, %v712_v37  ;;  %v4061_v45 = vcombine.high %v706_v39, %v712_v37  ;;  %889 = vrot.lane.b32.xlu1 %v7535_v61, %s10041_s13 }
 0x22e   : > { %10037 = vst [vmem:[#allocation171_spill] sm:$0xff] %v7941_v7  ;;  %10038 = vst [vmem:[#allocation172_spill] sm:$0xff] %v7944_v0  ;;  %886 = vrot.lane.b32.xlu0 %v7535_v61, %s10042_s15 }
 0x22f   : > { %10040 = vst [vmem:[#allocation174_spill] sm:$0xff] %v7954_v50  ;;  %v4068_v42 = vrot.slane %v4060_v14, %v6569_v8  ;;  %v4075_v37 = vrot.slane %v4061_v45, %v6569_v8  ;;  %v721_v22 = vpop.permute.xlu1 %720 }
 0x230   : > { %v4076_v35 = vcombine.low %v715_v52, %v721_v22  ;;  %v4077_v12 = vcombine.high %v715_v52, %v721_v22  ;;  %v718_v62 = vpop.permute.xlu0 %717 }
 0x231   : > { %v4108_v47 = vcombine.low %v4052_v54, %v4068_v42  ;;  %v4109_v43 = vcombine.high %v4052_v54, %v4068_v42  ;;  %v4124_v39 = vcombine.low %v7948_v53, %v4075_v37  ;;  %v4125_v4 = vcombine.high %v7948_v53, %v4075_v37  ;;  %895 = vrot.lane.b32.xlu1 %v7535_v61, %s10043_s16 }
 0x232   : > { %892 = vrot.lane.b32.xlu0 %v7535_v61, %s10044_s17  ;;  %v4084_v52 = vrot.slane %v4076_v35, %v6569_v8  ;;  %v4091_v54 = vrot.slane %v4077_v12, %v6569_v8 }
 0x233   : > { %v728_v14 = vpop.permute.xlu1 %727 }
 0x234   : > { %v724_v45 = vpop.permute.xlu0 %723 }
 0x235   : > { %v4092_v60 = vcombine.low %v718_v62, %v724_v45  ;;  %v4093_v7 = vcombine.high %v718_v62, %v724_v45  ;;  %901 = vrot.lane.b32.xlu1 %v7535_v61, %s10045_s22  ;;  %v7993_v62 = vrot.slane %v4108_v47, %v6592_v34  ;;  %v7996_v45 = vrot.slane %v4109_v43, %v6592_v34 }
 0x236   : > { %898 = vrot.lane.b32.xlu0 %v7535_v61, %s10046_s23 }
 0x237   : > { %v4100_v53 = vrot.slane %v4092_v60, %v6569_v8  ;;  %v4107_v22 = vrot.slane %v4093_v7, %v6569_v8  ;;  %v734_v42 = vpop.permute.xlu1 %733  ;;  %10047 = vst [vmem:[#allocation175_spill] sm:$0xff] %v7993_v62  ;;  %10048 = vst [vmem:[#allocation176_spill] sm:$0xff] %v7996_v45 }
 0x238   : > { %v4196_v37 = vcombine.low %v728_v14, %v734_v42  ;;  %v4197_v15 = vcombine.high %v728_v14, %v734_v42  ;;  %v731_v0 = vpop.permute.xlu0 %730  ;;  %v8021_v42 = vrot.slane %v4124_v39, %v6592_v34 }
 0x239   : > { %v4140_v50 = vcombine.low %v4084_v52, %v4100_v53  ;;  %v4141_v55 = vcombine.high %v4084_v52, %v4100_v53  ;;  %v4156_v5 = vcombine.low %v4091_v54, %v4107_v22  ;;  %v4157_v35 = vcombine.high %v4091_v54, %v4107_v22  ;;  %907 = vrot.lane.b32.xlu1 %v7535_v61, %s10049_s26 }
 0x23a   : > { %v4204_v12 = vrot.slane %v4196_v37, %v6569_v8  ;;  %v4211_v7 = vrot.slane %v4197_v15, %v6569_v8  ;;  %v4180_v60 = vcombine.low %v7535_v61, %v731_v0  ;;  %v4181_v14 = vcombine.high %v7535_v61, %v731_v0  ;;  %904 = vrot.lane.b32.xlu0 %v7535_v61, %s10050_s11 }
 0x23b   : > { %v740_v43 = vpop.permute.xlu1 %739  ;;  %v8007_v47 = vrot.slane %v4140_v50, %v6592_v34  ;;  %v8010_v52 = vrot.slane %v4141_v55, %v6592_v34  ;;  %v8013_v54 = vrot.slane %v4156_v5, %v6592_v34  ;;  %v8016_v53 = vrot.slane %v4157_v35, %v6592_v34  ;;  %10055 = vst [vmem:[#allocation181_spill] sm:$0xff] %v8021_v42 }
 0x23c   : > { %v4188_v15 = vrot.slane %v4180_v60, %v6569_v8  ;;  %v4195_v0 = vrot.slane %v4181_v14, %v6569_v8  ;;  %v737_v22 = vpop.permute.xlu0 %736  ;;  %v8024_v50 = vrot.slane %v4125_v4, %v6592_v34 }
 0x23d   : > { %10051 = vst [vmem:[#allocation177_spill] sm:$0xff] %v8007_v47  ;;  %10052 = vst [vmem:[#allocation178_spill] sm:$0xff] %v8010_v52  ;;  %913 = vrot.lane.b32.xlu1 %v7535_v61, %s9967_s9  ;;  %s10407_s9 = sld [smem:[#allocation18_spill]] }
 0x23e   : > { %10053 = vst [vmem:[#allocation179_spill] sm:$0xff] %v8013_v54  ;;  %10054 = vst [vmem:[#allocation180_spill] sm:$0xff] %v8016_v53  ;;  %v4244_v39 = vcombine.low %v4188_v15, %v4204_v12  ;;  %v4245_v60 = vcombine.high %v4188_v15, %v4204_v12  ;;  %v4260_v14 = vcombine.low %v4195_v0, %v4211_v7  ;;  %910 = vrot.lane.b32.xlu0 %v7535_v61, %s10057_s6 }
 0x23f   : > { %10056 = vst [vmem:[#allocation182_spill] sm:$0xff] %v8024_v50  ;;  %v4261_v4 = vcombine.high %v4195_v0, %v4211_v7  ;;  %v746_v46 = vpop.permute.xlu1 %745 }
 0x240   : > { %v4228_v52 = vcombine.low %v740_v43, %v746_v46  ;;  %v4229_v12 = vcombine.high %v740_v43, %v746_v46  ;;  %v743_v15 = vpop.permute.xlu0 %742  ;;  %v8051_v35 = vrot.slane %v4244_v39, %v6592_v34 }
 0x241   : > { %v4212_v7 = vcombine.low %v737_v22, %v743_v15  ;;  %v4213_v0 = vcombine.high %v737_v22, %v743_v15 }
 0x242   : > { %v4236_v61 = vrot.slane %v4228_v52, %v6569_v8  ;;  %v4243_v45 = vrot.slane %v4229_v12, %v6569_v8  ;;  %10058 = vst [vmem:[#allocation183_spill] sm:$0xff] %v8051_v35  ;;  %v8057_v52 = vrot.slane %v4245_v60, %v6592_v34 }
 0x243   : > { %v4220_v5 = vrot.slane %v4212_v7, %v6569_v8  ;;  %v4227_v2 = vrot.slane %v4213_v0, %v6569_v8  ;;  %v752_v55 = vpop.permute.xlu1 %751  ;;  %s10431_s21 = sshll.u32 %s10407_s9, 5  ;;  %s5877_s27 = scalar_lea.sflag [#allocation4], %s10407_s9 }
 0x244   : > { %v749_v54 = vpop.permute.xlu0 %748  ;;  %10060 = vst [vmem:[#allocation185_spill] sm:$0xff] %v8057_v52  ;;  %s8952_s1 = scalar_lea.vmem [#allocation5], %s10431_s21 }
 0x245   : > { %v4276_v42 = vcombine.low %v4220_v5, %v4236_v61  ;;  %v4277_v37 = vcombine.high %v4220_v5, %v4236_v61  ;;  %v4292_v41 = vcombine.low %v4227_v2, %v4243_v45  ;;  %v4293_v56 = vcombine.high %v4227_v2, %v4243_v45  ;;  %s5893_s10 = sshll.u32 %s8952_s1, 4  ;;  %s9128_s10 = int_to_ptr.vmem [resolvable:$true] %s5893_s10 }
 0x246   : > { %v8066_v2 = vrot.slane %v4260_v14, %v6592_v34  ;;  %s6162_s29 = scalar_lea.vmem %s9128_s10, 512  ;;  %p6169_p7 = scmp.lt.s32.totalorder %s9128_s10, %s6167_s2 }
 0x247   : > { %v758_v46 = vpop.permute.xlu1 %757  ;;  %v8054_v43 = vrot.slane %v4276_v42, %v6592_v34  ;;  %v8060_v22 = vrot.slane %v4277_v37, %v6592_v34  ;;  %v8063_v12 = vrot.slane %v4292_v41, %v6592_v34  ;;  %v8069_v45 = vrot.slane %v4293_v56, %v6592_v34  ;;  %p6163_p8 = scmp.ne.s32.totalorder %s9128_s10, %s6162_s29  ;;  %p6170_p13 = scmp.lt.s32.totalorder %s6168_s18, %s6162_s29 }
 0x248   : > { %v4332_v15 = vcombine.low %v752_v55, %v758_v46  ;;  %v4333_v5 = vcombine.high %v752_v55, %v758_v46  ;;  %v755_v7 = vpop.permute.xlu0 %754  ;;  %10063 = vst [vmem:[#allocation188_spill] sm:$0xff] %v8066_v2  ;;  %v8074_v37 = vrot.slane %v4261_v4, %v6592_v34 }
 0x249   : > { %10059 = vst [vmem:[#allocation184_spill] sm:$0xff] %v8054_v43  ;;  %10061 = vst [vmem:[#allocation186_spill] sm:$0xff] %v8060_v22  ;;  %v4316_v42 = vcombine.low %v749_v54, %v755_v7  ;;  %v4317_v39 = vcombine.high %v749_v54, %v755_v7  ;;  %p6164_p11 = pnand %p6163_p8, %p10536_p9  ;;  %p6171_p3 = por %p6170_p13, %p6169_p7 }
 0x24a   : > { %10062 = vst [vmem:[#allocation187_spill] sm:$0xff] %v8063_v12  ;;  %10064 = vst [vmem:[#allocation189_spill] sm:$0xff] %v8069_v45  ;;  %v4340_v41 = vrot.slane %v4332_v15, %v6569_v8  ;;  %v4347_v0 = vrot.slane %v4333_v5, %v6569_v8 }
 0x24b   : > { %10065 = vst [vmem:[#allocation190_spill] sm:$0xff] %v8074_v37  ;;  %v4324_v56 = vrot.slane %v4316_v42, %v6569_v8  ;;  %v4331_v54 = vrot.slane %v4317_v39, %v6569_v8  ;;  %v764_v61 = vpop.permute.xlu1 %763  ;;  %p6165_p0 = pneg %p6164_p11 }
 0x24c   : > { %v761_v15 = vpop.permute.xlu0 %760 }
 0x24d   : > { %v4381_v55 = vcombine.high %v4324_v56, %v4340_v41  ;;  %v4396_v14 = vcombine.low %v4331_v54, %v4347_v0  ;;  %v4397_v60 = vcombine.high %v4331_v54, %v4347_v0  ;;  %v4380_v46 = vcombine.low %v4324_v56, %v4340_v41  ;;  %p6172_p6 = pnand %p6171_p3, %p6165_p0 }
 0x24f   : > { %v770_v42 = vpop.permute.xlu1 %769 }
 0x250   : > { %v4364_v53 = vcombine.low %v764_v61, %v770_v42  ;;  %v4365_v39 = vcombine.high %v764_v61, %v770_v42  ;;  %v767_v50 = vpop.permute.xlu0 %766  ;;  %v1044_v61 = vcombine.low %v6603_v48, %v6606_v49 }
 0x251   : > { %v4348_v22 = vcombine.low %v761_v15, %v767_v50  ;;  %v4349_v52 = vcombine.high %v761_v15, %v767_v50  ;;  %v8099_v50 = vrot.slane %v4380_v46, %v6592_v34  ;;  %v8114_v15 = vrot.slane %v4396_v14, %v6592_v34 }
 0x252   : > { %v4372_v35 = vrot.slane %v4364_v53, %v6569_v8  ;;  %v4379_v4 = vrot.slane %v4365_v39, %v6569_v8 }
 0x253   : > { %v4356_v12 = vrot.slane %v4348_v22, %v6569_v8  ;;  %v4363_v5 = vrot.slane %v4349_v52, %v6569_v8  ;;  %v776_v2 = vpop.permute.xlu1 %775  ;;  %10066 = vst [vmem:[#allocation191_spill] sm:$0xff] %v8099_v50  ;;  %v8105_v22 = vrot.slane %v4381_v55, %v6592_v34  ;;  %10071 = vst [vmem:[#allocation196_spill] sm:$0xff] %v8114_v15 }
 0x254   : > { %v773_v7 = vpop.permute.xlu0 %772 }
 0x255   : > { %v4412_v45 = vcombine.low %v4356_v12, %v4372_v35  ;;  %v4413_v37 = vcombine.high %v4356_v12, %v4372_v35  ;;  %v4428_v0 = vcombine.low %v4363_v5, %v4379_v4  ;;  %v4429_v54 = vcombine.high %v4363_v5, %v4379_v4  ;;  %10068 = vst [vmem:[#allocation193_spill] sm:$0xff] %v8105_v22 }
 0x257   : > { %v782_v41 = vpop.permute.xlu1 %781  ;;  %v8102_v53 = vrot.slane %v4412_v45, %v6592_v34  ;;  %v8108_v52 = vrot.slane %v4413_v37, %v6592_v34  ;;  %v8111_v35 = vrot.slane %v4428_v0, %v6592_v34  ;;  %v8117_v46 = vrot.slane %v4429_v54, %v6592_v34 }
 0x258   : > { %v4468_v12 = vcombine.low %v776_v2, %v782_v41  ;;  %v4469_v56 = vcombine.high %v776_v2, %v782_v41  ;;  %v779_v4 = vpop.permute.xlu0 %778  ;;  %v8122_v37 = vrot.slane %v4397_v60, %v6592_v34 }
 0x259   : > { %10067 = vst [vmem:[#allocation192_spill] sm:$0xff] %v8102_v53  ;;  %10069 = vst [vmem:[#allocation194_spill] sm:$0xff] %v8108_v52  ;;  %v4452_v45 = vcombine.low %v773_v7, %v779_v4  ;;  %v4453_v5 = vcombine.high %v773_v7, %v779_v4  ;;  %v1316_v4 = vcombine.low %v6723_v31, %v6726_v38 }
 0x25a   : > { %10070 = vst [vmem:[#allocation195_spill] sm:$0xff] %v8111_v35  ;;  %10072 = vst [vmem:[#allocation197_spill] sm:$0xff] %v8117_v46  ;;  %v4476_v42 = vrot.slane %v4468_v12, %v6569_v8  ;;  %v4483_v39 = vrot.slane %v4469_v56, %v6569_v8 }
 0x25b   : > { %10073 = vst [vmem:[#allocation198_spill] sm:$0xff] %v8122_v37  ;;  %v4460_v0 = vrot.slane %v4452_v45, %v6569_v8  ;;  %v4467_v7 = vrot.slane %v4453_v5, %v6569_v8  ;;  %v788_v54 = vpop.permute.xlu1 %787  ;;  %v1180_v5 = vcombine.low %v6663_v32, %v6666_v33 }
 0x25c   : > { %5268 = vxpose.xlu0.b32.start [1/16] (narrow) %v1044_v61, 8  ;;  %v785_v12 = vpop.permute.xlu0 %784 }
 0x25d   : > { %v4517_v14 = vcombine.high %v4460_v0, %v4476_v42  ;;  %v4532_v2 = vcombine.low %v4467_v7, %v4483_v39  ;;  %v4533_v45 = vcombine.high %v4467_v7, %v4483_v39  ;;  %v4516_v35 = vcombine.low %v4460_v0, %v4476_v42 }
 0x25f   : > { %v794_v55 = vpop.permute.xlu1 %793 }
 0x260   : > { %v4500_v52 = vcombine.low %v788_v54, %v794_v55  ;;  %v4501_v41 = vcombine.high %v788_v54, %v794_v55  ;;  %5269 = vxpose.xlu0.b32.cont [2/16] (narrow) %v1180_v5, 8  ;;  %v791_v22 = vpop.permute.xlu0 %790  ;;  %v3220_v55 = vcombine.low %v7569_v17, %v7572_v16 }
 0x261   : > { %v4484_v60 = vcombine.low %v785_v12, %v791_v22  ;;  %v4485_v61 = vcombine.high %v785_v12, %v791_v22  ;;  %v8157_v12 = vrot.slane %v4516_v35, %v6592_v34  ;;  %v8172_v35 = vrot.slane %v4532_v2, %v6592_v34 }
 0x262   : > { %v4508_v15 = vrot.slane %v4500_v52, %v6569_v8  ;;  %v4515_v56 = vrot.slane %v4501_v41, %v6569_v8  ;;  %v1452_v52 = vcombine.low %v6783_v24, %v6786_v25  ;;  %v3356_v41 = vcombine.low %v7629_v51, %v7632_v6 }
 0x263   : > { %v4492_v39 = vrot.slane %v4484_v60, %v6569_v8  ;;  %v4499_v7 = vrot.slane %v4485_v61, %v6569_v8  ;;  %v800_v46 = vpop.permute.xlu1 %799  ;;  %v1588_v60 = vcombine.low %v6843_v10, %v6846_v3  ;;  %10074 = vst [vmem:[#allocation199_spill] sm:$0xff] %v8157_v12  ;;  %10079 = vst [vmem:[#allocation204_spill] sm:$0xff] %v8172_v35 }
 0x264   : > { %5270 = vxpose.xlu0.b32.cont [3/16] (narrow) %v1316_v4, 8  ;;  %v797_v37 = vpop.permute.xlu0 %796  ;;  %v3628_v35 = vcombine.low %v7749_v29, %v7752_v57 }
 0x265   : > { %v4548_v54 = vcombine.low %v4492_v39, %v4508_v15  ;;  %v4549_v22 = vcombine.high %v4492_v39, %v4508_v15  ;;  %v4564_v42 = vcombine.low %v4499_v7, %v4515_v56  ;;  %v4565_v0 = vcombine.high %v4499_v7, %v4515_v56 }
 0x266   : > { %5300 = vxpose.xlu1.b32.start [1/16] (narrow) %v3220_v55, 8  ;;  %v8163_v15 = vrot.slane %v4517_v14, %v6592_v34 }
 0x267   : > { %v806_v4 = vpop.permute.xlu1 %805  ;;  %v8160_v5 = vrot.slane %v4548_v54, %v6592_v34  ;;  %v8166_v56 = vrot.slane %v4549_v22, %v6592_v34  ;;  %v8169_v61 = vrot.slane %v4564_v42, %v6592_v34  ;;  %v8175_v6 = vrot.slane %v4565_v0, %v6592_v34 }
 0x268   : > { %10076 = vst [vmem:[#allocation201_spill] sm:$0xff] %v8163_v15  ;;  %v4604_v39 = vcombine.low %v800_v46, %v806_v4  ;;  %v4605_v7 = vcombine.high %v800_v46, %v806_v4  ;;  %5271 = vxpose.xlu0.b32.cont [4/16] (narrow) %v1452_v52, 8  ;;  %v803_v55 = vpop.permute.xlu0 %802  ;;  %v8180_v22 = vrot.slane %v4533_v45, %v6592_v34 }
 0x269   : > { %10075 = vst [vmem:[#allocation200_spill] sm:$0xff] %v8160_v5  ;;  %10077 = vst [vmem:[#allocation202_spill] sm:$0xff] %v8166_v56  ;;  %v4588_v54 = vcombine.low %v797_v37, %v803_v55  ;;  %v4589_v51 = vcombine.high %v797_v37, %v803_v55  ;;  %v1724_v45 = vcombine.low %v6903_v28, %v6906_v63 }
 0x26a   : > { %10078 = vst [vmem:[#allocation203_spill] sm:$0xff] %v8169_v61  ;;  %10080 = vst [vmem:[#allocation205_spill] sm:$0xff] %v8175_v6  ;;  %v4612_v42 = vrot.slane %v4604_v39, %v6569_v8  ;;  %v4619_v46 = vrot.slane %v4605_v7, %v6569_v8  ;;  %5301 = vxpose.xlu1.b32.cont [2/16] (narrow) %v3356_v41, 8  ;;  %v3492_v41 = vcombine.low %v7689_v27, %v7692_v1 }
 0x26b   : > { %10081 = vst [vmem:[#allocation206_spill] sm:$0xff] %v8180_v22  ;;  %v4596_v52 = vrot.slane %v4588_v54, %v6569_v8  ;;  %v4603_v37 = vrot.slane %v4589_v51, %v6569_v8  ;;  %v812_v4 = vpop.permute.xlu1 %811 }
 0x26c   : > { %5272 = vxpose.xlu0.b32.cont [5/16] (narrow) %v1588_v60, 8  ;;  %v809_v7 = vpop.permute.xlu0 %808 }
 0x26d   : > { %v4653_v0 = vcombine.high %v4596_v52, %v4612_v42  ;;  %v4668_v51 = vcombine.low %v4603_v37, %v4619_v46  ;;  %v4669_v2 = vcombine.high %v4603_v37, %v4619_v46  ;;  %v4652_v15 = vcombine.low %v4596_v52, %v4612_v42 }
 0x26e   : > { %5302 = vxpose.xlu1.b32.cont [3/16] (narrow) %v3492_v41, 8  ;;  %v1860_v46 = vcombine.low %v6963_v20, %v6966_v21  ;;  %v3764_v41 = vcombine.low %v7809_v58, %v7812_v11 }
 0x26f   : > { %v818_v14 = vpop.permute.xlu1 %817 }
 0x270   : > { %v4636_v39 = vcombine.low %v812_v4, %v818_v14  ;;  %v4637_v60 = vcombine.high %v812_v4, %v818_v14  ;;  %5273 = vxpose.xlu0.b32.cont [6/16] (narrow) %v1724_v45, 8  ;;  %v815_v61 = vpop.permute.xlu0 %814 }
 0x271   : > { %v4620_v56 = vcombine.low %v809_v7, %v815_v61  ;;  %v4621_v55 = vcombine.high %v809_v7, %v815_v61  ;;  %v3900_v7 = vcombine.low %v7869_v40, %v7872_v13 }
 0x272   : > { %v4644_v54 = vrot.slane %v4636_v39, %v6569_v8  ;;  %v4651_v6 = vrot.slane %v4637_v60, %v6569_v8  ;;  %5303 = vxpose.xlu1.b32.cont [4/16] (narrow) %v3628_v35, 8  ;;  %v1996_v35 = vcombine.low %v7019_v19, %v7034_v26 }
 0x273   : > { %v4628_v37 = vrot.slane %v4620_v56, %v6569_v8  ;;  %v4635_v14 = vrot.slane %v4621_v55, %v6569_v8  ;;  %v824_v4 = vpop.permute.xlu1 %823  ;;  %v2132_v56 = vcombine.low %v7084_v9, %v7087_v30  ;;  %v8219_v55 = vrot.slane %v4652_v15, %v6592_v34 }
 0x274   : > { %5274 = vxpose.xlu0.b32.cont [7/16] (narrow) %v1860_v46, 8  ;;  %v821_v45 = vpop.permute.xlu0 %820  ;;  %v8234_v15 = vrot.slane %v4668_v51, %v6592_v34 }
 0x275   : > { %v4684_v61 = vcombine.low %v4628_v37, %v4644_v54  ;;  %v4685_v42 = vcombine.high %v4628_v37, %v4644_v54  ;;  %v4700_v52 = vcombine.low %v4635_v14, %v4651_v6  ;;  %v4701_v39 = vcombine.high %v4635_v14, %v4651_v6  ;;  %10082 = vst [vmem:[#allocation207_spill] sm:$0xff] %v8219_v55 }
 0x276   : > { %5304 = vxpose.xlu1.b32.cont [5/16] (narrow) %v3764_v41, 8  ;;  %v8225_v54 = vrot.slane %v4653_v0, %v6592_v34  ;;  %10087 = vst [vmem:[#allocation212_spill] sm:$0xff] %v8234_v15 }
 0x277   : > { %v830_v60 = vpop.permute.xlu1 %829  ;;  %v8222_v46 = vrot.slane %v4684_v61, %v6592_v34  ;;  %v8228_v6 = vrot.slane %v4685_v42, %v6592_v34  ;;  %v8231_v37 = vrot.slane %v4700_v52, %v6592_v34  ;;  %v8237_v13 = vrot.slane %v4701_v39, %v6592_v34 }
 0x278   : > { %10084 = vst [vmem:[#allocation209_spill] sm:$0xff] %v8225_v54  ;;  %v4740_v14 = vcombine.low %v824_v4, %v830_v60  ;;  %v4741_v41 = vcombine.high %v824_v4, %v830_v60  ;;  %5275 = vxpose.xlu0.b32.cont [8/16] (narrow) %v1996_v35, 8  ;;  %v827_v22 = vpop.permute.xlu0 %826  ;;  %v8242_v42 = vrot.slane %v4669_v2, %v6592_v34  ;;  %v10094_v54 = vld [vmem:[#allocation88_spill] sm:$0xff] }
 0x279   : > { %10083 = vst [vmem:[#allocation208_spill] sm:$0xff] %v8222_v46  ;;  %10085 = vst [vmem:[#allocation210_spill] sm:$0xff] %v8228_v6  ;;  %v4724_v61 = vcombine.low %v821_v45, %v827_v22  ;;  %v4725_v40 = vcombine.high %v821_v45, %v827_v22  ;;  %v2268_v2 = vcombine.low %v7144_v59, %v7147_v44 }
 0x27a   : > { %10086 = vst [vmem:[#allocation211_spill] sm:$0xff] %v8231_v37  ;;  %10088 = vst [vmem:[#allocation213_spill] sm:$0xff] %v8237_v13  ;;  %v4748_v52 = vrot.slane %v4740_v14, %v6569_v8  ;;  %v4755_v4 = vrot.slane %v4741_v41, %v6569_v8  ;;  %5305 = vxpose.xlu1.b32.cont [6/16] (narrow) %v3900_v7, 8 }
 0x27b   : > { %10089 = vst [vmem:[#allocation214_spill] sm:$0xff] %v8242_v42  ;;  %v4732_v35 = vrot.slane %v4724_v61, %v6569_v8  ;;  %v4739_v22 = vrot.slane %v4725_v40, %v6569_v8  ;;  %v836_v45 = vpop.permute.xlu1 %835  ;;  %v10090_v40 = vcombine.low %v7929_v23, %v7935_v18  ;;  %v10097_v18 = vld [vmem:[#allocation95_spill] sm:$0xff] }
 0x27c   : > { %5276 = vxpose.xlu0.b32.cont [9/16] (narrow) %v2132_v56, 8  ;;  %v833_v14 = vpop.permute.xlu0 %832 }
 0x27d   : > { %v4789_v39 = vcombine.high %v4732_v35, %v4748_v52  ;;  %v4804_v51 = vcombine.low %v4739_v22, %v4755_v4  ;;  %v4805_v61 = vcombine.high %v4739_v22, %v4755_v4  ;;  %v4788_v6 = vcombine.low %v4732_v35, %v4748_v52  ;;  %v10092_v22 = vld [vmem:[#allocation80_spill] sm:$0xff] }
 0x27e   : > { %5306 = vxpose.xlu1.b32.cont [7/16] (narrow) %v10090_v40, 8  ;;  %v10091_v4 = vcombine.low %v7993_v62, %v8007_v47  ;;  %v2404_v40 = vcombine.low %v10092_v22, %v7207_v36  ;;  %v4444_v62 = vcombine.low %v8099_v50, %v8102_v53 }
 0x27f   : > { %v842_v0 = vpop.permute.xlu1 %841 }
 0x280   : > { %v4772_v60 = vcombine.low %v836_v45, %v842_v0  ;;  %v4773_v56 = vcombine.high %v836_v45, %v842_v0  ;;  %5277 = vxpose.xlu0.b32.cont [10/16] (narrow) %v2268_v2, 8  ;;  %v839_v37 = vpop.permute.xlu0 %838 }
 0x281   : > { %v4756_v15 = vcombine.low %v833_v14, %v839_v37  ;;  %v4757_v7 = vcombine.high %v833_v14, %v839_v37  ;;  %v10093_v37 = vld [vmem:[#allocation183_spill] sm:$0xff] }
 0x282   : > { %v4780_v41 = vrot.slane %v4772_v60, %v6569_v8  ;;  %v4787_v13 = vrot.slane %v4773_v56, %v6569_v8  ;;  %5307 = vxpose.xlu1.b32.cont [8/16] (narrow) %v10091_v4, 8  ;;  %v4308_v52 = vcombine.low %v10093_v37, %v8054_v43  ;;  %v10095_v4 = vld [vmem:[#allocation87_spill] sm:$0xff] }
 0x283   : > { %v4764_v42 = vrot.slane %v4756_v15, %v6569_v8  ;;  %v4771_v0 = vrot.slane %v4757_v7, %v6569_v8  ;;  %v848_v45 = vpop.permute.xlu1 %847  ;;  %v2540_v47 = vcombine.low %v10095_v4, %v10094_v54  ;;  %v10096_v15 = vld [vmem:[#allocation96_spill] sm:$0xff] }
 0x284   : > { %5278 = vxpose.xlu0.b32.cont [11/16] (narrow) %v2404_v40, 8  ;;  %v845_v2 = vpop.permute.xlu0 %844  ;;  %v2676_v7 = vcombine.low %v10097_v18, %v10096_v15  ;;  %v8283_v40 = vrot.slane %v4788_v6, %v6592_v34  ;;  %v8298_v6 = vrot.slane %v4804_v51, %v6592_v34 }
 0x285   : > { %v4820_v35 = vcombine.low %v4764_v42, %v4780_v41  ;;  %v4821_v60 = vcombine.high %v4764_v42, %v4780_v41  ;;  %v4836_v14 = vcombine.low %v4771_v0, %v4787_v13  ;;  %v4837_v56 = vcombine.high %v4771_v0, %v4787_v13 }
 0x286   : > { %5308 = vxpose.xlu1.b32.cont [9/16] (narrow) %v4308_v52, 8  ;;  %10098 = vst [vmem:[#allocation80_spill] sm:$0xff] %v8283_v40  ;;  %v8289_v42 = vrot.slane %v4789_v39, %v6592_v34  ;;  %10103 = vst [vmem:[#allocation215_spill] sm:$0xff] %v8298_v6  ;;  %v10106_v39 = vld [vmem:[#allocation104_spill] sm:$0xff]  ;;  %v4716_v6 = vcombine.low %v8219_v55, %v8222_v46 }
 0x287   : > { %v854_v23 = vpop.permute.xlu1 %853  ;;  %v8286_v43 = vrot.slane %v4820_v35, %v6592_v34  ;;  %v8292_v13 = vrot.slane %v4821_v60, %v6592_v34  ;;  %v8295_v41 = vrot.slane %v4836_v14, %v6592_v34  ;;  %v8301_v50 = vrot.slane %v4837_v56, %v6592_v34 }
 0x288   : > { %10100 = vst [vmem:[#allocation87_spill] sm:$0xff] %v8289_v42  ;;  %v4876_v0 = vcombine.low %v848_v45, %v854_v23  ;;  %v4877_v52 = vcombine.high %v848_v45, %v854_v23  ;;  %5279 = vxpose.xlu0.b32.cont [12/16] (narrow) %v2540_v47, 8  ;;  %v851_v53 = vpop.permute.xlu0 %850  ;;  %v8306_v60 = vrot.slane %v4805_v61, %v6592_v34  ;;  %v10107_v61 = vld [vmem:[#allocation103_spill] sm:$0xff] }
 0x289   : > { %10099 = vst [vmem:[#allocation88_spill] sm:$0xff] %v8286_v43  ;;  %10101 = vst [vmem:[#allocation96_spill] sm:$0xff] %v8292_v13  ;;  %v4860_v35 = vcombine.low %v845_v2, %v851_v53  ;;  %v4861_v37 = vcombine.high %v845_v2, %v851_v53  ;;  %v2812_v13 = vcombine.low %v10107_v61, %v10106_v39 }
 0x28a   : > { %10102 = vst [vmem:[#allocation95_spill] sm:$0xff] %v8295_v41  ;;  %10104 = vst [vmem:[#allocation216_spill] sm:$0xff] %v8301_v50  ;;  %v4884_v14 = vrot.slane %v4876_v0, %v6569_v8  ;;  %v4891_v23 = vrot.slane %v4877_v52, %v6569_v8  ;;  %5309 = vxpose.xlu1.b32.cont [10/16] (narrow) %v4444_v62, 8  ;;  %v4580_v62 = vcombine.low %v8157_v12, %v8160_v5 }
 0x28b   : > { %10105 = vst [vmem:[#allocation217_spill] sm:$0xff] %v8306_v60  ;;  %v4868_v45 = vrot.slane %v4860_v35, %v6569_v8  ;;  %v4875_v53 = vrot.slane %v4861_v37, %v6569_v8  ;;  %v860_v2 = vpop.permute.xlu1 %859  ;;  %v4852_v46 = vcombine.low %v8283_v40, %v8286_v43 }
 0x28c   : > { %5280 = vxpose.xlu0.b32.cont [13/16] (narrow) %v2676_v7, 8  ;;  %v857_v0 = vpop.permute.xlu0 %856 }
 0x28d   : > { %v4925_v51 = vcombine.high %v4868_v45, %v4884_v14  ;;  %v4940_v37 = vcombine.low %v4875_v53, %v4891_v23  ;;  %v4941_v47 = vcombine.high %v4875_v53, %v4891_v23  ;;  %v4924_v12 = vcombine.low %v4868_v45, %v4884_v14  ;;  %v10108_v23 = vld [vmem:[#allocation112_spill] sm:$0xff]  ;;  %v10109_v53 = vld [vmem:[#allocation111_spill] sm:$0xff] }
 0x28e   : > { %5310 = vxpose.xlu1.b32.cont [11/16] (narrow) %v4580_v62, 8  ;;  %v2948_v62 = vcombine.low %v10109_v53, %v10108_v23 }
 0x28f   : > { %v866_v42 = vpop.permute.xlu1 %865  ;;  %v8341_v55 = vrot.slane %v4924_v12, %v6592_v34 }
 0x290   : > { %v4908_v56 = vcombine.low %v860_v2, %v866_v42  ;;  %v4909_v7 = vcombine.high %v860_v2, %v866_v42  ;;  %5281 = vxpose.xlu0.b32.cont [14/16] (narrow) %v2812_v13, 8  ;;  %v863_v41 = vpop.permute.xlu0 %862 }
 0x291   : > { %v4892_v5 = vcombine.low %v857_v0, %v863_v41  ;;  %v4893_v52 = vcombine.high %v857_v0, %v863_v41  ;;  %v10110_v0 = vld [vmem:[#allocation120_spill] sm:$0xff] }
 0x292   : > { %v4916_v35 = vrot.slane %v4908_v56, %v6569_v8  ;;  %v4923_v50 = vrot.slane %v4909_v7, %v6569_v8  ;;  %5311 = vxpose.xlu1.b32.cont [12/16] (narrow) %v4716_v6, 8  ;;  %v10111_v6 = vld [vmem:[#allocation119_spill] sm:$0xff] }
 0x293   : > { %v4900_v60 = vrot.slane %v4892_v5, %v6569_v8  ;;  %v4907_v42 = vrot.slane %v4893_v52, %v6569_v8  ;;  %v872_v13 = vpop.permute.xlu1 %871  ;;  %v3084_v7 = vcombine.low %v10111_v6, %v10110_v0  ;;  %v8344_v5 = vrot.slane %v4925_v51, %v6592_v34 }
 0x294   : > { %5282 = vxpose.xlu0.b32.cont [15/16] (narrow) %v2948_v62, 8  ;;  %v869_v2 = vpop.permute.xlu0 %868  ;;  %v8359_v51 = vrot.slane %v4941_v47, %v6592_v34 }
 0x295   : > { %v4956_v41 = vcombine.low %v4900_v60, %v4916_v35  ;;  %v4957_v14 = vcombine.high %v4900_v60, %v4916_v35  ;;  %v4972_v45 = vcombine.low %v4907_v42, %v4923_v50  ;;  %v4973_v56 = vcombine.high %v4907_v42, %v4923_v50  ;;  %10112 = vst [vmem:[#allocation104_spill] sm:$0xff] %v8344_v5 }
 0x296   : > { %5312 = vxpose.xlu1.b32.cont [13/16] (narrow) %v4852_v46, 8  ;;  %v8353_v60 = vrot.slane %v4940_v37, %v6592_v34  ;;  %10116 = vst [vmem:[#allocation120_spill] sm:$0xff] %v8359_v51 }
 0x297   : > { %v878_v52 = vpop.permute.xlu1 %877  ;;  %v8347_v62 = vrot.slane %v4956_v41, %v6592_v34  ;;  %v8350_v43 = vrot.slane %v4957_v14, %v6592_v34  ;;  %v8356_v50 = vrot.slane %v4972_v45, %v6592_v34  ;;  %v8362_v42 = vrot.slane %v4973_v56, %v6592_v34 }
 0x298   : > { %10114 = vst [vmem:[#allocation112_spill] sm:$0xff] %v8353_v60  ;;  %v5012_v46 = vcombine.low %v872_v13, %v878_v52  ;;  %v5013_v35 = vcombine.high %v872_v13, %v878_v52  ;;  %5283 = vxpose.xlu0.b32.end [16/16] (narrow) %v3084_v7, 8  ;;  %v875_v12 = vpop.permute.xlu0 %874 }
 0x299   : > { %10113 = vst [vmem:[#allocation103_spill] sm:$0xff] %v8350_v43  ;;  %10115 = vst [vmem:[#allocation111_spill] sm:$0xff] %v8356_v50  ;;  %v4996_v41 = vcombine.low %v869_v2, %v875_v12  ;;  %v4997_v40 = vcombine.high %v869_v2, %v875_v12  ;;  %v4988_v14 = vcombine.low %v8341_v55, %v8347_v62 }
 0x29a   : > { %10117 = vst [vmem:[#allocation119_spill] sm:$0xff] %v8362_v42  ;;  %v5020_v45 = vrot.slane %v5012_v46, %v6569_v8  ;;  %v5027_v13 = vrot.slane %v5013_v35, %v6569_v8  ;;  %v10118_v35 = vcombine.high %v6603_v48, %v6606_v49  ;;  %v10119_v46 = vcombine.high %v6663_v32, %v6666_v33 }
 0x29b   : > { %v5004_v56 = vrot.slane %v4996_v41, %v6569_v8  ;;  %v5011_v2 = vrot.slane %v4997_v40, %v6569_v8  ;;  %5313 = vxpose.xlu1.b32.cont [14/16] (narrow) %v4988_v14, 8  ;;  %v884_v52 = vpop.permute.xlu1 %883 }
 0x29c   : > { %5332 = vxpose.xlu0.b32.start [1/16] (narrow) %v10118_v35, 8  ;;  %v881_v7 = vpop.permute.xlu0 %880 }
 0x29d   : > { %v5061_v40 = vcombine.high %v5004_v56, %v5020_v45  ;;  %v5076_v14 = vcombine.low %v5011_v2, %v5027_v13  ;;  %v5077_v37 = vcombine.high %v5011_v2, %v5027_v13  ;;  %v5060_v35 = vcombine.low %v5004_v56, %v5020_v45 }
 0x29f   : > { %v890_v43 = vpop.permute.xlu1 %889 }
 0x2a0   : > { %v5044_v5 = vcombine.low %v884_v52, %v890_v43  ;;  %v5045_v12 = vcombine.high %v884_v52, %v890_v43  ;;  %5333 = vxpose.xlu0.b32.cont [2/16] (narrow) %v10119_v46, 8  ;;  %v887_v50 = vpop.permute.xlu0 %886  ;;  %v10120_v43 = vcombine.high %v6723_v31, %v6726_v38  ;;  %v8410_v31 = vrot.slane %v5076_v14, %v6592_v34 }
 0x2a1   : > { %v5028_v48 = vcombine.low %v881_v7, %v887_v50  ;;  %v5029_v49 = vcombine.high %v881_v7, %v887_v50  ;;  %v8398_v50 = vrot.slane %v5060_v35, %v6592_v34 }
 0x2a2   : > { %v5052_v60 = vrot.slane %v5044_v5, %v6569_v8  ;;  %v5059_v47 = vrot.slane %v5045_v12, %v6569_v8  ;;  %v8401_v5 = vrot.slane %v5061_v40, %v6592_v34 }
 0x2a3   : > { %v5036_v41 = vrot.slane %v5028_v48, %v6569_v8  ;;  %v5043_v42 = vrot.slane %v5029_v49, %v6569_v8  ;;  %v896_v13 = vpop.permute.xlu1 %895 }
 0x2a4   : > { %5334 = vxpose.xlu0.b32.cont [3/16] (narrow) %v10120_v43, 8  ;;  %v893_v2 = vpop.permute.xlu0 %892 }
 0x2a5   : > { %v5092_v32 = vcombine.low %v5036_v41, %v5052_v60  ;;  %v5093_v33 = vcombine.high %v5036_v41, %v5052_v60  ;;  %v5108_v52 = vcombine.low %v5043_v42, %v5059_v47  ;;  %v5109_v46 = vcombine.high %v5043_v42, %v5059_v47 }
 0x2a6   : > { %v10122_v47 = vcombine.high %v6783_v24, %v6786_v25  ;;  %v8419_v41 = vrot.slane %v5077_v37, %v6592_v34 }
 0x2a7   : > { %v902_v45 = vpop.permute.xlu1 %901  ;;  %v8404_v7 = vrot.slane %v5092_v32, %v6592_v34  ;;  %v8407_v56 = vrot.slane %v5093_v33, %v6592_v34  ;;  %v8413_v38 = vrot.slane %v5108_v52, %v6592_v34  ;;  %v8422_v40 = vrot.slane %v5109_v46, %v6592_v34 }
 0x2a8   : > { %v5148_v60 = vcombine.low %v896_v13, %v902_v45  ;;  %v5149_v42 = vcombine.high %v896_v13, %v902_v45  ;;  %5335 = vxpose.xlu0.b32.cont [4/16] (narrow) %v10122_v47, 8  ;;  %v899_v12 = vpop.permute.xlu0 %898  ;;  %10123 = vst [vmem:[#allocation219_spill] sm:$0xff] %v8419_v41  ;;  %v10125_v46 = vcombine.high %v6843_v10, %v6846_v3  ;;  %v10248_v41 = vld [vmem:[#allocation186_spill] sm:$0xff] }
 0x2a9   : > { %10121 = vst [vmem:[#allocation218_spill] sm:$0xff] %v8413_v38  ;;  %10124 = vst [vmem:[#allocation220_spill] sm:$0xff] %v8422_v40  ;;  %v5132_v48 = vcombine.low %v893_v2, %v899_v12  ;;  %v5133_v49 = vcombine.high %v893_v2, %v899_v12  ;;  %v5124_v14 = vcombine.low %v8398_v50, %v8404_v7  ;;  %v10256_v38 = vld [vmem:[#allocation202_spill] sm:$0xff] }
 0x2aa   : > { %v5156_v13 = vrot.slane %v5148_v60, %v6569_v8  ;;  %v5163_v24 = vrot.slane %v5149_v42, %v6569_v8  ;;  %v10126_v52 = vcombine.high %v6903_v28, %v6906_v63 }
 0x2ab   : > { %v5140_v43 = vrot.slane %v5132_v48, %v6569_v8  ;;  %v5147_v2 = vrot.slane %v5133_v49, %v6569_v8  ;;  %5314 = vxpose.xlu1.b32.cont [15/16] (narrow) %v5124_v14, 8  ;;  %v908_v32 = vpop.permute.xlu1 %907 }
 0x2ac   : > { %5336 = vxpose.xlu0.b32.cont [5/16] (narrow) %v10125_v46, 8  ;;  %v905_v45 = vpop.permute.xlu0 %904 }
 0x2ad   : > { %v5197_v47 = vcombine.high %v5140_v43, %v5156_v13  ;;  %v5212_v12 = vcombine.low %v5147_v2, %v5163_v24  ;;  %v5213_v48 = vcombine.high %v5147_v2, %v5163_v24  ;;  %v5196_v46 = vcombine.low %v5140_v43, %v5156_v13 }
 0x2ae   : > { %v10127_v24 = vcombine.high %v6963_v20, %v6966_v21  ;;  %v10130_v21 = vcombine.high %v7019_v19, %v7034_v26  ;;  %v10235_v26 = vld [vmem:[#allocation113_spill] sm:$0xff] }
 0x2af   : > { %v914_v49 = vpop.permute.xlu1 %913  ;;  %v8459_v13 = vrot.slane %v5197_v47, %v6592_v34  ;;  %v10238_v47 = vld [vmem:[#allocation170_spill] sm:$0xff] }
 0x2b0   : > { %v5180_v14 = vcombine.low %v908_v32, %v914_v49  ;;  %v5181_v33 = vcombine.high %v908_v32, %v914_v49  ;;  %5337 = vxpose.xlu0.b32.cont [6/16] (narrow) %v10126_v52, 8  ;;  %v911_v37 = vpop.permute.xlu0 %910  ;;  %v5204_v52 = vrot.slane %v5196_v46, %v6592_v34  ;;  %v10135_v49 = vcombine.high %v7144_v59, %v7147_v44 }
 0x2b1   : > { %v5164_v10 = vcombine.low %v905_v45, %v911_v37  ;;  %v5165_v3 = vcombine.high %v905_v45, %v911_v37  ;;  %v10139_v46 = vcombine.high %v10092_v22, %v7207_v36  ;;  %v10142_v59 = vcombine.high %v7749_v29, %v7752_v57  ;;  %v10150_v57 = vld [vmem:[#allocation167_spill] sm:$0xff]  ;;  %v10155_v22 = vld [vmem:[#allocation177_spill] sm:$0xff] }
 0x2b2   : > { %v5188_v25 = vrot.slane %v5180_v14, %v6569_v8  ;;  %v5195_v60 = vrot.slane %v5181_v33, %v6569_v8  ;;  %v10136_v14 = vld [vmem:[#allocation133_spill] sm:$0xff]  ;;  %v10143_v44 = vcombine.high %v10097_v18, %v10096_v15  ;;  %v10144_v36 = vcombine.high %v7809_v58, %v7812_v11  ;;  %v10154_v11 = vld [vmem:[#allocation175_spill] sm:$0xff] }
 0x2b3   : > { %v5172_v42 = vrot.slane %v5164_v10, %v6569_v8  ;;  %v5179_v35 = vrot.slane %v5165_v3, %v6569_v8  ;;  %v10137_v10 = vld [vmem:[#allocation134_spill] sm:$0xff]  ;;  %v10149_v29 = vcombine.high %v10109_v53, %v10108_v23  ;;  %v10153_v58 = vcombine.high %v10111_v6, %v10110_v0  ;;  %v10157_v15 = vld [vmem:[#allocation23_spill] sm:$0xff]  ;;  %v10163_v53 = vld [vmem:[#allocation29_spill] sm:$0xff] }
 0x2b4   : > { %5338 = vxpose.xlu0.b32.cont [7/16] (narrow) %v10127_v24, 8  ;;  %v10138_v3 = vcombine.high %v10136_v14, %v10137_v10  ;;  %v10160_v24 = vld [vmem:[#allocation183_spill] sm:$0xff]  ;;  %v10176_v14 = vld [vmem:[#allocation38_spill] sm:$0xff] }
 0x2b5   : > { %v5228_v2 = vcombine.low %v5172_v42, %v5188_v25  ;;  %v5229_v32 = vcombine.high %v5172_v42, %v5188_v25  ;;  %v5244_v28 = vcombine.low %v5179_v35, %v5195_v60  ;;  %v5245_v63 = vcombine.high %v5179_v35, %v5195_v60  ;;  %v10169_v6 = vld [vmem:[#allocation35_spill] sm:$0xff]  ;;  %v10241_v60 = vld [vmem:[#allocation121_spill] sm:$0xff] }
 0x2b6   : > { %v8475_v35 = vrot.slane %v5212_v12, %v6592_v34  ;;  %v8478_v25 = vrot.slane %v5213_v48, %v6592_v34  ;;  %v10133_v12 = vcombine.high %v7084_v9, %v7087_v30  ;;  %v10134_v48 = vcombine.high %v7569_v17, %v7572_v16  ;;  %v10146_v16 = vld [vmem:[#allocation159_spill] sm:$0xff] }
 0x2b7   : > { %v5236_v37 = vrot.slane %v5228_v2, %v6592_v34  ;;  %v8463_v43 = vrot.slane %v5229_v32, %v6592_v34  ;;  %v8466_v8 = vrot.slane %v5244_v28, %v6592_v34  ;;  %v8469_v20 = vrot.slane %v5245_v63, %v6592_v34  ;;  %v10161_v2 = vld [vmem:[#allocation184_spill] sm:$0xff]  ;;  %v10164_v32 = vld [vmem:[#allocation26_spill] sm:$0xff]  ;;  %v10166_v63 = vld [vmem:[#allocation191_spill] sm:$0xff] }
 0x2b8   : > { %5339 = vxpose.xlu0.b32.cont [8/16] (narrow) %v10130_v21, 8  ;;  %10131 = vst [vmem:[#allocation223_spill] sm:$0xff] %v8475_v35  ;;  %10132 = vst [vmem:[#allocation224_spill] sm:$0xff] %v8478_v25  ;;  %v10140_v9 = vcombine.high %v7689_v27, %v7692_v1  ;;  %v10141_v30 = vcombine.high %v10095_v4, %v10094_v54  ;;  %v10145_v17 = vcombine.high %v10107_v61, %v10106_v39  ;;  %v10147_v27 = vld [vmem:[#allocation160_spill] sm:$0xff]  ;;  %v10151_v54 = vld [vmem:[#allocation169_spill] sm:$0xff] }
 0x2b9   : > { %10128 = vst [vmem:[#allocation221_spill] sm:$0xff] %v8466_v8  ;;  %10129 = vst [vmem:[#allocation222_spill] sm:$0xff] %v8469_v20  ;;  %v5260_v33 = vcombine.low %v5204_v52, %v5236_v37  ;;  %v5261_v45 = vcombine.high %v5204_v52, %v5236_v37  ;;  %v10148_v1 = vcombine.high %v10146_v16, %v10147_v27  ;;  %v10158_v39 = vld [vmem:[#allocation20_spill] sm:$0xff]  ;;  %v10187_v27 = vld [vmem:[#allocation53_spill] sm:$0xff] }
 0x2ba   : > { %v10152_v18 = vcombine.high %v10150_v57, %v10151_v54  ;;  %v10156_v4 = vcombine.high %v10154_v11, %v10155_v22  ;;  %v10159_v61 = vcombine.low %v10157_v15, %v10158_v39  ;;  %v10162_v23 = vcombine.high %v10160_v24, %v10161_v2  ;;  %v10167_v52 = vld [vmem:[#allocation192_spill] sm:$0xff]  ;;  %v10191_v54 = vld [vmem:[#allocation59_spill] sm:$0xff]  ;;  %v10195_v22 = vld [vmem:[#allocation62_spill] sm:$0xff] }
 0x2bb   : > { %5315 = vxpose.xlu1.b32.end [16/16] (narrow) %v5260_v33, 8  ;;  %v10165_v28 = vcombine.low %v10163_v53, %v10164_v32  ;;  %v10168_v0 = vcombine.high %v10166_v63, %v10167_v52  ;;  %v10170_v37 = vld [vmem:[#allocation32_spill] sm:$0xff]  ;;  %v10172_v33 = vld [vmem:[#allocation199_spill] sm:$0xff]  ;;  %v10190_v57 = vcombine.high %v8341_v55, %v8347_v62  ;;  %v10194_v11 = vcombine.high %v8398_v50, %v8404_v7  ;;  %v10198_v24 = vld [vmem:[#allocation69_spill] sm:$0xff] }
 0x2bc   : > { %5340 = vxpose.xlu0.b32.cont [9/16] (narrow) %v10133_v12, 8  ;;  %v10171_v21 = vcombine.low %v10169_v6, %v10170_v37  ;;  %v10173_v12 = vld [vmem:[#allocation200_spill] sm:$0xff]  ;;  %v10202_v55 = vld [vmem:[#allocation127_spill] sm:$0xff]  ;;  %v10205_v52 = vld [vmem:[#allocation74_spill] sm:$0xff] }
 0x2bd   : > { %v10199_v2 = vld [vmem:[#allocation68_spill] sm:$0xff]  ;;  %v10204_v63 = vld [vmem:[#allocation75_spill] sm:$0xff]  ;;  %v10244_v25 = vld [vmem:[#allocation178_spill] sm:$0xff] }
 0x2be   : > { %v10208_v50 = vld [vmem:[#allocation135_spill] sm:$0xff]  ;;  %v10252_v8 = vld [vmem:[#allocation194_spill] sm:$0xff] }
 0x2bf   : > { %5364 = vxpose.xlu1.b32.start [1/16] (narrow) %v10134_v48, 8  ;;  %v10174_v48 = vcombine.high %v10172_v33, %v10173_v12  ;;  %v10210_v33 = vld [vmem:[#allocation82_spill] sm:$0xff]  ;;  %v10211_v12 = vld [vmem:[#allocation81_spill] sm:$0xff] }
 0x2c0   : > { %5341 = vxpose.xlu0.b32.cont [10/16] (narrow) %v10135_v49, 8  ;;  %v10175_v49 = vld [vmem:[#allocation41_spill] sm:$0xff] }
 0x2c1   : > { %v10177_v10 = vcombine.low %v10175_v49, %v10176_v14 }
 0x2c3   : > { %5365 = vxpose.xlu1.b32.cont [2/16] (narrow) %v10138_v3, 8  ;;  %v10178_v3 = vld [vmem:[#allocation207_spill] sm:$0xff] }
 0x2c4   : > { %5342 = vxpose.xlu0.b32.cont [11/16] (narrow) %v10139_v46, 8  ;;  %v10179_v46 = vld [vmem:[#allocation208_spill] sm:$0xff] }
 0x2c7   : > { %5366 = vxpose.xlu1.b32.cont [3/16] (narrow) %v10140_v9, 8  ;;  %v10180_v9 = vcombine.high %v10178_v3, %v10179_v46  ;;  %v10216_v46 = vld [vmem:[#allocation90_spill] sm:$0xff] }
 0x2c8   : > { %5343 = vxpose.xlu0.b32.cont [12/16] (narrow) %v10141_v30, 8  ;;  %v10181_v30 = vld [vmem:[#allocation47_spill] sm:$0xff] }
 0x2cb   : > { %5367 = vxpose.xlu1.b32.cont [4/16] (narrow) %v10142_v59, 8  ;;  %v10182_v59 = vld [vmem:[#allocation44_spill] sm:$0xff] }
 0x2cc   : > { %5344 = vxpose.xlu0.b32.cont [13/16] (narrow) %v10143_v44, 8  ;;  %v10183_v44 = vcombine.low %v10181_v30, %v10182_v59 }
 0x2cf   : > { %5368 = vxpose.xlu1.b32.cont [5/16] (narrow) %v10144_v36, 8  ;;  %v10184_v36 = vld [vmem:[#allocation80_spill] sm:$0xff] }
 0x2d0   : > { %5345 = vxpose.xlu0.b32.cont [14/16] (narrow) %v10145_v17, 8  ;;  %v10185_v17 = vld [vmem:[#allocation88_spill] sm:$0xff] }
 0x2d1   : > { %v10186_v16 = vcombine.high %v10184_v36, %v10185_v17  ;;  %v10219_v36 = vld [vmem:[#allocation150_spill] sm:$0xff]  ;;  %v10220_v17 = vld [vmem:[#allocation147_spill] sm:$0xff] }
 0x2d3   : > { %5369 = vxpose.xlu1.b32.cont [6/16] (narrow) %v10148_v1, 8  ;;  %v10188_v1 = vld [vmem:[#allocation50_spill] sm:$0xff] }
 0x2d4   : > { %5346 = vxpose.xlu0.b32.cont [15/16] (narrow) %v10149_v29, 8  ;;  %v10189_v29 = vcombine.low %v10187_v27, %v10188_v1 }
 0x2d7   : > { %5370 = vxpose.xlu1.b32.cont [7/16] (narrow) %v10152_v18, 8  ;;  %v10192_v18 = vld [vmem:[#allocation56_spill] sm:$0xff] }
 0x2d8   : > { %5347 = vxpose.xlu0.b32.end [16/16] (narrow) %v10153_v58, 8  ;;  %v10193_v58 = vcombine.low %v10191_v54, %v10192_v18 }
 0x2db   : > { %5371 = vxpose.xlu1.b32.cont [8/16] (narrow) %v10156_v4, 8  ;;  %v10196_v4 = vld [vmem:[#allocation64_spill] sm:$0xff] }
 0x2dc   : > { %5396 = vxpose.xlu0.b32.start [1/16] (narrow) %v10159_v61, 8  ;;  %v10197_v61 = vcombine.low %v10195_v22, %v10196_v4 }
 0x2df   : > { %5372 = vxpose.xlu1.b32.cont [9/16] (narrow) %v10162_v23, 8  ;;  %v10200_v23 = vcombine.low %v10198_v24, %v10199_v2 }
 0x2e0   : > { %5397 = vxpose.xlu0.b32.cont [2/16] (narrow) %v10165_v28, 8  ;;  %v10201_v28 = vld [vmem:[#allocation130_spill] sm:$0xff] }
 0x2e1   : > { %v10203_v62 = vcombine.low %v10201_v28, %v10202_v55 }
 0x2e3   : > { %5373 = vxpose.xlu1.b32.cont [10/16] (narrow) %v10168_v0, 8  ;;  %v10206_v0 = vcombine.low %v10204_v63, %v10205_v52 }
 0x2e4   : > { %5398 = vxpose.xlu0.b32.cont [3/16] (narrow) %v10171_v21, 8  ;;  %v10207_v21 = vld [vmem:[#allocation138_spill] sm:$0xff] }
 0x2e5   : > { %v10209_v7 = vcombine.low %v10207_v21, %v10208_v50 }
 0x2e7   : > { %5374 = vxpose.xlu1.b32.cont [11/16] (narrow) %v10174_v48, 8  ;;  %v10212_v48 = vcombine.low %v10210_v33, %v10211_v12 }
 0x2e8   : > { %5399 = vxpose.xlu0.b32.cont [4/16] (narrow) %v10177_v10, 8  ;;  %v10214_v10 = vld [vmem:[#allocation141_spill] sm:$0xff] }
 0x2eb   : > { %5375 = vxpose.xlu1.b32.cont [12/16] (narrow) %v10180_v9, 8  ;;  %v10217_v9 = vld [vmem:[#allocation89_spill] sm:$0xff] }
 0x2ec   : > { %5400 = vxpose.xlu0.b32.cont [5/16] (narrow) %v10183_v44, 8  ;;  %v10218_v44 = vcombine.low %v10216_v46, %v10217_v9 }
 0x2ef   : > { %5376 = vxpose.xlu1.b32.cont [13/16] (narrow) %v10186_v16, 8  ;;  %v10221_v16 = vcombine.low %v10219_v36, %v10220_v17 }
 0x2f0   : > { %5401 = vxpose.xlu0.b32.cont [6/16] (narrow) %v10189_v29, 8  ;;  %v10222_v29 = vld [vmem:[#allocation98_spill] sm:$0xff] }
 0x2f3   : > { %5377 = vxpose.xlu1.b32.cont [14/16] (narrow) %v10190_v57, 8  ;;  %v10223_v57 = vld [vmem:[#allocation97_spill] sm:$0xff] }
 0x2f4   : > { %5402 = vxpose.xlu0.b32.cont [7/16] (narrow) %v10193_v58, 8  ;;  %v10224_v58 = vcombine.low %v10222_v29, %v10223_v57 }
 0x2f7   : > { %5378 = vxpose.xlu1.b32.cont [15/16] (narrow) %v10194_v11, 8  ;;  %v10225_v11 = vld [vmem:[#allocation156_spill] sm:$0xff] }
 0x2f8   : > { %5403 = vxpose.xlu0.b32.cont [8/16] (narrow) %v10197_v61, 8  ;;  %v10226_v61 = vld [vmem:[#allocation153_spill] sm:$0xff] }
 0x2fb   : > { %5379 = vxpose.xlu1.b32.end [16/16] (narrow) %v5261_v45, 8  ;;  %v10213_v45 = vld [vmem:[#allocation144_spill] sm:$0xff] }
 0x2fc   : > { %5404 = vxpose.xlu0.b32.cont [9/16] (narrow) %v10200_v23, 8  ;;  %v10215_v3 = vcombine.low %v10213_v45, %v10214_v10  ;;  %v10227_v23 = vcombine.low %v10225_v11, %v10226_v61 }
 0x2ff   : > { %5428 = vxpose.xlu1.b32.start [1/16] (narrow) %v10203_v62, 8  ;;  %v10228_v62 = vld [vmem:[#allocation106_spill] sm:$0xff] }
 0x300   : > { %5405 = vxpose.xlu0.b32.cont [10/16] (narrow) %v10206_v0, 8  ;;  %v10229_v0 = vld [vmem:[#allocation105_spill] sm:$0xff] }
 0x303   : > { %5429 = vxpose.xlu1.b32.cont [2/16] (narrow) %v10209_v7, 8  ;;  %v10230_v7 = vcombine.low %v10228_v62, %v10229_v0 }
 0x304   : > { %5406 = vxpose.xlu0.b32.cont [11/16] (narrow) %v10212_v48, 8  ;;  %v10231_v48 = vld [vmem:[#allocation164_spill] sm:$0xff] }
 0x307   : > { %5430 = vxpose.xlu1.b32.cont [3/16] (narrow) %v10215_v3, 8  ;;  %v10232_v3 = vld [vmem:[#allocation161_spill] sm:$0xff] }
 0x308   : > { %5407 = vxpose.xlu0.b32.cont [12/16] (narrow) %v10218_v44, 8  ;;  %v10233_v34 = vcombine.low %v10231_v48, %v10232_v3  ;;  %v10234_v44 = vld [vmem:[#allocation114_spill] sm:$0xff] }
 0x309   : > { %v10236_v19 = vcombine.low %v10234_v44, %v10235_v26 }
 0x30b   : > { %5431 = vxpose.xlu1.b32.cont [4/16] (narrow) %v10221_v16, 8  ;;  %v10237_v16 = vld [vmem:[#allocation168_spill] sm:$0xff] }
 0x30c   : > { %5408 = vxpose.xlu0.b32.cont [13/16] (narrow) %v10224_v58, 8  ;;  %v10239_v42 = vcombine.low %v10237_v16, %v10238_v47  ;;  %v10240_v58 = vld [vmem:[#allocation124_spill] sm:$0xff] }
 0x30d   : > { %v10242_v20 = vcombine.low %v10240_v58, %v10241_v60 }
 0x30f   : > { %5432 = vxpose.xlu1.b32.cont [5/16] (narrow) %v10227_v23, 8  ;;  %v10243_v23 = vld [vmem:[#allocation176_spill] sm:$0xff] }
 0x310   : > { %5409 = vxpose.xlu0.b32.cont [14/16] (narrow) %v10230_v7, 8  ;;  %v10245_v40 = vcombine.low %v10243_v23, %v10244_v25  ;;  %v10246_v7 = vcombine.high %v10157_v15, %v10158_v39  ;;  %v10258_v39 = vcombine.high %v10175_v49, %v10176_v14  ;;  %v10270_v14 = vcombine.high %v10191_v54, %v10192_v18 }
 0x311   : > { %v10275_v54 = vcombine.high %v10201_v28, %v10202_v55  ;;  %v10276_v18 = vcombine.high %v10204_v63, %v10205_v52  ;;  %v10281_v28 = vcombine.high %v10219_v36, %v10220_v17  ;;  %v10282_v55 = vcombine.high %v10222_v29, %v10223_v57  ;;  %v10292_v36 = vld [vmem:[#allocation27_spill] sm:$0xff]  ;;  %v10293_v17 = vld [vmem:[#allocation30_spill] sm:$0xff]  ;;  %v10296_v57 = vld [vmem:[#allocation36_spill] sm:$0xff] }
 0x312   : > { %v10283_v63 = vcombine.high %v10225_v11, %v10226_v61  ;;  %v10284_v52 = vcombine.high %v10228_v62, %v10229_v0  ;;  %v10298_v61 = vld [vmem:[#allocation39_spill] sm:$0xff] }
 0x313   : > { %5433 = vxpose.xlu1.b32.cont [6/16] (narrow) %v10233_v34, 8  ;;  %v10247_v34 = vld [vmem:[#allocation185_spill] sm:$0xff] }
 0x314   : > { %5410 = vxpose.xlu0.b32.cont [15/16] (narrow) %v10236_v19, 8  ;;  %v10249_v51 = vcombine.low %v10247_v34, %v10248_v41  ;;  %v10250_v19 = vcombine.high %v10163_v53, %v10164_v32  ;;  %v10262_v32 = vcombine.high %v10181_v30, %v10182_v59  ;;  %v10271_v30 = vcombine.low %v8401_v5, %v8407_v56 }
 0x315   : > { %v10272_v59 = vcombine.high %v10195_v22, %v10196_v4  ;;  %v10277_v22 = vcombine.high %v10207_v21, %v10208_v50  ;;  %v10278_v4 = vcombine.high %v10210_v33, %v10211_v12  ;;  %v10285_v21 = vcombine.high %v10231_v48, %v10232_v3  ;;  %v10301_v48 = vld [vmem:[#allocation45_spill] sm:$0xff] }
 0x316   : > { %v10286_v50 = vcombine.high %v10234_v44, %v10235_v26  ;;  %v10287_v33 = vcombine.high %v10237_v16, %v10238_v47  ;;  %v10288_v12 = vcombine.high %v10240_v58, %v10241_v60  ;;  %v1184_v26 = vcombine.low %v10293_v17, %v10292_v36  ;;  %v10295_v47 = vld [vmem:[#allocation33_spill] sm:$0xff]  ;;  %v10304_v16 = vld [vmem:[#allocation51_spill] sm:$0xff] }
 0x317   : > { %5434 = vxpose.xlu1.b32.cont [7/16] (narrow) %v10239_v42, 8  ;;  %v10251_v42 = vld [vmem:[#allocation193_spill] sm:$0xff]  ;;  %v10294_v29 = vcombine.high %v10247_v34, %v10248_v41  ;;  %v1320_v60 = vcombine.low %v10296_v57, %v10295_v47  ;;  %v10302_v41 = vld [vmem:[#allocation48_spill] sm:$0xff] }
 0x318   : > { %5411 = vxpose.xlu0.b32.end [16/16] (narrow) %v10242_v20, 8  ;;  %v10253_v35 = vcombine.low %v10251_v42, %v10252_v8  ;;  %v10254_v20 = vcombine.high %v10169_v6, %v10170_v37  ;;  %v10266_v37 = vcombine.high %v10187_v27, %v10188_v1  ;;  %v10273_v27 = vcombine.low %v8459_v13, %v8463_v43  ;;  %v10307_v34 = vld [vmem:[#allocation57_spill] sm:$0xff] }
 0x319   : > { %v10274_v1 = vcombine.high %v10198_v24, %v10199_v2  ;;  %v10279_v24 = vcombine.high %v10213_v45, %v10214_v10  ;;  %v10280_v2 = vcombine.high %v10216_v46, %v10217_v9  ;;  %v10289_v45 = vld [vmem:[#allocation21_spill] sm:$0xff]  ;;  %v10290_v10 = vld [vmem:[#allocation24_spill] sm:$0xff]  ;;  %v10291_v9 = vcombine.high %v10243_v23, %v10244_v25  ;;  %v10299_v25 = vld [vmem:[#allocation42_spill] sm:$0xff] }
 0x31a   : > { %v1048_v46 = vcombine.low %v10290_v10, %v10289_v45  ;;  %v10297_v11 = vcombine.high %v10251_v42, %v10252_v8  ;;  %v1456_v62 = vcombine.low %v10299_v25, %v10298_v61  ;;  %v1592_v3 = vcombine.low %v10302_v41, %v10301_v48  ;;  %v10305_v8 = vld [vmem:[#allocation54_spill] sm:$0xff] }
 0x31b   : > { %5435 = vxpose.xlu1.b32.cont [8/16] (narrow) %v10245_v40, 8  ;;  %v10255_v40 = vld [vmem:[#allocation201_spill] sm:$0xff]  ;;  %v1728_v58 = vcombine.low %v10305_v8, %v10304_v16 }
 0x31c   : > { %5460 = vxpose.xlu0.b32.start [1/16] (narrow) %v10246_v7, 8  ;;  %v10257_v15 = vcombine.low %v10255_v40, %v10256_v38  ;;  %v10260_v7 = vld [vmem:[#allocation210_spill] sm:$0xff]  ;;  %v10300_v0 = vcombine.high %v10255_v40, %v10256_v38  ;;  %v10308_v38 = vld [vmem:[#allocation60_spill] sm:$0xff] }
 0x31d   : > { %v1864_v42 = vcombine.low %v10308_v38, %v10307_v34 }
 0x31f   : > { %5436 = vxpose.xlu1.b32.cont [9/16] (narrow) %v10249_v51, 8  ;;  %v10259_v51 = vld [vmem:[#allocation209_spill] sm:$0xff] }
 0x320   : > { %5461 = vxpose.xlu0.b32.cont [2/16] (narrow) %v10250_v19, 8  ;;  %v10261_v53 = vcombine.low %v10259_v51, %v10260_v7  ;;  %v10264_v19 = vld [vmem:[#allocation96_spill] sm:$0xff]  ;;  %v10303_v44 = vcombine.high %v10259_v51, %v10260_v7  ;;  %v10311_v51 = vld [vmem:[#allocation63_spill] sm:$0xff] }
 0x323   : > { %5437 = vxpose.xlu1.b32.cont [10/16] (narrow) %v10253_v35, 8  ;;  %v10263_v35 = vld [vmem:[#allocation87_spill] sm:$0xff] }
 0x324   : > { %5462 = vxpose.xlu0.b32.cont [3/16] (narrow) %v10254_v20, 8  ;;  %v10265_v6 = vcombine.low %v10263_v35, %v10264_v19  ;;  %v10267_v20 = vld [vmem:[#allocation104_spill] sm:$0xff]  ;;  %v10306_v23 = vcombine.high %v10263_v35, %v10264_v19  ;;  %v10314_v35 = vld [vmem:[#allocation70_spill] sm:$0xff] }
 0x327   : > { %5438 = vxpose.xlu1.b32.cont [11/16] (narrow) %v10257_v15, 8  ;;  %v10268_v15 = vld [vmem:[#allocation103_spill] sm:$0xff] }
 0x328   : > { %5463 = vxpose.xlu0.b32.cont [4/16] (narrow) %v10258_v39, 8  ;;  %v10269_v49 = vcombine.low %v10267_v20, %v10268_v15  ;;  %v10309_v40 = vcombine.high %v10267_v20, %v10268_v15  ;;  %v10310_v39 = vld [vmem:[#allocation65_spill] sm:$0xff]  ;;  %v10317_v20 = vld [vmem:[#allocation131_spill] sm:$0xff] }
 0x329   : > { %v2000_v7 = vcombine.low %v10311_v51, %v10310_v39 }
 0x32b   : > { %5439 = vxpose.xlu1.b32.cont [12/16] (narrow) %v10261_v53, 8  ;;  %v10312_v53 = vcombine.high %v8401_v5, %v8407_v56  ;;  %v10321_v5 = vld [vmem:[#allocation139_spill] sm:$0xff] }
 0x32c   : > { %5464 = vxpose.xlu0.b32.cont [5/16] (narrow) %v10262_v32, 8  ;;  %v10313_v32 = vld [vmem:[#allocation71_spill] sm:$0xff] }
 0x32d   : > { %v2136_v19 = vcombine.low %v10314_v35, %v10313_v32 }
 0x32f   : > { %5440 = vxpose.xlu1.b32.cont [13/16] (narrow) %v10265_v6, 8  ;;  %v10315_v6 = vcombine.high %v8459_v13, %v8463_v43  ;;  %v10325_v13 = vld [vmem:[#allocation145_spill] sm:$0xff] }
 0x330   : > { %5465 = vxpose.xlu0.b32.cont [6/16] (narrow) %v10266_v37, 8  ;;  %v10316_v37 = vld [vmem:[#allocation128_spill] sm:$0xff] }
 0x331   : > { %v3224_v15 = vcombine.low %v10317_v20, %v10316_v37 }
 0x333   : > { %5441 = vxpose.xlu1.b32.cont [14/16] (narrow) %v10269_v49, 8  ;;  %v10318_v49 = vld [vmem:[#allocation77_spill] sm:$0xff] }
 0x334   : > { %5466 = vxpose.xlu0.b32.cont [7/16] (narrow) %v10270_v14, 8  ;;  %v10319_v14 = vld [vmem:[#allocation76_spill] sm:$0xff] }
 0x337   : > { %5442 = vxpose.xlu1.b32.cont [15/16] (narrow) %v10271_v30, 8  ;;  %v2272_v30 = vcombine.low %v10319_v14, %v10318_v49 }
 0x338   : > { %5467 = vxpose.xlu0.b32.cont [8/16] (narrow) %v10272_v59, 8  ;;  %v10320_v59 = vld [vmem:[#allocation136_spill] sm:$0xff] }
 0x339   : > { %v3360_v56 = vcombine.low %v10321_v5, %v10320_v59 }
 0x33b   : > { %5443 = vxpose.xlu1.b32.end [16/16] (narrow) %v10273_v27, 8  ;;  %v10322_v27 = vld [vmem:[#allocation84_spill] sm:$0xff] }
 0x33c   : > { %5468 = vxpose.xlu0.b32.cont [9/16] (narrow) %v10274_v1, 8  ;;  %v10323_v1 = vld [vmem:[#allocation83_spill] sm:$0xff] }
 0x33f   : > { %5492 = vxpose.xlu1.b32.start [1/16] (narrow) %v10275_v54, 8  ;;  %v2408_v54 = vcombine.low %v10323_v1, %v10322_v27 }
 0x340   : > { %5469 = vxpose.xlu0.b32.cont [10/16] (narrow) %v10276_v18, 8  ;;  %v10324_v18 = vld [vmem:[#allocation142_spill] sm:$0xff] }
 0x341   : > { %v3496_v43 = vcombine.low %v10325_v13, %v10324_v18 }
 0x343   : > { %5493 = vxpose.xlu1.b32.cont [2/16] (narrow) %v10277_v22, 8  ;;  %v10326_v22 = vld [vmem:[#allocation92_spill] sm:$0xff] }
 0x344   : > { %5470 = vxpose.xlu0.b32.cont [11/16] (narrow) %v10278_v4, 8  ;;  %v10327_v4 = vld [vmem:[#allocation91_spill] sm:$0xff] }
 0x347   : > { %5494 = vxpose.xlu1.b32.cont [3/16] (narrow) %v10279_v24, 8  ;;  %v2544_v24 = vcombine.low %v10327_v4, %v10326_v22 }
 0x348   : > { %5471 = vxpose.xlu0.b32.cont [12/16] (narrow) %v10280_v2, 8  ;;  %v10328_v2 = vld [vmem:[#allocation148_spill] sm:$0xff] }
 0x34b   : > { %5495 = vxpose.xlu1.b32.cont [4/16] (narrow) %v10281_v28, 8  ;;  %v10329_v28 = vld [vmem:[#allocation151_spill] sm:$0xff] }
 0x34c   : > { %5472 = vxpose.xlu0.b32.cont [13/16] (narrow) %v10282_v55, 8  ;;  %v3632_v55 = vcombine.low %v10329_v28, %v10328_v2 }
 0x34f   : > { %5496 = vxpose.xlu1.b32.cont [5/16] (narrow) %v10283_v63, 8  ;;  %v10330_v63 = vld [vmem:[#allocation100_spill] sm:$0xff] }
 0x350   : > { %5473 = vxpose.xlu0.b32.cont [14/16] (narrow) %v10284_v52, 8  ;;  %v10331_v52 = vld [vmem:[#allocation99_spill] sm:$0xff] }
 0x353   : > { %5497 = vxpose.xlu1.b32.cont [6/16] (narrow) %v10285_v21, 8  ;;  %v2680_v21 = vcombine.low %v10331_v52, %v10330_v63 }
 0x354   : > { %5474 = vxpose.xlu0.b32.cont [15/16] (narrow) %v10286_v50, 8  ;;  %v10332_v50 = vld [vmem:[#allocation154_spill] sm:$0xff] }
 0x357   : > { %5498 = vxpose.xlu1.b32.cont [7/16] (narrow) %v10287_v33, 8  ;;  %v10333_v33 = vld [vmem:[#allocation157_spill] sm:$0xff] }
 0x358   : > { %5475 = vxpose.xlu0.b32.end [16/16] (narrow) %v10288_v12, 8  ;;  %v3768_v12 = vcombine.low %v10333_v33, %v10332_v50 }
 0x35b   : > { %5499 = vxpose.xlu1.b32.cont [8/16] (narrow) %v10291_v9, 8  ;;  %v10335_v9 = vld [vmem:[#allocation107_spill] sm:$0xff] }
 0x35c   : > { %5524 = vxpose.xlu0.b32.start [1/16] (narrow) %v1048_v46, 8  ;;  %v10334_v46 = vld [vmem:[#allocation108_spill] sm:$0xff] }
 0x35f   : > { %5500 = vxpose.xlu1.b32.cont [9/16] (narrow) %v10294_v29, 8  ;;  %v10336_v29 = vld [vmem:[#allocation162_spill] sm:$0xff] }
 0x360   : > { %5525 = vxpose.xlu0.b32.cont [2/16] (narrow) %v1184_v26, 8  ;;  %v2816_v26 = vcombine.low %v10335_v9, %v10334_v46 }
 0x363   : > { %5501 = vxpose.xlu1.b32.cont [10/16] (narrow) %v10297_v11, 8 }
 0x364   : > { %5526 = vxpose.xlu0.b32.cont [3/16] (narrow) %v1320_v60, 8  ;;  %v10337_v60 = vld [vmem:[#allocation165_spill] sm:$0xff] }
 0x365   : > { %v3904_v11 = vcombine.low %v10337_v60, %v10336_v29 }
 0x367   : > { %5502 = vxpose.xlu1.b32.cont [11/16] (narrow) %v10300_v0, 8  ;;  %v10339_v0 = vld [vmem:[#allocation115_spill] sm:$0xff] }
 0x368   : > { %5527 = vxpose.xlu0.b32.cont [4/16] (narrow) %v1456_v62, 8  ;;  %v10338_v62 = vld [vmem:[#allocation116_spill] sm:$0xff] }
 0x36b   : > { %5503 = vxpose.xlu1.b32.cont [12/16] (narrow) %v10303_v44, 8  ;;  %v10340_v44 = vld [vmem:[#allocation122_spill] sm:$0xff] }
 0x36c   : > { %5528 = vxpose.xlu0.b32.cont [5/16] (narrow) %v1592_v3, 8  ;;  %v2952_v3 = vcombine.low %v10339_v0, %v10338_v62 }
 0x36f   : > { %5504 = vxpose.xlu1.b32.cont [13/16] (narrow) %v10306_v23, 8 }
 0x370   : > { %5529 = vxpose.xlu0.b32.cont [6/16] (narrow) %v1728_v58, 8  ;;  %v10341_v58 = vld [vmem:[#allocation125_spill] sm:$0xff] }
 0x371   : > { %v3088_v23 = vcombine.low %v10341_v58, %v10340_v44 }
 0x373   : > { %5505 = vxpose.xlu1.b32.cont [14/16] (narrow) %v10309_v40, 8  ;;  %v10343_v40 = vld [vmem:[#allocation171_spill] sm:$0xff] }
 0x374   : > { %5530 = vxpose.xlu0.b32.cont [7/16] (narrow) %v1864_v42, 8  ;;  %v10342_v42 = vld [vmem:[#allocation173_spill] sm:$0xff] }
 0x377   : > { %5506 = vxpose.xlu1.b32.cont [15/16] (narrow) %v10312_v53, 8  ;;  %v10345_v53 = vld [vmem:[#allocation181_spill] sm:$0xff] }
 0x378   : > { %5531 = vxpose.xlu0.b32.cont [8/16] (narrow) %v2000_v7, 8  ;;  %v10344_v7 = vcombine.low %v10342_v42, %v10343_v40 }
 0x37b   : > { %5507 = vxpose.xlu1.b32.end [16/16] (narrow) %v10315_v6, 8 }
 0x37c   : > { %5532 = vxpose.xlu0.b32.cont [9/16] (narrow) %v2136_v19, 8  ;;  %v10346_v19 = vld [vmem:[#allocation179_spill] sm:$0xff] }
 0x37d   : > { %v10347_v6 = vcombine.low %v10345_v53, %v10346_v19 }
 0x37f   : > { %5556 = vxpose.xlu1.b32.start [1/16] (narrow) %v3224_v15, 8  ;;  %v10348_v15 = vcombine.high %v10290_v10, %v10289_v45  ;;  %v10360_v10 = vcombine.high %v10299_v25, %v10298_v61  ;;  %v10372_v25 = vcombine.high %v10308_v38, %v10307_v34  ;;  %v10380_v34 = vcombine.high %v10317_v20, %v10316_v37 }
 0x380   : > { %5533 = vxpose.xlu0.b32.cont [10/16] (narrow) %v2272_v30, 8  ;;  %v10349_v30 = vld [vmem:[#allocation188_spill] sm:$0xff]  ;;  %v10381_v38 = vcombine.high %v10319_v14, %v10318_v49  ;;  %v10386_v37 = vcombine.high %v10329_v28, %v10328_v2  ;;  %v10387_v20 = vcombine.high %v10331_v52, %v10330_v63  ;;  %v10388_v49 = vcombine.high %v10333_v33, %v10332_v50  ;;  %v10399_v28 = vld [vmem:[#allocation31_spill] sm:$0xff]  ;;  %v10403_v33 = vld [vmem:[#allocation37_spill] sm:$0xff] }
 0x381   : > { %v10389_v14 = vcombine.high %v10335_v9, %v10334_v46  ;;  %v10400_v63 = vld [vmem:[#allocation28_spill] sm:$0xff]  ;;  %v10404_v46 = vld [vmem:[#allocation34_spill] sm:$0xff] }
 0x382   : > { %v10401_v52 = vcombine.low %v10399_v28, %v10400_v63  ;;  %v10405_v9 = vcombine.low %v10403_v33, %v10404_v46 }
 0x383   : > { %5557 = vxpose.xlu1.b32.cont [2/16] (narrow) %v3360_v56, 8  ;;  %v10350_v56 = vld [vmem:[#allocation187_spill] sm:$0xff] }
 0x384   : > { %5534 = vxpose.xlu0.b32.cont [11/16] (narrow) %v2408_v54, 8  ;;  %v10351_v54 = vcombine.low %v10349_v30, %v10350_v56  ;;  %v10398_v2 = vcombine.high %v10349_v30, %v10350_v56  ;;  %v10417_v30 = vld [vmem:[#allocation52_spill] sm:$0xff] }
 0x387   : > { %5558 = vxpose.xlu1.b32.cont [3/16] (narrow) %v3496_v43, 8  ;;  %v10352_v43 = vcombine.high %v10293_v17, %v10292_v36  ;;  %v10364_v17 = vcombine.high %v10302_v41, %v10301_v48  ;;  %v10375_v41 = vcombine.high %v10311_v51, %v10310_v39  ;;  %v10382_v39 = vcombine.high %v10321_v5, %v10320_v59 }
 0x388   : > { %5535 = vxpose.xlu0.b32.cont [12/16] (narrow) %v2544_v24, 8  ;;  %v10353_v24 = vld [vmem:[#allocation196_spill] sm:$0xff]  ;;  %v10383_v51 = vcombine.high %v10323_v1, %v10322_v27  ;;  %v10390_v59 = vcombine.high %v10337_v60, %v10336_v29  ;;  %v10391_v5 = vcombine.high %v10339_v0, %v10338_v62  ;;  %v10392_v27 = vcombine.high %v10342_v42, %v10343_v40  ;;  %v10408_v60 = vld [vmem:[#allocation43_spill] sm:$0xff]  ;;  %v10413_v42 = vld [vmem:[#allocation46_spill] sm:$0xff] }
 0x389   : > { %v10393_v1 = vcombine.high %v10341_v58, %v10340_v44  ;;  %v10409_v62 = vld [vmem:[#allocation40_spill] sm:$0xff]  ;;  %v10412_v58 = vld [vmem:[#allocation49_spill] sm:$0xff] }
 0x38a   : > { %v10410_v0 = vcombine.low %v10408_v60, %v10409_v62  ;;  %v10414_v40 = vcombine.low %v10412_v58, %v10413_v42 }
 0x38b   : > { %5559 = vxpose.xlu1.b32.cont [4/16] (narrow) %v3632_v55, 8  ;;  %v10354_v55 = vld [vmem:[#allocation195_spill] sm:$0xff] }
 0x38c   : > { %5536 = vxpose.xlu0.b32.cont [13/16] (narrow) %v2680_v21, 8  ;;  %v10355_v21 = vcombine.low %v10353_v24, %v10354_v55  ;;  %v10402_v50 = vcombine.high %v10353_v24, %v10354_v55  ;;  %v10420_v55 = vld [vmem:[#allocation61_spill] sm:$0xff] }
 0x38f   : > { %5560 = vxpose.xlu1.b32.cont [5/16] (narrow) %v3768_v12, 8  ;;  %v10356_v12 = vcombine.high %v10296_v57, %v10295_v47  ;;  %v10368_v57 = vcombine.high %v10305_v8, %v10304_v16  ;;  %v10379_v8 = vcombine.high %v10314_v35, %v10313_v32  ;;  %v10384_v32 = vcombine.high %v10325_v13, %v10324_v18  ;;  %v10395_v13 = vld [vmem:[#allocation25_spill] sm:$0xff] }
 0x390   : > { %5537 = vxpose.xlu0.b32.cont [14/16] (narrow) %v2816_v26, 8  ;;  %v10357_v26 = vld [vmem:[#allocation204_spill] sm:$0xff]  ;;  %v10385_v35 = vcombine.high %v10327_v4, %v10326_v22  ;;  %v10394_v18 = vcombine.high %v10345_v53, %v10346_v19  ;;  %v10396_v22 = vld [vmem:[#allocation22_spill] sm:$0xff]  ;;  %v10416_v19 = vld [vmem:[#allocation55_spill] sm:$0xff] }
 0x391   : > { %v10397_v4 = vcombine.low %v10395_v13, %v10396_v22  ;;  %v10418_v56 = vcombine.low %v10416_v19, %v10417_v30 }
 0x393   : > { %5561 = vxpose.xlu1.b32.cont [6/16] (narrow) %v3904_v11, 8  ;;  %v10358_v11 = vld [vmem:[#allocation203_spill] sm:$0xff] }
 0x394   : > { %5538 = vxpose.xlu0.b32.cont [15/16] (narrow) %v2952_v3, 8  ;;  %v10359_v45 = vcombine.low %v10357_v26, %v10358_v11  ;;  %v10361_v3 = vld [vmem:[#allocation212_spill] sm:$0xff]  ;;  %v10406_v29 = vcombine.high %v10357_v26, %v10358_v11  ;;  %v10421_v26 = vld [vmem:[#allocation58_spill] sm:$0xff] }
 0x395   : > { %v10422_v11 = vcombine.low %v10420_v55, %v10421_v26 }
 0x397   : > { %5562 = vxpose.xlu1.b32.cont [7/16] (narrow) %v10344_v7, 8  ;;  %v10365_v7 = vld [vmem:[#allocation215_spill] sm:$0xff] }
 0x398   : > { %5539 = vxpose.xlu0.b32.end [16/16] (narrow) %v3088_v23, 8  ;;  %v10362_v23 = vld [vmem:[#allocation211_spill] sm:$0xff] }
 0x399   : > { %v10363_v36 = vcombine.low %v10361_v3, %v10362_v23  ;;  %v10411_v44 = vcombine.high %v10361_v3, %v10362_v23  ;;  %v10425_v3 = vld [vmem:[#allocation66_spill] sm:$0xff] }
 0x39b   : > { %5563 = vxpose.xlu1.b32.cont [8/16] (narrow) %v10347_v6, 8  ;;  %v10366_v6 = vld [vmem:[#allocation95_spill] sm:$0xff] }
 0x39c   : > { %5588 = vxpose.xlu0.b32.start [1/16] (narrow) %v10348_v15, 8  ;;  %v10367_v47 = vcombine.low %v10365_v7, %v10366_v6  ;;  %v10369_v15 = vld [vmem:[#allocation112_spill] sm:$0xff]  ;;  %v10415_v53 = vcombine.high %v10365_v7, %v10366_v6  ;;  %v5284_v7 = vpop.trf.xlu0  ;;  %v10428_v6 = vld [vmem:[#allocation73_spill] sm:$0xff] }
 0x39f   : > { %5564 = vxpose.xlu1.b32.cont [9/16] (narrow) %v10351_v54, 8  ;;  %v10370_v54 = vld [vmem:[#allocation111_spill] sm:$0xff] }
 0x3a0   : > { %5589 = vxpose.xlu0.b32.cont [2/16] (narrow) %v10352_v43, 8  ;;  %v10371_v61 = vcombine.low %v10369_v15, %v10370_v54  ;;  %v10373_v43 = vld [vmem:[#allocation218_spill] sm:$0xff]  ;;  %v10419_v24 = vcombine.high %v10369_v15, %v10370_v54  ;;  %v10433_v54 = vld [vmem:[#allocation129_spill] sm:$0xff] }
 0x3a1   : > { %v10374_v48 = vcombine.low %v8410_v31, %v10373_v43 }
 0x3a3   : > { %5565 = vxpose.xlu1.b32.cont [10/16] (narrow) %v10355_v21, 8  ;;  %v10376_v21 = vld [vmem:[#allocation223_spill] sm:$0xff] }
 0x3a4   : > { %5590 = vxpose.xlu0.b32.cont [3/16] (narrow) %v10356_v12, 8  ;;  %v10377_v12 = vld [vmem:[#allocation221_spill] sm:$0xff] }
 0x3a5   : > { %v10378_v16 = vcombine.low %v10376_v21, %v10377_v12 }
 0x3a7   : > { %5566 = vxpose.xlu1.b32.cont [11/16] (narrow) %v10359_v45, 8  ;;  %v10423_v45 = vcombine.high %v8410_v31, %v10373_v43  ;;  %v10432_v31 = vld [vmem:[#allocation132_spill] sm:$0xff]  ;;  %v5348_v43 = vpop.trf.xlu0 }
 0x3a8   : > { %5591 = vxpose.xlu0.b32.cont [4/16] (narrow) %v10360_v10, 8  ;;  %v10424_v10 = vld [vmem:[#allocation67_spill] sm:$0xff] }
 0x3a9   : > { %v10426_v23 = vcombine.low %v10424_v10, %v10425_v3 }
 0x3ab   : > { %5567 = vxpose.xlu1.b32.cont [12/16] (narrow) %v10363_v36, 8  ;;  %v10427_v36 = vcombine.high %v10376_v21, %v10377_v12 }
 0x3ac   : > { %5592 = vxpose.xlu0.b32.cont [5/16] (narrow) %v10364_v17, 8  ;;  %v5316_v17 = vpop.trf.xlu1 }
 0x3ad   : > { %v5796_v15 = vcombine.low %v5284_v7, %v5316_v17  ;;  %v10462_v17 = vld [vmem:[#allocation166_spill] sm:$0xff]  ;;  %v10463_v7 = vld [vmem:[#allocation163_spill] sm:$0xff] }
 0x3af   : > { %5568 = vxpose.xlu1.b32.cont [13/16] (narrow) %v10367_v47, 8  ;;  %v10429_v47 = vld [vmem:[#allocation72_spill] sm:$0xff]  ;;  %5990 = vst.sshfl [vmem:[%s8952_s1] sm:$0x33 pattern:$0x76325410] %v5796_v15  ;;  %v10465_v15 = vld [vmem:[#allocation118_spill] sm:$0xff] }
 0x3b0   : > { %5593 = vxpose.xlu0.b32.cont [6/16] (narrow) %v10368_v57, 8  ;;  %v10430_v57 = vcombine.low %v10428_v6, %v10429_v47 }
 0x3b3   : > { %5569 = vxpose.xlu1.b32.cont [14/16] (narrow) %v10371_v61, 8  ;;  %v10434_v61 = vcombine.low %v10432_v31, %v10433_v54 }
 0x3b4   : > { %5594 = vxpose.xlu0.b32.cont [7/16] (narrow) %v10372_v25, 8  ;;  %v5380_v25 = vpop.trf.xlu1 }
 0x3b5   : > { %v5804_v12 = vcombine.low %v5348_v43, %v5380_v25  ;;  %v10468_v43 = vld [vmem:[#allocation174_spill] sm:$0xff] }
 0x3b7   : > { %5570 = vxpose.xlu1.b32.cont [15/16] (narrow) %v10374_v48, 8  ;;  %v10435_v48 = vld [vmem:[#allocation79_spill] sm:$0xff]  ;;  %5991 = vst.sshfl [vmem:[%s8952_s1 + $0x4] sm:$0x33 pattern:$0x76325410] %v5804_v12 }
 0x3b8   : > { %5595 = vxpose.xlu0.b32.cont [8/16] (narrow) %v10375_v41, 8  ;;  %v10436_v41 = vld [vmem:[#allocation78_spill] sm:$0xff] }
 0x3b9   : > { %v10437_v21 = vcombine.low %v10435_v48, %v10436_v41 }
 0x3bb   : > { %5571 = vxpose.xlu1.b32.end [16/16] (narrow) %v10378_v16, 8  ;;  %v10438_v16 = vld [vmem:[#allocation140_spill] sm:$0xff] }
 0x3bc   : > { %5596 = vxpose.xlu0.b32.cont [9/16] (narrow) %v10379_v8, 8  ;;  %v10439_v8 = vld [vmem:[#allocation137_spill] sm:$0xff] }
 0x3bf   : > { %5620 = vxpose.xlu1.b32.start [1/16] (narrow) %v10380_v34, 8  ;;  %v10440_v34 = vcombine.low %v10438_v16, %v10439_v8 }
 0x3c0   : > { %5597 = vxpose.xlu0.b32.cont [10/16] (narrow) %v10381_v38, 8  ;;  %v5444_v38 = vpop.trf.xlu1 }
 0x3c3   : > { %5621 = vxpose.xlu1.b32.cont [2/16] (narrow) %v10382_v39, 8  ;;  %v5412_v39 = vpop.trf.xlu0 }
 0x3c4   : > { %5598 = vxpose.xlu0.b32.cont [11/16] (narrow) %v10383_v51, 8  ;;  %v10441_v51 = vld [vmem:[#allocation86_spill] sm:$0xff] }
 0x3c7   : > { %5622 = vxpose.xlu1.b32.cont [3/16] (narrow) %v10384_v32, 8  ;;  %v10442_v32 = vld [vmem:[#allocation85_spill] sm:$0xff] }
 0x3c8   : > { %5599 = vxpose.xlu0.b32.cont [12/16] (narrow) %v10385_v35, 8  ;;  %v10443_v35 = vcombine.low %v10441_v51, %v10442_v32 }
 0x3cb   : > { %5623 = vxpose.xlu1.b32.cont [4/16] (narrow) %v10386_v37, 8  ;;  %v5812_v37 = vcombine.low %v5412_v39, %v5444_v38  ;;  %v10472_v38 = vld [vmem:[#allocation123_spill] sm:$0xff] }
 0x3cc   : > { %5600 = vxpose.xlu0.b32.cont [13/16] (narrow) %v10387_v20, 8  ;;  %v10444_v20 = vld [vmem:[#allocation146_spill] sm:$0xff] }
 0x3cd   : > { %5992 = vst.sshfl [vmem:[%s8952_s1 + $0x8] sm:$0x33 pattern:$0x76325410] %v5812_v37  ;;  %v10475_v37 = vld [vmem:[#allocation180_spill] sm:$0xff] }
 0x3cf   : > { %5624 = vxpose.xlu1.b32.cont [5/16] (narrow) %v10388_v49, 8  ;;  %v10445_v49 = vld [vmem:[#allocation143_spill] sm:$0xff] }
 0x3d0   : > { %5601 = vxpose.xlu0.b32.cont [14/16] (narrow) %v10389_v14, 8  ;;  %v10446_v14 = vcombine.low %v10444_v20, %v10445_v49 }
 0x3d3   : > { %5625 = vxpose.xlu1.b32.cont [6/16] (narrow) %v10390_v59, 8  ;;  %v5508_v59 = vpop.trf.xlu1 }
 0x3d4   : > { %5602 = vxpose.xlu0.b32.cont [15/16] (narrow) %v10391_v5, 8  ;;  %v5476_v5 = vpop.trf.xlu0 }
 0x3d7   : > { %5626 = vxpose.xlu1.b32.cont [7/16] (narrow) %v10392_v27, 8  ;;  %v10447_v27 = vld [vmem:[#allocation94_spill] sm:$0xff] }
 0x3d8   : > { %5603 = vxpose.xlu0.b32.end [16/16] (narrow) %v10393_v1, 8  ;;  %v10448_v1 = vld [vmem:[#allocation93_spill] sm:$0xff] }
 0x3db   : > { %5627 = vxpose.xlu1.b32.cont [8/16] (narrow) %v10394_v18, 8  ;;  %v10449_v18 = vcombine.low %v10447_v27, %v10448_v1 }
 0x3dc   : > { %5652 = vxpose.xlu0.b32.start [1/16] (narrow) %v10397_v4, 8  ;;  %v5820_v4 = vcombine.low %v5476_v5, %v5508_v59  ;;  %v10477_v59 = vcombine.high %v10395_v13, %v10396_v22  ;;  %v10478_v5 = vld [vmem:[#allocation190_spill] sm:$0xff]  ;;  %v10489_v22 = vcombine.high %v10408_v60, %v10409_v62  ;;  %v10499_v60 = vld [vmem:[#allocation119_spill] sm:$0xff] }
 0x3de   : > { %5993 = vst.sshfl [vmem:[%s8952_s1 + $0xc] sm:$0x33 pattern:$0x76325410] %v5820_v4 }
 0x3df   : > { %5628 = vxpose.xlu1.b32.cont [9/16] (narrow) %v10398_v2, 8  ;;  %v10450_v2 = vld [vmem:[#allocation152_spill] sm:$0xff] }
 0x3e0   : > { %5653 = vxpose.xlu0.b32.cont [2/16] (narrow) %v10401_v52, 8  ;;  %v10451_v52 = vld [vmem:[#allocation149_spill] sm:$0xff] }
 0x3e3   : > { %5629 = vxpose.xlu1.b32.cont [10/16] (narrow) %v10402_v50, 8  ;;  %v10452_v50 = vcombine.low %v10450_v2, %v10451_v52 }
 0x3e4   : > { %5654 = vxpose.xlu0.b32.cont [3/16] (narrow) %v10405_v9, 8 }
 0x3e7   : > { %5630 = vxpose.xlu1.b32.cont [11/16] (narrow) %v10406_v29, 8  ;;  %v5540_v29 = vpop.trf.xlu0 }
 0x3e8   : > { %5655 = vxpose.xlu0.b32.cont [4/16] (narrow) %v10410_v0, 8  ;;  %v10453_v0 = vld [vmem:[#allocation102_spill] sm:$0xff] }
 0x3eb   : > { %5631 = vxpose.xlu1.b32.cont [12/16] (narrow) %v10411_v44, 8  ;;  %v10454_v44 = vld [vmem:[#allocation101_spill] sm:$0xff] }
 0x3ec   : > { %5656 = vxpose.xlu0.b32.cont [5/16] (narrow) %v10414_v40, 8  ;;  %v10455_v40 = vcombine.low %v10453_v0, %v10454_v44 }
 0x3ef   : > { %5632 = vxpose.xlu1.b32.cont [13/16] (narrow) %v10415_v53, 8 }
 0x3f0   : > { %5657 = vxpose.xlu0.b32.cont [6/16] (narrow) %v10418_v56, 8  ;;  %v10456_v56 = vld [vmem:[#allocation158_spill] sm:$0xff] }
 0x3f3   : > { %5633 = vxpose.xlu1.b32.cont [14/16] (narrow) %v10419_v24, 8  ;;  %v10457_v24 = vld [vmem:[#allocation155_spill] sm:$0xff] }
 0x3f4   : > { %5658 = vxpose.xlu0.b32.cont [7/16] (narrow) %v10422_v11, 8  ;;  %v10458_v11 = vcombine.low %v10456_v56, %v10457_v24 }
 0x3f7   : > { %5634 = vxpose.xlu1.b32.cont [15/16] (narrow) %v10423_v45, 8  ;;  %v10459_v45 = vld [vmem:[#allocation110_spill] sm:$0xff] }
 0x3f8   : > { %5659 = vxpose.xlu0.b32.cont [8/16] (narrow) %v10426_v23, 8  ;;  %v10460_v23 = vld [vmem:[#allocation109_spill] sm:$0xff] }
 0x3fb   : > { %5635 = vxpose.xlu1.b32.end [16/16] (narrow) %v10427_v36, 8  ;;  %v10461_v36 = vcombine.low %v10459_v45, %v10460_v23 }
 0x3fc   : > { %5660 = vxpose.xlu0.b32.cont [9/16] (narrow) %v10430_v57, 8  ;;  %v10464_v57 = vcombine.low %v10462_v17, %v10463_v7 }
 0x3ff   : > { %5684 = vxpose.xlu1.b32.start [1/16] (narrow) %v10434_v61, 8  ;;  %v5572_v9 = vpop.trf.xlu1  ;;  %v10466_v61 = vld [vmem:[#allocation117_spill] sm:$0xff] }
 0x400   : > { %5661 = vxpose.xlu0.b32.cont [10/16] (narrow) %v10437_v21, 8  ;;  %v5828_v53 = vcombine.low %v5540_v29, %v5572_v9  ;;  %v10467_v25 = vcombine.low %v10465_v15, %v10466_v61  ;;  %v10469_v21 = vld [vmem:[#allocation172_spill] sm:$0xff]  ;;  %v10482_v9 = vld [vmem:[#allocation198_spill] sm:$0xff]  ;;  %v10483_v29 = vld [vmem:[#allocation197_spill] sm:$0xff] }
 0x401   : > { %v10470_v12 = vcombine.low %v10468_v43, %v10469_v21 }
 0x402   : > { %5994 = vst.sshfl [vmem:[%s8952_s1 + $0x10] sm:$0x33 pattern:$0x76325410] %v5828_v53  ;;  %v10485_v53 = vcombine.high %v10403_v33, %v10404_v46  ;;  %v10495_v33 = vld [vmem:[#allocation216_spill] sm:$0xff] }
 0x403   : > { %5685 = vxpose.xlu1.b32.cont [2/16] (narrow) %v10440_v34, 8  ;;  %v10471_v34 = vld [vmem:[#allocation126_spill] sm:$0xff] }
 0x404   : > { %5662 = vxpose.xlu0.b32.cont [11/16] (narrow) %v10443_v35, 8  ;;  %v10473_v39 = vcombine.low %v10471_v34, %v10472_v38  ;;  %v10474_v35 = vld [vmem:[#allocation182_spill] sm:$0xff] }
 0x407   : > { %5686 = vxpose.xlu1.b32.cont [3/16] (narrow) %v10446_v14, 8  ;;  %v10476_v14 = vcombine.low %v10474_v35, %v10475_v37 }
 0x408   : > { %5663 = vxpose.xlu0.b32.cont [12/16] (narrow) %v10449_v18, 8  ;;  %v10479_v18 = vld [vmem:[#allocation189_spill] sm:$0xff] }
 0x409   : > { %v10480_v4 = vcombine.low %v10478_v5, %v10479_v18 }
 0x40b   : > { %5687 = vxpose.xlu1.b32.cont [4/16] (narrow) %v10452_v50, 8  ;;  %v10481_v50 = vcombine.high %v10399_v28, %v10400_v63  ;;  %v10493_v63 = vcombine.high %v10412_v58, %v10413_v42  ;;  %v10505_v42 = vcombine.high %v10424_v10, %v10425_v3  ;;  %v10512_v3 = vcombine.high %v10438_v16, %v10439_v8 }
 0x40c   : > { %5664 = vxpose.xlu0.b32.cont [13/16] (narrow) %v10455_v40, 8  ;;  %v10484_v40 = vcombine.low %v10482_v9, %v10483_v29  ;;  %v10519_v16 = vcombine.high %v10459_v45, %v10460_v23  ;;  %v10520_v8 = vcombine.high %v10462_v17, %v10463_v7 }
 0x40f   : > { %5688 = vxpose.xlu1.b32.cont [5/16] (narrow) %v10458_v11, 8  ;;  %v10486_v11 = vld [vmem:[#allocation206_spill] sm:$0xff] }
 0x410   : > { %5665 = vxpose.xlu0.b32.cont [14/16] (narrow) %v10461_v36, 8  ;;  %v10487_v36 = vld [vmem:[#allocation205_spill] sm:$0xff] }
 0x411   : > { %v10488_v13 = vcombine.low %v10486_v11, %v10487_v36 }
 0x413   : > { %5689 = vxpose.xlu1.b32.cont [6/16] (narrow) %v10464_v57, 8  ;;  %v10490_v57 = vld [vmem:[#allocation214_spill] sm:$0xff] }
 0x414   : > { %5666 = vxpose.xlu0.b32.cont [15/16] (narrow) %v10467_v25, 8  ;;  %v10491_v25 = vld [vmem:[#allocation213_spill] sm:$0xff] }
 0x415   : > { %v10492_v28 = vcombine.low %v10490_v57, %v10491_v25 }
 0x417   : > { %5690 = vxpose.xlu1.b32.cont [7/16] (narrow) %v10470_v12, 8  ;;  %v10494_v12 = vld [vmem:[#allocation217_spill] sm:$0xff] }
 0x418   : > { %5667 = vxpose.xlu0.b32.end [16/16] (narrow) %v10473_v39, 8  ;;  %v10496_v46 = vcombine.low %v10494_v12, %v10495_v33  ;;  %v10497_v39 = vcombine.high %v10416_v19, %v10417_v30  ;;  %v10509_v30 = vcombine.high %v10428_v6, %v10429_v47  ;;  %v10513_v6 = vcombine.high %v10441_v51, %v10442_v32 }
 0x419   : > { %v10514_v47 = vcombine.high %v10444_v20, %v10445_v49  ;;  %v10521_v51 = vcombine.high %v10465_v15, %v10466_v61  ;;  %v10522_v32 = vcombine.high %v10468_v43, %v10469_v21  ;;  %v10523_v20 = vcombine.high %v10471_v34, %v10472_v38 }
 0x41a   : > { %v10524_v49 = vcombine.high %v10474_v35, %v10475_v37 }
 0x41b   : > { %5691 = vxpose.xlu1.b32.cont [8/16] (narrow) %v10476_v14, 8  ;;  %v10498_v14 = vld [vmem:[#allocation120_spill] sm:$0xff] }
 0x41c   : > { %5716 = vxpose.xlu0.b32.start [1/16] (narrow) %v10477_v59, 8  ;;  %v10500_v62 = vcombine.low %v10498_v14, %v10499_v60  ;;  %v10501_v59 = vcombine.high %v10420_v55, %v10421_v26  ;;  %v10510_v55 = vcombine.high %v10432_v31, %v10433_v54  ;;  %v10515_v31 = vcombine.high %v10447_v27, %v10448_v1 }
 0x41d   : > { %v10516_v54 = vcombine.high %v10450_v2, %v10451_v52  ;;  %v10526_v27 = vcombine.high %v10478_v5, %v10479_v18  ;;  %v10527_v1 = vcombine.high %v10482_v9, %v10483_v29  ;;  %v10528_v2 = vcombine.high %v10486_v11, %v10487_v36 }
 0x41e   : > { %v10529_v52 = vcombine.high %v10490_v57, %v10491_v25 }
 0x41f   : > { %5692 = vxpose.xlu1.b32.cont [9/16] (narrow) %v10480_v4, 8  ;;  %v10502_v4 = vld [vmem:[#allocation219_spill] sm:$0xff] }
 0x420   : > { %5717 = vxpose.xlu0.b32.cont [2/16] (narrow) %v10481_v50, 8  ;;  %v10503_v50 = vld [vmem:[#allocation220_spill] sm:$0xff] }
 0x421   : > { %v10504_v58 = vcombine.low %v10502_v4, %v10503_v50 }
 0x423   : > { %5693 = vxpose.xlu1.b32.cont [10/16] (narrow) %v10484_v40, 8  ;;  %v10506_v40 = vld [vmem:[#allocation224_spill] sm:$0xff] }
 0x424   : > { %5718 = vxpose.xlu0.b32.cont [3/16] (narrow) %v10485_v53, 8  ;;  %v10507_v53 = vld [vmem:[#allocation222_spill] sm:$0xff] }
 0x425   : > { %v10508_v19 = vcombine.low %v10506_v40, %v10507_v53 }
 0x427   : > { %5694 = vxpose.xlu1.b32.cont [11/16] (narrow) %v10488_v13, 8  ;;  %v5604_v13 = vpop.trf.xlu0 }
 0x428   : > { %5719 = vxpose.xlu0.b32.cont [4/16] (narrow) %v10489_v22, 8  ;;  %v10511_v22 = vcombine.high %v10435_v48, %v10436_v41  ;;  %v10517_v48 = vcombine.high %v10453_v0, %v10454_v44  ;;  %v10518_v41 = vcombine.high %v10456_v56, %v10457_v24  ;;  %v10530_v0 = vcombine.high %v10494_v12, %v10495_v33 }
 0x429   : > { %v10531_v44 = vcombine.high %v10498_v14, %v10499_v60  ;;  %v10532_v56 = vcombine.high %v10502_v4, %v10503_v50  ;;  %v10533_v24 = vcombine.high %v10506_v40, %v10507_v53 }
 0x42b   : > { %5695 = vxpose.xlu1.b32.cont [12/16] (narrow) %v10492_v28, 8 }
 0x42c   : > { %5720 = vxpose.xlu0.b32.cont [5/16] (narrow) %v10493_v63, 8 }
 0x42f   : > { %5696 = vxpose.xlu1.b32.cont [13/16] (narrow) %v10496_v46, 8 }
 0x430   : > { %5721 = vxpose.xlu0.b32.cont [6/16] (narrow) %v10497_v39, 8 }
 0x433   : > { %5697 = vxpose.xlu1.b32.cont [14/16] (narrow) %v10500_v62, 8 }
 0x434   : > { %5722 = vxpose.xlu0.b32.cont [7/16] (narrow) %v10501_v59, 8 }
 0x437   : > { %5698 = vxpose.xlu1.b32.cont [15/16] (narrow) %v10504_v58, 8 }
 0x438   : > { %5723 = vxpose.xlu0.b32.cont [8/16] (narrow) %v10505_v42, 8 }
 0x43b   : > { %5699 = vxpose.xlu1.b32.end [16/16] (narrow) %v10508_v19, 8 }
 0x43c   : > { %5724 = vxpose.xlu0.b32.cont [9/16] (narrow) %v10509_v30, 8 }
 0x43f   : > { %5748 = vxpose.xlu1.b32.start [1/16] (narrow) %v10510_v55, 8  ;;  %v5636_v26 = vpop.trf.xlu1 }
 0x440   : > { %5725 = vxpose.xlu0.b32.cont [10/16] (narrow) %v10511_v22, 8  ;;  %v5836_v10 = vcombine.low %v5604_v13, %v5636_v26 }
 0x442   : > { %5995 = vst.sshfl [vmem:[%s8952_s1 + $0x14] sm:$0x33 pattern:$0x76325410] %v5836_v10 }
 0x443   : > { %5749 = vxpose.xlu1.b32.cont [2/16] (narrow) %v10512_v3, 8 }
 0x444   : > { %5726 = vxpose.xlu0.b32.cont [11/16] (narrow) %v10513_v6, 8 }
 0x447   : > { %5750 = vxpose.xlu1.b32.cont [3/16] (narrow) %v10514_v47, 8 }
 0x448   : > { %5727 = vxpose.xlu0.b32.cont [12/16] (narrow) %v10515_v31, 8 }
 0x44b   : > { %5751 = vxpose.xlu1.b32.cont [4/16] (narrow) %v10516_v54, 8 }
 0x44c   : > { %5728 = vxpose.xlu0.b32.cont [13/16] (narrow) %v10517_v48, 8 }
 0x44f   : > { %5752 = vxpose.xlu1.b32.cont [5/16] (narrow) %v10518_v41, 8 }
 0x450   : > { %5729 = vxpose.xlu0.b32.cont [14/16] (narrow) %v10519_v16, 8 }
 0x453   : > { %5753 = vxpose.xlu1.b32.cont [6/16] (narrow) %v10520_v8, 8 }
 0x454   : > { %5730 = vxpose.xlu0.b32.cont [15/16] (narrow) %v10521_v51, 8 }
 0x457   : > { %5754 = vxpose.xlu1.b32.cont [7/16] (narrow) %v10522_v32, 8 }
 0x458   : > { %5731 = vxpose.xlu0.b32.end [16/16] (narrow) %v10523_v20, 8 }
 0x45b   : > { %5755 = vxpose.xlu1.b32.cont [8/16] (narrow) %v10524_v49, 8 }
 0x45c   : > { %v5668_v45 = vpop.trf.xlu0 }
 0x45f   : > { %5756 = vxpose.xlu1.b32.cont [9/16] (narrow) %v10526_v27, 8 }
 0x463   : > { %5757 = vxpose.xlu1.b32.cont [10/16] (narrow) %v10527_v1, 8 }
 0x467   : > { %5758 = vxpose.xlu1.b32.cont [11/16] (narrow) %v10528_v2, 8 }
 0x46b   : > { %5759 = vxpose.xlu1.b32.cont [12/16] (narrow) %v10529_v52, 8 }
 0x46f   : > { %5760 = vxpose.xlu1.b32.cont [13/16] (narrow) %v10530_v0, 8 }
 0x473   : > { %5761 = vxpose.xlu1.b32.cont [14/16] (narrow) %v10531_v44, 8 }
 0x477   : > { %5762 = vxpose.xlu1.b32.cont [15/16] (narrow) %v10532_v56, 8 }
 0x47b   : > { %5763 = vxpose.xlu1.b32.end [16/16] (narrow) %v10533_v24, 8 }
 0x47f   : > { %v5700_v23 = vpop.trf.xlu1 }
 0x480   : > { %v5844_v17 = vcombine.low %v5668_v45, %v5700_v23 }
 0x482   : > { %5996 = vst.sshfl [vmem:[%s8952_s1 + $0x18] sm:$0x33 pattern:$0x76325410] %v5844_v17 }
 0x49c   : > { %v5732_v7 = vpop.trf.xlu0 }
 0x4bf   : > { %v5764_v15 = vpop.trf.xlu1 }
 0x4c0   : > { %v5852_v61 = vcombine.low %v5732_v7, %v5764_v15 }
 0x4c2   : > { %5997 = vst.sshfl [vmem:[%s8952_s1 + $0x1c] sm:$0x33 pattern:$0x76325410] %v5852_v61 }
 0x4c3   : > { %6175 = shalt.err (!%p6172_p6)
}
 0x4c4   : > { %s6176_s3 = scalar_lea.hbm %s9133_s28, 512  ;;  %s6180_s19 = scalar_lea.hbm %s10535_s25, 1024 }
 0x4c5   : > { %p6177_p4 = scmp.ne.s32.totalorder %s9133_s28, %s6176_s3  ;;  %p6181_p1 = scmp.lt.u32.totalorder %s9133_s28, %s10535_s25 }
 0x4c6   : > { %p6182_p2 = scmp.lt.u32.totalorder %s6180_s19, %s6176_s3  ;;  %p6184_p8 = scmp.lt.u32.totalorder %s6176_s3, %s9133_s28 }
 0x4c7   : > { %p6178_p10 = pnand %p6177_p4, %p10536_p9 }
 0x4c8   : > { %p6183_p5 = por %p6182_p2, %p6181_p1 }
 0x4c9   : > { %p6179_p12 = pneg %p6178_p10 }
 0x4ca   : > { %p6185_p11 = por %p6184_p8, %p6183_p5 }
 0x4cc   : > { %p6186_p0 = pnand %p6185_p11, %p6179_p12 }
 0x4ce   : > { %6189 = shalt.err (!%p6186_p0)
}
 0x4cf   : > { %6007 = dma.vmem_to_hbm [thread:$0]  (%p10536_p9), %s9128_s10, 512, %s9133_s28, %s5877_s27, %s9817_s8, %s9817_s8, %s10057_s6  }
 0x4d0 PF: > { %s10537_s15 = sld [smem:[#allocation8_spill]]  ;;  %s10538_s16 = sld [smem:[#allocation17_spill]] }
 0x4d1   : > { %s10539_s17 = sld [smem:[#allocation13_spill]] }
 0x4d6   : > { %s5908_s22 = sand.u32 1, %s10537_s15   ;;  %p10540_p7 = scmp.ne.s32.totalorder %s10538_s16, 0 }
 0x4d7   : > { %p10541_p13 = scmp.ge.s32.totalorder %s10539_s17, 2  ;;  %s5909_s23 = scalar_lea.sflag [#allocation4], %s5908_s22 }
 0x4d9   : > { %p6014_p3 = pnand %p10541_p13, %p10540_p7 }
 0x4db   : > { %6219 = dma.done.wait (!%p6014_p3), %s5909_s23, 512  }
 0x4dc   : > { %6221 = vsyncadd (!%p6014_p3), %s5909_s23, 4294966784  ;;  %s17_s11 = sadd.s32 1, %s10539_s17   ;;  %s10542_s6 = sld [smem:[#allocation9_spill]] }
 0x4dd   : > { %p14_p6 = scmp.ge.s32.totalorder %s17_s11, 4   ;;  %s10543_s7 = sld [smem:[#allocation10_spill]] }
 0x4de   : > { %s10544_s8 = sld [smem:[#allocation16_spill]]  ;;  %s10545_s9 = sld [smem:[#allocation12_spill]] }
 0x4df   : > { %s10546_s10 = sld [smem:[#allocation14_spill]]  ;;  %16 = sbr.rel (!%p14_p6) target bundleno = 9 (0x9), region = 69 }
 0x4e6   :  { %5914 = vsyncpa [#allocation3], 1 }
 0x4e7   :  { %5916 = vsyncpa [#allocation3 + $0x1], 1 }
 0x4e8   :  { %5917 = vsyncpa [#allocation4], 1 }
 0x4e9   :  { %5919 = vsyncpa [#allocation4 + $0x1], 1 }

</bundles_post_ra>
